<compile_context>
chip_gen: v7x
topology: tpu7x:2x2x1
jax: 0.10.0
libtpu: 0.0.40
codegen_flags: <defaults>
</compile_context>

<pallas_src>
import functools

import jax
import jax.numpy as jnp
from jax.experimental import pallas as pl
from jax.experimental.pallas import tpu as pltpu

_BN_SCALE = float(1.0 / (1.0 + 1e-5) ** 0.5)   # eval-mode BatchNorm affine scale
_VMEM_LIMIT = 32 * 1024 * 1024


def _whole(shape):
    zeros = (0,) * len(shape)
    return pl.BlockSpec(shape, lambda *_, z=zeros: z)


def _cparams(semantics):
    return pltpu.CompilerParams(dimension_semantics=semantics,
                                vmem_limit_bytes=_VMEM_LIMIT)


# ----------------------------- Pallas kernels ------------------------------

def _down_kernel(x_ref, w_ref, b_ref, o_ref):
    """Fused UNetWaveConvBlock (+ optional trailing maxpool).

    x_ref: (4, K, M, Cin)  -- (haar tap, pool tap, row, channel); K == 1 means no maxpool.
    Haar-LL -> ReLU -> 1x1 conv (BN folded) -> ReLU -> max over the K pool taps.
    """
    w = w_ref[...]
    b = b_ref[...]
    h = jnp.maximum((x_ref[0] + x_ref[1] + x_ref[2] + x_ref[3]) * 0.5, 0.0)  # (K, M, Cin)
    out = None
    for k in range(h.shape[0]):          # static, unrolled (K is 1 or 4)
        zk = jnp.maximum(
            jnp.dot(h[k], w, preferred_element_type=jnp.float32) + b, 0.0)
        out = zk if out is None else jnp.maximum(out, zk)
    o_ref[...] = out


def _up_kernel(x_ref, br_ref, a_ref, bbd_ref, c_ref, o_ref):
    """Fused UNetUpBlock (ConvT2x2 -> cat -> 1x1 conv -> ConvT2x2), all affine,
    pre-composed into two matmuls.  Output columns grouped (dy, dx, ey, ex, c)."""
    o_ref[...] = (
        jnp.dot(x_ref[...], a_ref[...], preferred_element_type=jnp.float32)
        + jnp.dot(br_ref[...], bbd_ref[...], preferred_element_type=jnp.float32)
        + c_ref[...])


def _mm_kernel(x_ref, w_ref, b_ref, o_ref, *, relu):
    z = jnp.dot(x_ref[...], w_ref[...], preferred_element_type=jnp.float32) + b_ref[...]
    if relu:
        z = jnp.maximum(z, 0.0)
    o_ref[...] = z


def _mm2_kernel(x_ref, w1_ref, b1_ref, w2_ref, b2_ref, o_ref):
    """conv3x3 (im2col matmul) + ReLU + 1x1 conv + ReLU, fused (two chained matmuls)."""
    z = jnp.maximum(
        jnp.dot(x_ref[...], w1_ref[...], preferred_element_type=jnp.float32)
        + b1_ref[...], 0.0)
    o_ref[...] = jnp.maximum(
        jnp.dot(z, w2_ref[...], preferred_element_type=jnp.float32)
        + b2_ref[...], 0.0)


# ------------------------------ op wrappers ---------------------------------

def down_block(x, w, b, *, pool):
    """Haar-LL + ReLU + conv1x1 (BN folded) + ReLU (+ maxpool2x2 if pool)."""
    N, H, W, Cin = x.shape
    Cout = w.shape[-1]
    if pool:
        Ho, Wo = H // 4, W // 4
        Mq = N * Ho * Wo
        # (n, i, ky, ty, j, kx, tx, c) -> (ty, tx, ky, kx, n, i, j, c)
        xg = x.reshape(N, Ho, 2, 2, Wo, 2, 2, Cin)
        xg = jnp.transpose(xg, (3, 6, 2, 5, 0, 1, 4, 7)).reshape(4, 4, Mq, Cin)
        K = 4
    else:
        Ho, Wo = H // 2, W // 2
        Mq = N * Ho * Wo
        # (n, i, ty, j, tx, c) -> (ty, tx, n, i, j, c)
        xg = x.reshape(N, Ho, 2, Wo, 2, Cin)
        xg = jnp.transpose(xg, (2, 4, 0, 1, 3, 5)).reshape(4, 1, Mq, Cin)
        K = 1
    out = pl.pallas_call(
        _down_kernel,
        grid=(1,),
        in_specs=[_whole((4, K, Mq, Cin)), _whole((Cin, Cout)), _whole((1, Cout))],
        out_specs=_whole((Mq, Cout)),
        out_shape=jax.ShapeDtypeStruct((Mq, Cout), jnp.float32),
        compiler_params=_cparams(("arbitrary",)),
    )(xg, w, b.reshape(1, Cout))
    return out.reshape(N, Ho, Wo, Cout)


def up_block(x, bridge, wt, bt, wc, bc, wt2, bt2):
    """ConvT(k2,s2) -> cat(bridge) -> conv1x1 -> ConvT(k2,s2), fused in one kernel."""
    N, H, W, Cin = x.shape
    Cout = wt.shape[-1]
    M = N * H * W
    x2d = x.reshape(M, Cin)

    # bridge gather: (N,2H,2W,Cout) -> (M, 4*Cout), columns grouped (dy, dx, c)
    br = bridge.reshape(N, H, 2, W, 2, Cout)
    br = jnp.transpose(br, (0, 1, 3, 2, 4, 5)).reshape(M, 4 * Cout)

    # host-side composition of the (purely affine) block
    wc_u, wc_b = wc[:Cout], wc[Cout:]                         # (Cout,Cout) each
    tmp = jnp.einsum('dio,op->dip', wt, wc_u)                  # (4, Cin, Cout)
    a_full = jnp.einsum('dip,epq->deiq', tmp, wt2)             # (4, 4, Cin, Cout)
    a_all = jnp.transpose(a_full, (2, 0, 1, 3)).reshape(Cin, 16 * Cout)
    b_e = jnp.einsum('pq,eqr->epr', wc_b, wt2)                 # (4, Cout, Cout)
    bbd = jnp.einsum('dD,epr->dpDer',
                     jnp.eye(4, dtype=jnp.float32), b_e).reshape(4 * Cout, 16 * Cout)
    cvec = jnp.einsum('p,epq->eq', bt @ wc_u + bc, wt2) + bt2[None, :]   # (4, Cout)
    c_all = jnp.tile(cvec.reshape(1, 4 * Cout), (1, 4))        # (1, 16*Cout), (d,e,c)

    out = pl.pallas_call(
        _up_kernel,
        grid=(1,),
        in_specs=[_whole((M, Cin)), _whole((M, 4 * Cout)), _whole((Cin, 16 * Cout)),
                  _whole((4 * Cout, 16 * Cout)), _whole((1, 16 * Cout))],
        out_specs=_whole((M, 16 * Cout)),
        out_shape=jax.ShapeDtypeStruct((M, 16 * Cout), jnp.float32),
        compiler_params=_cparams(("arbitrary",)),
    )(x2d, br, a_all, bbd, c_all)

    # reassemble: rows (n,h,w), cols (dy,dx,ey,ex,c) -> (N, 4H, 4W, Cout)
    o = out.reshape(N, H, W, 2, 2, 2, 2, Cout)
    o = jnp.transpose(o, (0, 1, 3, 5, 2, 4, 6, 7)).reshape(N, 4 * H, 4 * W, Cout)
    return o


def conv_transpose2x2(x, w4, b):
    """Single ConvTranspose2d(k=2, s=2): one tap-batched matmul (N = 4*Cout cols)."""
    N, H, W, Cin = x.shape
    Cout = w4.shape[-1]
    M = N * H * W
    w_all = jnp.transpose(w4, (1, 0, 2)).reshape(Cin, 4 * Cout)   # cols (d, c)
    b_all = jnp.tile(b.reshape(1, Cout), (1, 4))
    out = pl.pallas_call(
        functools.partial(_mm_kernel, relu=False),
        grid=(1,),
        in_specs=[_whole((M, Cin)), _whole((Cin, 4 * Cout)), _whole((1, 4 * Cout))],
        out_specs=_whole((M, 4 * Cout)),
        out_shape=jax.ShapeDtypeStruct((M, 4 * Cout), jnp.float32),
        compiler_params=_cparams(("arbitrary",)),
    )(x.reshape(M, Cin), w_all, b_all)
    o = out.reshape(N, H, W, 2, 2, Cout)
    o = jnp.transpose(o, (0, 1, 3, 2, 4, 5)).reshape(N, 2 * H, 2 * W, Cout)
    return o


def _im2col3x3(x):
    N, H, W, C = x.shape
    xp = jnp.pad(x, ((0, 0), (1, 1), (1, 1), (0, 0)))
    taps = [xp[:, ky:ky + H, kx:kx + W, :] for ky in range(3) for kx in range(3)]
    return jnp.concatenate(taps, axis=-1).reshape(N * H * W, 9 * C)


def conv3x3_relu(x, w9, b, *, tm=256):
    """3x3 conv (pad=1) + ReLU as one tap-batched matmul (K = 9*Cin), tiled over M."""
    N, H, W, Cin = x.shape
    Cout = w9.shape[-1]
    M = N * H * W
    xg = _im2col3x3(x)
    wf = w9.reshape(9 * Cin, Cout)
    tm = tm if M % tm == 0 else M
    out = pl.pallas_call(
        functools.partial(_mm_kernel, relu=True),
        grid=(M // tm,),
        in_specs=[pl.BlockSpec((tm, 9 * Cin), lambda i: (i, 0)),
                  pl.BlockSpec((9 * Cin, Cout), lambda i: (0, 0)),
                  pl.BlockSpec((1, Cout), lambda i: (0, 0))],
        out_specs=pl.BlockSpec((tm, Cout), lambda i: (i, 0)),
        out_shape=jax.ShapeDtypeStruct((M, Cout), jnp.float32),
        compiler_params=_cparams(("parallel",)),
    )(xg, wf, b.reshape(1, Cout))
    return out.reshape(N, H, W, Cout)


def conv3x3_relu_conv1x1_relu(x, w9, b9, w1, b1, *, tm=256):
    """Fused: 3x3 conv + ReLU + 1x1 conv + ReLU, tiled over M ('parallel' grid)."""
    N, H, W, Cin = x.shape
    Cmid = w9.shape[-1]
    Ncls = w1.shape[-1]
    M = N * H * W
    xg = _im2col3x3(x)
    wf = w9.reshape(9 * Cin, Cmid)
    tm = tm if M % tm == 0 else M
    out = pl.pallas_call(
        _mm2_kernel,
        grid=(M // tm,),
        in_specs=[pl.BlockSpec((tm, 9 * Cin), lambda i: (i, 0)),
                  pl.BlockSpec((9 * Cin, Cmid), lambda i: (0, 0)),
                  pl.BlockSpec((1, Cmid), lambda i: (0, 0)),
                  pl.BlockSpec((Cmid, Ncls), lambda i: (0, 0)),
                  pl.BlockSpec((1, Ncls), lambda i: (0, 0))],
        out_specs=pl.BlockSpec((tm, Ncls), lambda i: (i, 0)),
        out_shape=jax.ShapeDtypeStruct((M, Ncls), jnp.float32),
        compiler_params=_cparams(("parallel",)),
    )(xg, wf, b9.reshape(1, Cmid), w1, b1.reshape(1, Ncls))
    return out.reshape(N, H, W, Ncls)


# ---------------------------- parameters / model ----------------------------

def _kaiming_conv(key, cin, cout, k):
    # nn.init.kaiming_normal_(mode='fan_out', nonlinearity='relu'): std = sqrt(2/(cout*k*k))
    std = (2.0 / (cout * k * k)) ** 0.5
    w = std * jax.random.normal(key, (k * k, cin, cout), jnp.float32)
    return w[0] if k == 1 else w


def _convt_init(key, cin, cout):
    # ConvTranspose2d is not re-initialized by _initialize_weights; default-scale normal.
    std = (1.0 / (cin * 4)) ** 0.5
    return std * jax.random.normal(key, (4, cin, cout), jnp.float32)


def init_params(key, *, in_channels, n_classes, depth, wf):
    chans = [2 ** (wf + i) for i in range(depth)]
    keys = iter(jax.random.split(key, 4 * depth + 8))
    params = {"down": [], "up": []}
    cin = in_channels
    for i in range(depth):
        cout = chans[i]
        params["down"].append({
            "w": _kaiming_conv(next(keys), cin, cout, 1),
            "b": jnp.zeros((cout,), jnp.float32),
        })
        cin = cout
    for i in reversed(range(depth - 1)):
        cout = chans[i]
        params["up"].append({
            "up_w": _convt_init(next(keys), cin, cout),
            "up_b": jnp.zeros((cout,), jnp.float32),
            "cb_w": _kaiming_conv(next(keys), 2 * cout, cout, 1),
            "cb_b": jnp.zeros((cout,), jnp.float32),
            "up2_w": _convt_init(next(keys), cout, cout),
            "up2_b": jnp.zeros((cout,), jnp.float32),
        })
        cin = cout
    c0 = chans[0]
    params["last_up_w"] = _convt_init(next(keys), c0, c0)
    params["last_up_b"] = jnp.zeros((c0,), jnp.float32)
    params["end1_w"] = _kaiming_conv(next(keys), c0, c0, 3)
    params["end1_b"] = jnp.zeros((c0,), jnp.float32)
    params["end2_w"] = _kaiming_conv(next(keys), c0, c0, 3)
    params["end2_b"] = jnp.zeros((c0,), jnp.float32)
    params["last_w"] = _kaiming_conv(next(keys), c0, n_classes, 1)
    params["last_b"] = jnp.zeros((n_classes,), jnp.float32)
    return params


def unet_forward(params, x_nchw):
    # PyTorch NCHW in -> NHWC internally -> NCHW out.
    x = jnp.transpose(x_nchw, (0, 2, 3, 1)).astype(jnp.float32)
    blocks = []
    n_down = len(params["down"])
    for i, p in enumerate(params["down"]):
        pool = (i != n_down - 1)
        # fold eval-BN affine into the 1x1 conv (ReLU commutes with positive scale)
        w = p["w"] * _BN_SCALE
        b = p["b"] * _BN_SCALE
        x = down_block(x, w, b, pool=pool)
        if pool:
            blocks.append(x)      # bridge == maxpooled activation (matches reference)
    for p in params["up"]:
        bridge = blocks.pop()
        x = up_block(x, bridge, p["up_w"], p["up_b"], p["cb_w"], p["cb_b"],
                     p["up2_w"], p["up2_b"])
    x = conv_transpose2x2(x, params["last_up_w"], params["last_up_b"])
    # end_module: (Conv3x3 pad1 + ReLU) x 2, batch_norm=False; then relu(last(x)).
    x = conv3x3_relu(x, params["end1_w"], params["end1_b"])
    x = conv3x3_relu_conv1x1_relu(x, params["end2_w"], params["end2_b"],
                                  params["last_w"], params["last_b"])
    # self.activation (Softmax) is never applied in the reference forward.
    return jnp.transpose(x, (0, 3, 1, 2))


if __name__ == "__main__":
    key = jax.random.PRNGKey(0)
    pkey, xkey = jax.random.split(key)
    # Small config consistent with the module: depth=3, wf=3 -> channels (8, 16, 32).
    # Spatial must be divisible by 2**(2*depth-1)=32 for the wave/maxpool down path.
    params = init_params(pkey, in_channels=3, n_classes=2, depth=3, wf=3)
    x = jax.random.normal(xkey, (2, 3, 32, 32), jnp.float32)  # NCHW like PyTorch
    out = jax.jit(unet_forward)(params, x)
    jax.block_until_ready(out)
    assert out.shape == (2, 2, 32, 32), out.shape
    assert bool(jnp.all(jnp.isfinite(out)))
    print("KERNEL_OK")
</pallas_src>

<mosaic_0001>
module attributes {stable_mosaic.version = 11 : i64} {
  func.func @_down_kernel(%arg0: i32, %arg1: memref<4x4x128x3xf32, #tpu.memory_space<vmem>>, %arg2: memref<3x8xf32, #tpu.memory_space<vmem>>, %arg3: memref<1x8xf32, #tpu.memory_space<vmem>>, %arg4: memref<128x8xf32, #tpu.memory_space<vmem>>) attributes {dimension_semantics = [#tpu.dimension_semantics<arbitrary>], iteration_bounds = array<i64: 1>, scalar_prefetch = 0 : i64, scratch_operands = 0 : i64, tpu.core_type = #tpu.core_type<tc>, window_params = [{pipeline_mode = #tpu.pipeline_mode<synchronous>, transform_indices = @transform_0, window_bounds = array<i64: 4, 4, 128, 3>}, {pipeline_mode = #tpu.pipeline_mode<synchronous>, transform_indices = @transform_1, window_bounds = array<i64: 3, 8>}, {pipeline_mode = #tpu.pipeline_mode<synchronous>, transform_indices = @transform_2, window_bounds = array<i64: 1, 8>}, {pipeline_mode = #tpu.pipeline_mode<synchronous>, transform_indices = @transform_3, window_bounds = array<i64: 128, 8>}]} {
    %c0 = arith.constant 0 : index
    %c0_0 = arith.constant 0 : index
    %0 = vector.load %arg2[%c0, %c0_0] : memref<3x8xf32, #tpu.memory_space<vmem>>, vector<3x8xf32>
    %c0_1 = arith.constant 0 : index
    %c0_2 = arith.constant 0 : index
    %1 = vector.load %arg3[%c0_1, %c0_2] : memref<1x8xf32, #tpu.memory_space<vmem>>, vector<1x8xf32>
    %c0_3 = arith.constant 0 : index
    %c0_4 = arith.constant 0 : index
    %c0_5 = arith.constant 0 : index
    %c0_6 = arith.constant 0 : index
    %2 = vector.load %arg1[%c0_3, %c0_4, %c0_5, %c0_6] : memref<4x4x128x3xf32, #tpu.memory_space<vmem>>, vector<1x4x128x3xf32>
    %3 = vector.shape_cast %2 : vector<1x4x128x3xf32> to vector<4x128x3xf32>
    %c1 = arith.constant 1 : index
    %c0_7 = arith.constant 0 : index
    %c0_8 = arith.constant 0 : index
    %c0_9 = arith.constant 0 : index
    %4 = vector.load %arg1[%c1, %c0_7, %c0_8, %c0_9] : memref<4x4x128x3xf32, #tpu.memory_space<vmem>>, vector<1x4x128x3xf32>
    %5 = vector.shape_cast %4 : vector<1x4x128x3xf32> to vector<4x128x3xf32>
    %6 = arith.addf %3, %5 : vector<4x128x3xf32>
    %c2 = arith.constant 2 : index
    %c0_10 = arith.constant 0 : index
    %c0_11 = arith.constant 0 : index
    %c0_12 = arith.constant 0 : index
    %7 = vector.load %arg1[%c2, %c0_10, %c0_11, %c0_12] : memref<4x4x128x3xf32, #tpu.memory_space<vmem>>, vector<1x4x128x3xf32>
    %8 = vector.shape_cast %7 : vector<1x4x128x3xf32> to vector<4x128x3xf32>
    %9 = arith.addf %6, %8 : vector<4x128x3xf32>
    %c3 = arith.constant 3 : index
    %c0_13 = arith.constant 0 : index
    %c0_14 = arith.constant 0 : index
    %c0_15 = arith.constant 0 : index
    %10 = vector.load %arg1[%c3, %c0_13, %c0_14, %c0_15] : memref<4x4x128x3xf32, #tpu.memory_space<vmem>>, vector<1x4x128x3xf32>
    %11 = vector.shape_cast %10 : vector<1x4x128x3xf32> to vector<4x128x3xf32>
    %12 = arith.addf %9, %11 : vector<4x128x3xf32>
    %cst = arith.constant 5.000000e-01 : f32
    %13 = vector.broadcast %cst : f32 to vector<4x128x3xf32>
    %14 = arith.mulf %12, %13 : vector<4x128x3xf32>
    %cst_16 = arith.constant 0.000000e+00 : f32
    %15 = vector.broadcast %cst_16 : f32 to vector<4x128x3xf32>
    %16 = arith.maximumf %14, %15 : vector<4x128x3xf32>
    %17 = vector.extract_strided_slice %16 {offsets = [0, 0, 0], sizes = [1, 128, 3], strides = [1, 1, 1]} : vector<4x128x3xf32> to vector<1x128x3xf32>
    %18 = vector.shape_cast %17 : vector<1x128x3xf32> to vector<128x3xf32>
    %cst_17 = arith.constant dense<0.000000e+00> : vector<128x8xf32>
    %19 = tpu.matmul %18, %0, %cst_17 {dimension_numbers = #tpu.dot_dimension_numbers<[1], [0], [0], [1], [0, 0, 1, 1], [], []>} : vector<128x3xf32>, vector<3x8xf32>, vector<128x8xf32> -> vector<128x8xf32>
    %20 = vector.broadcast %1 : vector<1x8xf32> to vector<128x8xf32>
    %21 = arith.addf %19, %20 : vector<128x8xf32>
    %cst_18 = arith.constant 0.000000e+00 : f32
    %22 = vector.broadcast %cst_18 : f32 to vector<128x8xf32>
    %23 = arith.maximumf %21, %22 : vector<128x8xf32>
    %24 = vector.extract_strided_slice %16 {offsets = [1, 0, 0], sizes = [1, 128, 3], strides = [1, 1, 1]} : vector<4x128x3xf32> to vector<1x128x3xf32>
    %25 = vector.shape_cast %24 : vector<1x128x3xf32> to vector<128x3xf32>
    %cst_19 = arith.constant dense<0.000000e+00> : vector<128x8xf32>
    %26 = tpu.matmul %25, %0, %cst_19 {dimension_numbers = #tpu.dot_dimension_numbers<[1], [0], [0], [1], [0, 0, 1, 1], [], []>} : vector<128x3xf32>, vector<3x8xf32>, vector<128x8xf32> -> vector<128x8xf32>
    %27 = vector.broadcast %1 : vector<1x8xf32> to vector<128x8xf32>
    %28 = arith.addf %26, %27 : vector<128x8xf32>
    %cst_20 = arith.constant 0.000000e+00 : f32
    %29 = vector.broadcast %cst_20 : f32 to vector<128x8xf32>
    %30 = arith.maximumf %28, %29 : vector<128x8xf32>
    %31 = arith.maximumf %23, %30 : vector<128x8xf32>
    %32 = vector.extract_strided_slice %16 {offsets = [2, 0, 0], sizes = [1, 128, 3], strides = [1, 1, 1]} : vector<4x128x3xf32> to vector<1x128x3xf32>
    %33 = vector.shape_cast %32 : vector<1x128x3xf32> to vector<128x3xf32>
    %cst_21 = arith.constant dense<0.000000e+00> : vector<128x8xf32>
    %34 = tpu.matmul %33, %0, %cst_21 {dimension_numbers = #tpu.dot_dimension_numbers<[1], [0], [0], [1], [0, 0, 1, 1], [], []>} : vector<128x3xf32>, vector<3x8xf32>, vector<128x8xf32> -> vector<128x8xf32>
    %35 = vector.broadcast %1 : vector<1x8xf32> to vector<128x8xf32>
    %36 = arith.addf %34, %35 : vector<128x8xf32>
    %cst_22 = arith.constant 0.000000e+00 : f32
    %37 = vector.broadcast %cst_22 : f32 to vector<128x8xf32>
    %38 = arith.maximumf %36, %37 : vector<128x8xf32>
    %39 = arith.maximumf %31, %38 : vector<128x8xf32>
    %40 = vector.extract_strided_slice %16 {offsets = [3, 0, 0], sizes = [1, 128, 3], strides = [1, 1, 1]} : vector<4x128x3xf32> to vector<1x128x3xf32>
    %41 = vector.shape_cast %40 : vector<1x128x3xf32> to vector<128x3xf32>
    %cst_23 = arith.constant dense<0.000000e+00> : vector<128x8xf32>
    %42 = tpu.matmul %41, %0, %cst_23 {dimension_numbers = #tpu.dot_dimension_numbers<[1], [0], [0], [1], [0, 0, 1, 1], [], []>} : vector<128x3xf32>, vector<3x8xf32>, vector<128x8xf32> -> vector<128x8xf32>
    %43 = vector.broadcast %1 : vector<1x8xf32> to vector<128x8xf32>
    %44 = arith.addf %42, %43 : vector<128x8xf32>
    %cst_24 = arith.constant 0.000000e+00 : f32
    %45 = vector.broadcast %cst_24 : f32 to vector<128x8xf32>
    %46 = arith.maximumf %44, %45 : vector<128x8xf32>
    %47 = arith.maximumf %39, %46 : vector<128x8xf32>
    %c0_25 = arith.constant 0 : index
    %c0_26 = arith.constant 0 : index
    %48 = vector.load %arg4[%c0_25, %c0_26] : memref<128x8xf32, #tpu.memory_space<vmem>>, vector<128x8xf32>
    tpu.vector_store %arg4[%c0_25, %c0_26], %47 {strides = array<i32>} : memref<128x8xf32, #tpu.memory_space<vmem>>, vector<128x8xf32>,
    return
  }
  func.func @transform_0(%arg0: i32) -> (i32, i32, i32, i32) {
    %c0_i32 = arith.constant 0 : i32
    %c0_i32_0 = arith.constant 0 : i32
    %c0_i32_1 = arith.constant 0 : i32
    %c0_i32_2 = arith.constant 0 : i32
    %c0_i32_3 = arith.constant 0 : i32
    return %c0_i32, %c0_i32_0, %c0_i32_1, %c0_i32_2 : i32, i32, i32, i32
  }
  func.func @transform_1(%arg0: i32) -> (i32, i32) {
    %c0_i32 = arith.constant 0 : i32
    %c0_i32_0 = arith.constant 0 : i32
    %c0_i32_1 = arith.constant 0 : i32
    return %c0_i32, %c0_i32_0 : i32, i32
  }
  func.func @transform_2(%arg0: i32) -> (i32, i32) {
    %c0_i32 = arith.constant 0 : i32
    %c0_i32_0 = arith.constant 0 : i32
    %c0_i32_1 = arith.constant 0 : i32
    return %c0_i32, %c0_i32_0 : i32, i32
  }
  func.func @transform_3(%arg0: i32) -> (i32, i32) {
    %c0_i32 = arith.constant 0 : i32
    %c0_i32_0 = arith.constant 0 : i32
    %c0_i32_1 = arith.constant 0 : i32
    return %c0_i32, %c0_i32_0 : i32, i32
  }
}

module attributes {stable_mosaic.version = 11 : i64} {
  func.func @_down_kernel(%arg0: i32, %arg1: memref<4x4x8x8xf32, #tpu.memory_space<vmem>>, %arg2: memref<8x16xf32, #tpu.memory_space<vmem>>, %arg3: memref<1x16xf32, #tpu.memory_space<vmem>>, %arg4: memref<8x16xf32, #tpu.memory_space<vmem>>) attributes {dimension_semantics = [#tpu.dimension_semantics<arbitrary>], iteration_bounds = array<i64: 1>, scalar_prefetch = 0 : i64, scratch_operands = 0 : i64, tpu.core_type = #tpu.core_type<tc>, window_params = [{pipeline_mode = #tpu.pipeline_mode<synchronous>, transform_indices = @transform_0, window_bounds = array<i64: 4, 4, 8, 8>}, {pipeline_mode = #tpu.pipeline_mode<synchronous>, transform_indices = @transform_1, window_bounds = array<i64: 8, 16>}, {pipeline_mode = #tpu.pipeline_mode<synchronous>, transform_indices = @transform_2, window_bounds = array<i64: 1, 16>}, {pipeline_mode = #tpu.pipeline_mode<synchronous>, transform_indices = @transform_3, window_bounds = array<i64: 8, 16>}]} {
    %c0 = arith.constant 0 : index
    %c0_0 = arith.constant 0 : index
    %0 = vector.load %arg2[%c0, %c0_0] : memref<8x16xf32, #tpu.memory_space<vmem>>, vector<8x16xf32>
    %c0_1 = arith.constant 0 : index
    %c0_2 = arith.constant 0 : index
    %1 = vector.load %arg3[%c0_1, %c0_2] : memref<1x16xf32, #tpu.memory_space<vmem>>, vector<1x16xf32>
    %c0_3 = arith.constant 0 : index
    %c0_4 = arith.constant 0 : index
    %c0_5 = arith.constant 0 : index
    %c0_6 = arith.constant 0 : index
    %2 = vector.load %arg1[%c0_3, %c0_4, %c0_5, %c0_6] : memref<4x4x8x8xf32, #tpu.memory_space<vmem>>, vector<1x4x8x8xf32>
    %3 = vector.shape_cast %2 : vector<1x4x8x8xf32> to vector<4x8x8xf32>
    %c1 = arith.constant 1 : index
    %c0_7 = arith.constant 0 : index
    %c0_8 = arith.constant 0 : index
    %c0_9 = arith.constant 0 : index
    %4 = vector.load %arg1[%c1, %c0_7, %c0_8, %c0_9] : memref<4x4x8x8xf32, #tpu.memory_space<vmem>>, vector<1x4x8x8xf32>
    %5 = vector.shape_cast %4 : vector<1x4x8x8xf32> to vector<4x8x8xf32>
    %6 = arith.addf %3, %5 : vector<4x8x8xf32>
    %c2 = arith.constant 2 : index
    %c0_10 = arith.constant 0 : index
    %c0_11 = arith.constant 0 : index
    %c0_12 = arith.constant 0 : index
    %7 = vector.load %arg1[%c2, %c0_10, %c0_11, %c0_12] : memref<4x4x8x8xf32, #tpu.memory_space<vmem>>, vector<1x4x8x8xf32>
    %8 = vector.shape_cast %7 : vector<1x4x8x8xf32> to vector<4x8x8xf32>
    %9 = arith.addf %6, %8 : vector<4x8x8xf32>
    %c3 = arith.constant 3 : index
    %c0_13 = arith.constant 0 : index
    %c0_14 = arith.constant 0 : index
    %c0_15 = arith.constant 0 : index
    %10 = vector.load %arg1[%c3, %c0_13, %c0_14, %c0_15] : memref<4x4x8x8xf32, #tpu.memory_space<vmem>>, vector<1x4x8x8xf32>
    %11 = vector.shape_cast %10 : vector<1x4x8x8xf32> to vector<4x8x8xf32>
    %12 = arith.addf %9, %11 : vector<4x8x8xf32>
    %cst = arith.constant 5.000000e-01 : f32
    %13 = vector.broadcast %cst : f32 to vector<4x8x8xf32>
    %14 = arith.mulf %12, %13 : vector<4x8x8xf32>
    %cst_16 = arith.constant 0.000000e+00 : f32
    %15 = vector.broadcast %cst_16 : f32 to vector<4x8x8xf32>
    %16 = arith.maximumf %14, %15 : vector<4x8x8xf32>
    %17 = vector.extract_strided_slice %16 {offsets = [0, 0, 0], sizes = [1, 8, 8], strides = [1, 1, 1]} : vector<4x8x8xf32> to vector<1x8x8xf32>
    %18 = vector.shape_cast %17 : vector<1x8x8xf32> to vector<8x8xf32>
    %cst_17 = arith.constant dense<0.000000e+00> : vector<8x16xf32>
    %19 = tpu.matmul %18, %0, %cst_17 {dimension_numbers = #tpu.dot_dimension_numbers<[1], [0], [0], [1], [0, 0, 1, 1], [], []>} : vector<8x8xf32>, vector<8x16xf32>, vector<8x16xf32> -> vector<8x16xf32>
    %20 = vector.broadcast %1 : vector<1x16xf32> to vector<8x16xf32>
    %21 = arith.addf %19, %20 : vector<8x16xf32>
    %cst_18 = arith.constant 0.000000e+00 : f32
    %22 = vector.broadcast %cst_18 : f32 to vector<8x16xf32>
    %23 = arith.maximumf %21, %22 : vector<8x16xf32>
    %24 = vector.extract_strided_slice %16 {offsets = [1, 0, 0], sizes = [1, 8, 8], strides = [1, 1, 1]} : vector<4x8x8xf32> to vector<1x8x8xf32>
    %25 = vector.shape_cast %24 : vector<1x8x8xf32> to vector<8x8xf32>
    %cst_19 = arith.constant dense<0.000000e+00> : vector<8x16xf32>
    %26 = tpu.matmul %25, %0, %cst_19 {dimension_numbers = #tpu.dot_dimension_numbers<[1], [0], [0], [1], [0, 0, 1, 1], [], []>} : vector<8x8xf32>, vector<8x16xf32>, vector<8x16xf32> -> vector<8x16xf32>
    %27 = vector.broadcast %1 : vector<1x16xf32> to vector<8x16xf32>
    %28 = arith.addf %26, %27 : vector<8x16xf32>
    %cst_20 = arith.constant 0.000000e+00 : f32
    %29 = vector.broadcast %cst_20 : f32 to vector<8x16xf32>
    %30 = arith.maximumf %28, %29 : vector<8x16xf32>
    %31 = arith.maximumf %23, %30 : vector<8x16xf32>
    %32 = vector.extract_strided_slice %16 {offsets = [2, 0, 0], sizes = [1, 8, 8], strides = [1, 1, 1]} : vector<4x8x8xf32> to vector<1x8x8xf32>
    %33 = vector.shape_cast %32 : vector<1x8x8xf32> to vector<8x8xf32>
    %cst_21 = arith.constant dense<0.000000e+00> : vector<8x16xf32>
    %34 = tpu.matmul %33, %0, %cst_21 {dimension_numbers = #tpu.dot_dimension_numbers<[1], [0], [0], [1], [0, 0, 1, 1], [], []>} : vector<8x8xf32>, vector<8x16xf32>, vector<8x16xf32> -> vector<8x16xf32>
    %35 = vector.broadcast %1 : vector<1x16xf32> to vector<8x16xf32>
    %36 = arith.addf %34, %35 : vector<8x16xf32>
    %cst_22 = arith.constant 0.000000e+00 : f32
    %37 = vector.broadcast %cst_22 : f32 to vector<8x16xf32>
    %38 = arith.maximumf %36, %37 : vector<8x16xf32>
    %39 = arith.maximumf %31, %38 : vector<8x16xf32>
    %40 = vector.extract_strided_slice %16 {offsets = [3, 0, 0], sizes = [1, 8, 8], strides = [1, 1, 1]} : vector<4x8x8xf32> to vector<1x8x8xf32>
    %41 = vector.shape_cast %40 : vector<1x8x8xf32> to vector<8x8xf32>
    %cst_23 = arith.constant dense<0.000000e+00> : vector<8x16xf32>
    %42 = tpu.matmul %41, %0, %cst_23 {dimension_numbers = #tpu.dot_dimension_numbers<[1], [0], [0], [1], [0, 0, 1, 1], [], []>} : vector<8x8xf32>, vector<8x16xf32>, vector<8x16xf32> -> vector<8x16xf32>
    %43 = vector.broadcast %1 : vector<1x16xf32> to vector<8x16xf32>
    %44 = arith.addf %42, %43 : vector<8x16xf32>
    %cst_24 = arith.constant 0.000000e+00 : f32
    %45 = vector.broadcast %cst_24 : f32 to vector<8x16xf32>
    %46 = arith.maximumf %44, %45 : vector<8x16xf32>
    %47 = arith.maximumf %39, %46 : vector<8x16xf32>
    %c0_25 = arith.constant 0 : index
    %c0_26 = arith.constant 0 : index
    %48 = vector.load %arg4[%c0_25, %c0_26] : memref<8x16xf32, #tpu.memory_space<vmem>>, vector<8x16xf32>
    tpu.vector_store %arg4[%c0_25, %c0_26], %47 {strides = array<i32>} : memref<8x16xf32, #tpu.memory_space<vmem>>, vector<8x16xf32>,
    return
  }
  func.func @transform_0(%arg0: i32) -> (i32, i32, i32, i32) {
    %c0_i32 = arith.constant 0 : i32
    %c0_i32_0 = arith.constant 0 : i32
    %c0_i32_1 = arith.constant 0 : i32
    %c0_i32_2 = arith.constant 0 : i32
    %c0_i32_3 = arith.constant 0 : i32
    return %c0_i32, %c0_i32_0, %c0_i32_1, %c0_i32_2 : i32, i32, i32, i32
  }
  func.func @transform_1(%arg0: i32) -> (i32, i32) {
    %c0_i32 = arith.constant 0 : i32
    %c0_i32_0 = arith.constant 0 : i32
    %c0_i32_1 = arith.constant 0 : i32
    return %c0_i32, %c0_i32_0 : i32, i32
  }
  func.func @transform_2(%arg0: i32) -> (i32, i32) {
    %c0_i32 = arith.constant 0 : i32
    %c0_i32_0 = arith.constant 0 : i32
    %c0_i32_1 = arith.constant 0 : i32
    return %c0_i32, %c0_i32_0 : i32, i32
  }
  func.func @transform_3(%arg0: i32) -> (i32, i32) {
    %c0_i32 = arith.constant 0 : i32
    %c0_i32_0 = arith.constant 0 : i32
    %c0_i32_1 = arith.constant 0 : i32
    return %c0_i32, %c0_i32_0 : i32, i32
  }
}

module attributes {stable_mosaic.version = 11 : i64} {
  func.func @_down_kernel(%arg0: i32, %arg1: memref<4x1x2x16xf32, #tpu.memory_space<vmem>>, %arg2: memref<16x32xf32, #tpu.memory_space<vmem>>, %arg3: memref<1x32xf32, #tpu.memory_space<vmem>>, %arg4: memref<2x32xf32, #tpu.memory_space<vmem>>) attributes {dimension_semantics = [#tpu.dimension_semantics<arbitrary>], iteration_bounds = array<i64: 1>, scalar_prefetch = 0 : i64, scratch_operands = 0 : i64, tpu.core_type = #tpu.core_type<tc>, window_params = [{pipeline_mode = #tpu.pipeline_mode<synchronous>, transform_indices = @transform_0, window_bounds = array<i64: 4, 1, 2, 16>}, {pipeline_mode = #tpu.pipeline_mode<synchronous>, transform_indices = @transform_1, window_bounds = array<i64: 16, 32>}, {pipeline_mode = #tpu.pipeline_mode<synchronous>, transform_indices = @transform_2, window_bounds = array<i64: 1, 32>}, {pipeline_mode = #tpu.pipeline_mode<synchronous>, transform_indices = @transform_3, window_bounds = array<i64: 2, 32>}]} {
    %c0 = arith.constant 0 : index
    %c0_0 = arith.constant 0 : index
    %0 = vector.load %arg2[%c0, %c0_0] : memref<16x32xf32, #tpu.memory_space<vmem>>, vector<16x32xf32>
    %c0_1 = arith.constant 0 : index
    %c0_2 = arith.constant 0 : index
    %1 = vector.load %arg3[%c0_1, %c0_2] : memref<1x32xf32, #tpu.memory_space<vmem>>, vector<1x32xf32>
    %c0_3 = arith.constant 0 : index
    %c0_4 = arith.constant 0 : index
    %c0_5 = arith.constant 0 : index
    %c0_6 = arith.constant 0 : index
    %2 = vector.load %arg1[%c0_3, %c0_4, %c0_5, %c0_6] : memref<4x1x2x16xf32, #tpu.memory_space<vmem>>, vector<1x1x2x16xf32>
    %3 = vector.shape_cast %2 : vector<1x1x2x16xf32> to vector<1x2x16xf32>
    %c1 = arith.constant 1 : index
    %c0_7 = arith.constant 0 : index
    %c0_8 = arith.constant 0 : index
    %c0_9 = arith.constant 0 : index
    %4 = vector.load %arg1[%c1, %c0_7, %c0_8, %c0_9] : memref<4x1x2x16xf32, #tpu.memory_space<vmem>>, vector<1x1x2x16xf32>
    %5 = vector.shape_cast %4 : vector<1x1x2x16xf32> to vector<1x2x16xf32>
    %6 = arith.addf %3, %5 : vector<1x2x16xf32>
    %c2 = arith.constant 2 : index
    %c0_10 = arith.constant 0 : index
    %c0_11 = arith.constant 0 : index
    %c0_12 = arith.constant 0 : index
    %7 = vector.load %arg1[%c2, %c0_10, %c0_11, %c0_12] : memref<4x1x2x16xf32, #tpu.memory_space<vmem>>, vector<1x1x2x16xf32>
    %8 = vector.shape_cast %7 : vector<1x1x2x16xf32> to vector<1x2x16xf32>
    %9 = arith.addf %6, %8 : vector<1x2x16xf32>
    %c3 = arith.constant 3 : index
    %c0_13 = arith.constant 0 : index
    %c0_14 = arith.constant 0 : index
    %c0_15 = arith.constant 0 : index
    %10 = vector.load %arg1[%c3, %c0_13, %c0_14, %c0_15] : memref<4x1x2x16xf32, #tpu.memory_space<vmem>>, vector<1x1x2x16xf32>
    %11 = vector.shape_cast %10 : vector<1x1x2x16xf32> to vector<1x2x16xf32>
    %12 = arith.addf %9, %11 : vector<1x2x16xf32>
    %cst = arith.constant 5.000000e-01 : f32
    %13 = vector.broadcast %cst : f32 to vector<1x2x16xf32>
    %14 = arith.mulf %12, %13 : vector<1x2x16xf32>
    %cst_16 = arith.constant 0.000000e+00 : f32
    %15 = vector.broadcast %cst_16 : f32 to vector<1x2x16xf32>
    %16 = arith.maximumf %14, %15 : vector<1x2x16xf32>
    %17 = vector.shape_cast %16 : vector<1x2x16xf32> to vector<2x16xf32>
    %cst_17 = arith.constant dense<0.000000e+00> : vector<2x32xf32>
    %18 = tpu.matmul %17, %0, %cst_17 {dimension_numbers = #tpu.dot_dimension_numbers<[1], [0], [0], [1], [0, 0, 1, 1], [], []>} : vector<2x16xf32>, vector<16x32xf32>, vector<2x32xf32> -> vector<2x32xf32>
    %19 = vector.broadcast %1 : vector<1x32xf32> to vector<2x32xf32>
    %20 = arith.addf %18, %19 : vector<2x32xf32>
    %cst_18 = arith.constant 0.000000e+00 : f32
    %21 = vector.broadcast %cst_18 : f32 to vector<2x32xf32>
    %22 = arith.maximumf %20, %21 : vector<2x32xf32>
    %c0_19 = arith.constant 0 : index
    %c0_20 = arith.constant 0 : index
    %23 = vector.load %arg4[%c0_19, %c0_20] : memref<2x32xf32, #tpu.memory_space<vmem>>, vector<2x32xf32>
    tpu.vector_store %arg4[%c0_19, %c0_20], %22 {strides = array<i32>} : memref<2x32xf32, #tpu.memory_space<vmem>>, vector<2x32xf32>,
    return
  }
  func.func @transform_0(%arg0: i32) -> (i32, i32, i32, i32) {
    %c0_i32 = arith.constant 0 : i32
    %c0_i32_0 = arith.constant 0 : i32
    %c0_i32_1 = arith.constant 0 : i32
    %c0_i32_2 = arith.constant 0 : i32
    %c0_i32_3 = arith.constant 0 : i32
    return %c0_i32, %c0_i32_0, %c0_i32_1, %c0_i32_2 : i32, i32, i32, i32
  }
  func.func @transform_1(%arg0: i32) -> (i32, i32) {
    %c0_i32 = arith.constant 0 : i32
    %c0_i32_0 = arith.constant 0 : i32
    %c0_i32_1 = arith.constant 0 : i32
    return %c0_i32, %c0_i32_0 : i32, i32
  }
  func.func @transform_2(%arg0: i32) -> (i32, i32) {
    %c0_i32 = arith.constant 0 : i32
    %c0_i32_0 = arith.constant 0 : i32
    %c0_i32_1 = arith.constant 0 : i32
    return %c0_i32, %c0_i32_0 : i32, i32
  }
  func.func @transform_3(%arg0: i32) -> (i32, i32) {
    %c0_i32 = arith.constant 0 : i32
    %c0_i32_0 = arith.constant 0 : i32
    %c0_i32_1 = arith.constant 0 : i32
    return %c0_i32, %c0_i32_0 : i32, i32
  }
}

module attributes {stable_mosaic.version = 11 : i64} {
  func.func @_up_kernel(%arg0: i32, %arg1: memref<2x32xf32, #tpu.memory_space<vmem>>, %arg2: memref<2x64xf32, #tpu.memory_space<vmem>>, %arg3: memref<32x256xf32, #tpu.memory_space<vmem>>, %arg4: memref<64x256xf32, #tpu.memory_space<vmem>>, %arg5: memref<1x256xf32, #tpu.memory_space<vmem>>, %arg6: memref<2x256xf32, #tpu.memory_space<vmem>>) attributes {dimension_semantics = [#tpu.dimension_semantics<arbitrary>], iteration_bounds = array<i64: 1>, scalar_prefetch = 0 : i64, scratch_operands = 0 : i64, tpu.core_type = #tpu.core_type<tc>, window_params = [{pipeline_mode = #tpu.pipeline_mode<synchronous>, transform_indices = @transform_0, window_bounds = array<i64: 2, 32>}, {pipeline_mode = #tpu.pipeline_mode<synchronous>, transform_indices = @transform_1, window_bounds = array<i64: 2, 64>}, {pipeline_mode = #tpu.pipeline_mode<synchronous>, transform_indices = @transform_2, window_bounds = array<i64: 32, 256>}, {pipeline_mode = #tpu.pipeline_mode<synchronous>, transform_indices = @transform_3, window_bounds = array<i64: 64, 256>}, {pipeline_mode = #tpu.pipeline_mode<synchronous>, transform_indices = @transform_4, window_bounds = array<i64: 1, 256>}, {pipeline_mode = #tpu.pipeline_mode<synchronous>, transform_indices = @transform_5, window_bounds = array<i64: 2, 256>}]} {
    %c0 = arith.constant 0 : index
    %c0_0 = arith.constant 0 : index
    %0 = vector.load %arg1[%c0, %c0_0] : memref<2x32xf32, #tpu.memory_space<vmem>>, vector<2x32xf32>
    %c0_1 = arith.constant 0 : index
    %c0_2 = arith.constant 0 : index
    %1 = vector.load %arg3[%c0_1, %c0_2] : memref<32x256xf32, #tpu.memory_space<vmem>>, vector<32x256xf32>
    %cst = arith.constant dense<0.000000e+00> : vector<2x256xf32>
    %2 = tpu.matmul %0, %1, %cst {dimension_numbers = #tpu.dot_dimension_numbers<[1], [0], [0], [1], [0, 0, 1, 1], [], []>} : vector<2x32xf32>, vector<32x256xf32>, vector<2x256xf32> -> vector<2x256xf32>
    %c0_3 = arith.constant 0 : index
    %c0_4 = arith.constant 0 : index
    %3 = vector.load %arg2[%c0_3, %c0_4] : memref<2x64xf32, #tpu.memory_space<vmem>>, vector<2x64xf32>
    %c0_5 = arith.constant 0 : index
    %c0_6 = arith.constant 0 : index
    %4 = vector.load %arg4[%c0_5, %c0_6] : memref<64x256xf32, #tpu.memory_space<vmem>>, vector<64x256xf32>
    %cst_7 = arith.constant dense<0.000000e+00> : vector<2x256xf32>
    %5 = tpu.matmul %3, %4, %cst_7 {dimension_numbers = #tpu.dot_dimension_numbers<[1], [0], [0], [1], [0, 0, 1, 1], [], []>} : vector<2x64xf32>, vector<64x256xf32>, vector<2x256xf32> -> vector<2x256xf32>
    %6 = arith.addf %2, %5 : vector<2x256xf32>
    %c0_8 = arith.constant 0 : index
    %c0_9 = arith.constant 0 : index
    %7 = vector.load %arg5[%c0_8, %c0_9] : memref<1x256xf32, #tpu.memory_space<vmem>>, vector<1x256xf32>
    %8 = vector.broadcast %7 : vector<1x256xf32> to vector<2x256xf32>
    %9 = arith.addf %6, %8 : vector<2x256xf32>
    %c0_10 = arith.constant 0 : index
    %c0_11 = arith.constant 0 : index
    %10 = vector.load %arg6[%c0_10, %c0_11] : memref<2x256xf32, #tpu.memory_space<vmem>>, vector<2x256xf32>
    tpu.vector_store %arg6[%c0_10, %c0_11], %9 {strides = array<i32>} : memref<2x256xf32, #tpu.memory_space<vmem>>, vector<2x256xf32>,
    return
  }
  func.func @transform_0(%arg0: i32) -> (i32, i32) {
    %c0_i32 = arith.constant 0 : i32
    %c0_i32_0 = arith.constant 0 : i32
    %c0_i32_1 = arith.constant 0 : i32
    return %c0_i32, %c0_i32_0 : i32, i32
  }
  func.func @transform_1(%arg0: i32) -> (i32, i32) {
    %c0_i32 = arith.constant 0 : i32
    %c0_i32_0 = arith.constant 0 : i32
    %c0_i32_1 = arith.constant 0 : i32
    return %c0_i32, %c0_i32_0 : i32, i32
  }
  func.func @transform_2(%arg0: i32) -> (i32, i32) {
    %c0_i32 = arith.constant 0 : i32
    %c0_i32_0 = arith.constant 0 : i32
    %c0_i32_1 = arith.constant 0 : i32
    return %c0_i32, %c0_i32_0 : i32, i32
  }
  func.func @transform_3(%arg0: i32) -> (i32, i32) {
    %c0_i32 = arith.constant 0 : i32
    %c0_i32_0 = arith.constant 0 : i32
    %c0_i32_1 = arith.constant 0 : i32
    return %c0_i32, %c0_i32_0 : i32, i32
  }
  func.func @transform_4(%arg0: i32) -> (i32, i32) {
    %c0_i32 = arith.constant 0 : i32
    %c0_i32_0 = arith.constant 0 : i32
    %c0_i32_1 = arith.constant 0 : i32
    return %c0_i32, %c0_i32_0 : i32, i32
  }
  func.func @transform_5(%arg0: i32) -> (i32, i32) {
    %c0_i32 = arith.constant 0 : i32
    %c0_i32_0 = arith.constant 0 : i32
    %c0_i32_1 = arith.constant 0 : i32
    return %c0_i32, %c0_i32_0 : i32, i32
  }
}

module attributes {stable_mosaic.version = 11 : i64} {
  func.func @_up_kernel(%arg0: i32, %arg1: memref<32x16xf32, #tpu.memory_space<vmem>>, %arg2: memref<32x32xf32, #tpu.memory_space<vmem>>, %arg3: memref<16x128xf32, #tpu.memory_space<vmem>>, %arg4: memref<32x128xf32, #tpu.memory_space<vmem>>, %arg5: memref<1x128xf32, #tpu.memory_space<vmem>>, %arg6: memref<32x128xf32, #tpu.memory_space<vmem>>) attributes {dimension_semantics = [#tpu.dimension_semantics<arbitrary>], iteration_bounds = array<i64: 1>, scalar_prefetch = 0 : i64, scratch_operands = 0 : i64, tpu.core_type = #tpu.core_type<tc>, window_params = [{pipeline_mode = #tpu.pipeline_mode<synchronous>, transform_indices = @transform_0, window_bounds = array<i64: 32, 16>}, {pipeline_mode = #tpu.pipeline_mode<synchronous>, transform_indices = @transform_1, window_bounds = array<i64: 32, 32>}, {pipeline_mode = #tpu.pipeline_mode<synchronous>, transform_indices = @transform_2, window_bounds = array<i64: 16, 128>}, {pipeline_mode = #tpu.pipeline_mode<synchronous>, transform_indices = @transform_3, window_bounds = array<i64: 32, 128>}, {pipeline_mode = #tpu.pipeline_mode<synchronous>, transform_indices = @transform_4, window_bounds = array<i64: 1, 128>}, {pipeline_mode = #tpu.pipeline_mode<synchronous>, transform_indices = @transform_5, window_bounds = array<i64: 32, 128>}]} {
    %c0 = arith.constant 0 : index
    %c0_0 = arith.constant 0 : index
    %0 = vector.load %arg1[%c0, %c0_0] : memref<32x16xf32, #tpu.memory_space<vmem>>, vector<32x16xf32>
    %c0_1 = arith.constant 0 : index
    %c0_2 = arith.constant 0 : index
    %1 = vector.load %arg3[%c0_1, %c0_2] : memref<16x128xf32, #tpu.memory_space<vmem>>, vector<16x128xf32>
    %cst = arith.constant dense<0.000000e+00> : vector<32x128xf32>
    %2 = tpu.matmul %0, %1, %cst {dimension_numbers = #tpu.dot_dimension_numbers<[1], [0], [0], [1], [0, 0, 1, 1], [], []>} : vector<32x16xf32>, vector<16x128xf32>, vector<32x128xf32> -> vector<32x128xf32>
    %c0_3 = arith.constant 0 : index
    %c0_4 = arith.constant 0 : index
    %3 = vector.load %arg2[%c0_3, %c0_4] : memref<32x32xf32, #tpu.memory_space<vmem>>, vector<32x32xf32>
    %c0_5 = arith.constant 0 : index
    %c0_6 = arith.constant 0 : index
    %4 = vector.load %arg4[%c0_5, %c0_6] : memref<32x128xf32, #tpu.memory_space<vmem>>, vector<32x128xf32>
    %cst_7 = arith.constant dense<0.000000e+00> : vector<32x128xf32>
    %5 = tpu.matmul %3, %4, %cst_7 {dimension_numbers = #tpu.dot_dimension_numbers<[1], [0], [0], [1], [0, 0, 1, 1], [], []>} : vector<32x32xf32>, vector<32x128xf32>, vector<32x128xf32> -> vector<32x128xf32>
    %6 = arith.addf %2, %5 : vector<32x128xf32>
    %c0_8 = arith.constant 0 : index
    %c0_9 = arith.constant 0 : index
    %7 = vector.load %arg5[%c0_8, %c0_9] : memref<1x128xf32, #tpu.memory_space<vmem>>, vector<1x128xf32>
    %8 = vector.broadcast %7 : vector<1x128xf32> to vector<32x128xf32>
    %9 = arith.addf %6, %8 : vector<32x128xf32>
    %c0_10 = arith.constant 0 : index
    %c0_11 = arith.constant 0 : index
    %10 = vector.load %arg6[%c0_10, %c0_11] : memref<32x128xf32, #tpu.memory_space<vmem>>, vector<32x128xf32>
    tpu.vector_store %arg6[%c0_10, %c0_11], %9 {strides = array<i32>} : memref<32x128xf32, #tpu.memory_space<vmem>>, vector<32x128xf32>,
    return
  }
  func.func @transform_0(%arg0: i32) -> (i32, i32) {
    %c0_i32 = arith.constant 0 : i32
    %c0_i32_0 = arith.constant 0 : i32
    %c0_i32_1 = arith.constant 0 : i32
    return %c0_i32, %c0_i32_0 : i32, i32
  }
  func.func @transform_1(%arg0: i32) -> (i32, i32) {
    %c0_i32 = arith.constant 0 : i32
    %c0_i32_0 = arith.constant 0 : i32
    %c0_i32_1 = arith.constant 0 : i32
    return %c0_i32, %c0_i32_0 : i32, i32
  }
  func.func @transform_2(%arg0: i32) -> (i32, i32) {
    %c0_i32 = arith.constant 0 : i32
    %c0_i32_0 = arith.constant 0 : i32
    %c0_i32_1 = arith.constant 0 : i32
    return %c0_i32, %c0_i32_0 : i32, i32
  }
  func.func @transform_3(%arg0: i32) -> (i32, i32) {
    %c0_i32 = arith.constant 0 : i32
    %c0_i32_0 = arith.constant 0 : i32
    %c0_i32_1 = arith.constant 0 : i32
    return %c0_i32, %c0_i32_0 : i32, i32
  }
  func.func @transform_4(%arg0: i32) -> (i32, i32) {
    %c0_i32 = arith.constant 0 : i32
    %c0_i32_0 = arith.constant 0 : i32
    %c0_i32_1 = arith.constant 0 : i32
    return %c0_i32, %c0_i32_0 : i32, i32
  }
  func.func @transform_5(%arg0: i32) -> (i32, i32) {
    %c0_i32 = arith.constant 0 : i32
    %c0_i32_0 = arith.constant 0 : i32
    %c0_i32_1 = arith.constant 0 : i32
    return %c0_i32, %c0_i32_0 : i32, i32
  }
}

module attributes {stable_mosaic.version = 11 : i64} {
  func.func @_mm_kernel(%arg0: i32, %arg1: memref<512x8xf32, #tpu.memory_space<vmem>>, %arg2: memref<8x32xf32, #tpu.memory_space<vmem>>, %arg3: memref<1x32xf32, #tpu.memory_space<vmem>>, %arg4: memref<512x32xf32, #tpu.memory_space<vmem>>) attributes {dimension_semantics = [#tpu.dimension_semantics<arbitrary>], iteration_bounds = array<i64: 1>, scalar_prefetch = 0 : i64, scratch_operands = 0 : i64, tpu.core_type = #tpu.core_type<tc>, window_params = [{pipeline_mode = #tpu.pipeline_mode<synchronous>, transform_indices = @transform_0, window_bounds = array<i64: 512, 8>}, {pipeline_mode = #tpu.pipeline_mode<synchronous>, transform_indices = @transform_1, window_bounds = array<i64: 8, 32>}, {pipeline_mode = #tpu.pipeline_mode<synchronous>, transform_indices = @transform_2, window_bounds = array<i64: 1, 32>}, {pipeline_mode = #tpu.pipeline_mode<synchronous>, transform_indices = @transform_3, window_bounds = array<i64: 512, 32>}]} {
    %c0 = arith.constant 0 : index
    %c0_0 = arith.constant 0 : index
    %0 = vector.load %arg1[%c0, %c0_0] : memref<512x8xf32, #tpu.memory_space<vmem>>, vector<512x8xf32>
    %c0_1 = arith.constant 0 : index
    %c0_2 = arith.constant 0 : index
    %1 = vector.load %arg2[%c0_1, %c0_2] : memref<8x32xf32, #tpu.memory_space<vmem>>, vector<8x32xf32>
    %cst = arith.constant dense<0.000000e+00> : vector<512x32xf32>
    %2 = tpu.matmul %0, %1, %cst {dimension_numbers = #tpu.dot_dimension_numbers<[1], [0], [0], [1], [0, 0, 1, 1], [], []>} : vector<512x8xf32>, vector<8x32xf32>, vector<512x32xf32> -> vector<512x32xf32>
    %c0_3 = arith.constant 0 : index
    %c0_4 = arith.constant 0 : index
    %3 = vector.load %arg3[%c0_3, %c0_4] : memref<1x32xf32, #tpu.memory_space<vmem>>, vector<1x32xf32>
    %4 = vector.broadcast %3 : vector<1x32xf32> to vector<512x32xf32>
    %5 = arith.addf %2, %4 : vector<512x32xf32>
    %c0_5 = arith.constant 0 : index
    %c0_6 = arith.constant 0 : index
    %6 = vector.load %arg4[%c0_5, %c0_6] : memref<512x32xf32, #tpu.memory_space<vmem>>, vector<512x32xf32>
    tpu.vector_store %arg4[%c0_5, %c0_6], %5 {strides = array<i32>} : memref<512x32xf32, #tpu.memory_space<vmem>>, vector<512x32xf32>,
    return
  }
  func.func @transform_0(%arg0: i32) -> (i32, i32) {
    %c0_i32 = arith.constant 0 : i32
    %c0_i32_0 = arith.constant 0 : i32
    %c0_i32_1 = arith.constant 0 : i32
    return %c0_i32, %c0_i32_0 : i32, i32
  }
  func.func @transform_1(%arg0: i32) -> (i32, i32) {
    %c0_i32 = arith.constant 0 : i32
    %c0_i32_0 = arith.constant 0 : i32
    %c0_i32_1 = arith.constant 0 : i32
    return %c0_i32, %c0_i32_0 : i32, i32
  }
  func.func @transform_2(%arg0: i32) -> (i32, i32) {
    %c0_i32 = arith.constant 0 : i32
    %c0_i32_0 = arith.constant 0 : i32
    %c0_i32_1 = arith.constant 0 : i32
    return %c0_i32, %c0_i32_0 : i32, i32
  }
  func.func @transform_3(%arg0: i32) -> (i32, i32) {
    %c0_i32 = arith.constant 0 : i32
    %c0_i32_0 = arith.constant 0 : i32
    %c0_i32_1 = arith.constant 0 : i32
    return %c0_i32, %c0_i32_0 : i32, i32
  }
}

module attributes {stable_mosaic.version = 11 : i64} {
  func.func @_mm_kernel(%arg0: i32, %arg1: memref<256x72xf32, #tpu.memory_space<vmem>>, %arg2: memref<72x8xf32, #tpu.memory_space<vmem>>, %arg3: memref<1x8xf32, #tpu.memory_space<vmem>>, %arg4: memref<256x8xf32, #tpu.memory_space<vmem>>) attributes {dimension_semantics = [#tpu.dimension_semantics<parallel>], iteration_bounds = array<i64: 8>, scalar_prefetch = 0 : i64, scratch_operands = 0 : i64, tpu.core_type = #tpu.core_type<tc>, window_params = [{transform_indices = @transform_0, window_bounds = array<i64: 256, 72>}, {pipeline_mode = #tpu.pipeline_mode<synchronous>, transform_indices = @transform_1, window_bounds = array<i64: 72, 8>}, {pipeline_mode = #tpu.pipeline_mode<synchronous>, transform_indices = @transform_2, window_bounds = array<i64: 1, 8>}, {transform_indices = @transform_3, window_bounds = array<i64: 256, 8>}]} {
    %c0 = arith.constant 0 : index
    %c0_0 = arith.constant 0 : index
    %0 = vector.load %arg1[%c0, %c0_0] : memref<256x72xf32, #tpu.memory_space<vmem>>, vector<256x72xf32>
    %c0_1 = arith.constant 0 : index
    %c0_2 = arith.constant 0 : index
    %1 = vector.load %arg2[%c0_1, %c0_2] : memref<72x8xf32, #tpu.memory_space<vmem>>, vector<72x8xf32>
    %cst = arith.constant dense<0.000000e+00> : vector<256x8xf32>
    %2 = tpu.matmul %0, %1, %cst {dimension_numbers = #tpu.dot_dimension_numbers<[1], [0], [0], [1], [0, 0, 1, 1], [], []>} : vector<256x72xf32>, vector<72x8xf32>, vector<256x8xf32> -> vector<256x8xf32>
    %c0_3 = arith.constant 0 : index
    %c0_4 = arith.constant 0 : index
    %3 = vector.load %arg3[%c0_3, %c0_4] : memref<1x8xf32, #tpu.memory_space<vmem>>, vector<1x8xf32>
    %4 = vector.broadcast %3 : vector<1x8xf32> to vector<256x8xf32>
    %5 = arith.addf %2, %4 : vector<256x8xf32>
    %cst_5 = arith.constant 0.000000e+00 : f32
    %6 = vector.broadcast %cst_5 : f32 to vector<256x8xf32>
    %7 = arith.maximumf %5, %6 : vector<256x8xf32>
    %c0_6 = arith.constant 0 : index
    %c0_7 = arith.constant 0 : index
    %8 = vector.load %arg4[%c0_6, %c0_7] : memref<256x8xf32, #tpu.memory_space<vmem>>, vector<256x8xf32>
    tpu.vector_store %arg4[%c0_6, %c0_7], %7 {strides = array<i32>} : memref<256x8xf32, #tpu.memory_space<vmem>>, vector<256x8xf32>,
    return
  }
  func.func @transform_0(%arg0: i32) -> (i32, i32) {
    %c0_i32 = arith.constant 0 : i32
    %c0_i32_0 = arith.constant 0 : i32
    return %arg0, %c0_i32 : i32, i32
  }
  func.func @transform_1(%arg0: i32) -> (i32, i32) {
    %c0_i32 = arith.constant 0 : i32
    %c0_i32_0 = arith.constant 0 : i32
    %c0_i32_1 = arith.constant 0 : i32
    return %c0_i32, %c0_i32_0 : i32, i32
  }
  func.func @transform_2(%arg0: i32) -> (i32, i32) {
    %c0_i32 = arith.constant 0 : i32
    %c0_i32_0 = arith.constant 0 : i32
    %c0_i32_1 = arith.constant 0 : i32
    return %c0_i32, %c0_i32_0 : i32, i32
  }
  func.func @transform_3(%arg0: i32) -> (i32, i32) {
    %c0_i32 = arith.constant 0 : i32
    %c0_i32_0 = arith.constant 0 : i32
    return %arg0, %c0_i32 : i32, i32
  }
}

module attributes {stable_mosaic.version = 11 : i64} {
  func.func @_mm2_kernel(%arg0: i32, %arg1: memref<256x72xf32, #tpu.memory_space<vmem>>, %arg2: memref<72x8xf32, #tpu.memory_space<vmem>>, %arg3: memref<1x8xf32, #tpu.memory_space<vmem>>, %arg4: memref<8x2xf32, #tpu.memory_space<vmem>>, %arg5: memref<1x2xf32, #tpu.memory_space<vmem>>, %arg6: memref<256x2xf32, #tpu.memory_space<vmem>>) attributes {dimension_semantics = [#tpu.dimension_semantics<parallel>], iteration_bounds = array<i64: 8>, scalar_prefetch = 0 : i64, scratch_operands = 0 : i64, tpu.core_type = #tpu.core_type<tc>, window_params = [{transform_indices = @transform_0, window_bounds = array<i64: 256, 72>}, {pipeline_mode = #tpu.pipeline_mode<synchronous>, transform_indices = @transform_1, window_bounds = array<i64: 72, 8>}, {pipeline_mode = #tpu.pipeline_mode<synchronous>, transform_indices = @transform_2, window_bounds = array<i64: 1, 8>}, {pipeline_mode = #tpu.pipeline_mode<synchronous>, transform_indices = @transform_3, window_bounds = array<i64: 8, 2>}, {pipeline_mode = #tpu.pipeline_mode<synchronous>, transform_indices = @transform_4, window_bounds = array<i64: 1, 2>}, {transform_indices = @transform_5, window_bounds = array<i64: 256, 2>}]} {
    %c0 = arith.constant 0 : index
    %c0_0 = arith.constant 0 : index
    %0 = vector.load %arg1[%c0, %c0_0] : memref<256x72xf32, #tpu.memory_space<vmem>>, vector<256x72xf32>
    %c0_1 = arith.constant 0 : index
    %c0_2 = arith.constant 0 : index
    %1 = vector.load %arg2[%c0_1, %c0_2] : memref<72x8xf32, #tpu.memory_space<vmem>>, vector<72x8xf32>
    %cst = arith.constant dense<0.000000e+00> : vector<256x8xf32>
    %2 = tpu.matmul %0, %1, %cst {dimension_numbers = #tpu.dot_dimension_numbers<[1], [0], [0], [1], [0, 0, 1, 1], [], []>} : vector<256x72xf32>, vector<72x8xf32>, vector<256x8xf32> -> vector<256x8xf32>
    %c0_3 = arith.constant 0 : index
    %c0_4 = arith.constant 0 : index
    %3 = vector.load %arg3[%c0_3, %c0_4] : memref<1x8xf32, #tpu.memory_space<vmem>>, vector<1x8xf32>
    %4 = vector.broadcast %3 : vector<1x8xf32> to vector<256x8xf32>
    %5 = arith.addf %2, %4 : vector<256x8xf32>
    %cst_5 = arith.constant 0.000000e+00 : f32
    %6 = vector.broadcast %cst_5 : f32 to vector<256x8xf32>
    %7 = arith.maximumf %5, %6 : vector<256x8xf32>
    %c0_6 = arith.constant 0 : index
    %c0_7 = arith.constant 0 : index
    %8 = vector.load %arg4[%c0_6, %c0_7] : memref<8x2xf32, #tpu.memory_space<vmem>>, vector<8x2xf32>
    %cst_8 = arith.constant dense<0.000000e+00> : vector<256x2xf32>
    %9 = tpu.matmul %7, %8, %cst_8 {dimension_numbers = #tpu.dot_dimension_numbers<[1], [0], [0], [1], [0, 0, 1, 1], [], []>} : vector<256x8xf32>, vector<8x2xf32>, vector<256x2xf32> -> vector<256x2xf32>
    %c0_9 = arith.constant 0 : index
    %c0_10 = arith.constant 0 : index
    %10 = vector.load %arg5[%c0_9, %c0_10] : memref<1x2xf32, #tpu.memory_space<vmem>>, vector<1x2xf32>
    %11 = vector.broadcast %10 : vector<1x2xf32> to vector<256x2xf32>
    %12 = arith.addf %9, %11 : vector<256x2xf32>
    %cst_11 = arith.constant 0.000000e+00 : f32
    %13 = vector.broadcast %cst_11 : f32 to vector<256x2xf32>
    %14 = arith.maximumf %12, %13 : vector<256x2xf32>
    %c0_12 = arith.constant 0 : index
    %c0_13 = arith.constant 0 : index
    %15 = vector.load %arg6[%c0_12, %c0_13] : memref<256x2xf32, #tpu.memory_space<vmem>>, vector<256x2xf32>
    tpu.vector_store %arg6[%c0_12, %c0_13], %14 {strides = array<i32>} : memref<256x2xf32, #tpu.memory_space<vmem>>, vector<256x2xf32>,
    return
  }
  func.func @transform_0(%arg0: i32) -> (i32, i32) {
    %c0_i32 = arith.constant 0 : i32
    %c0_i32_0 = arith.constant 0 : i32
    return %arg0, %c0_i32 : i32, i32
  }
  func.func @transform_1(%arg0: i32) -> (i32, i32) {
    %c0_i32 = arith.constant 0 : i32
    %c0_i32_0 = arith.constant 0 : i32
    %c0_i32_1 = arith.constant 0 : i32
    return %c0_i32, %c0_i32_0 : i32, i32
  }
  func.func @transform_2(%arg0: i32) -> (i32, i32) {
    %c0_i32 = arith.constant 0 : i32
    %c0_i32_0 = arith.constant 0 : i32
    %c0_i32_1 = arith.constant 0 : i32
    return %c0_i32, %c0_i32_0 : i32, i32
  }
  func.func @transform_3(%arg0: i32) -> (i32, i32) {
    %c0_i32 = arith.constant 0 : i32
    %c0_i32_0 = arith.constant 0 : i32
    %c0_i32_1 = arith.constant 0 : i32
    return %c0_i32, %c0_i32_0 : i32, i32
  }
  func.func @transform_4(%arg0: i32) -> (i32, i32) {
    %c0_i32 = arith.constant 0 : i32
    %c0_i32_0 = arith.constant 0 : i32
    %c0_i32_1 = arith.constant 0 : i32
    return %c0_i32, %c0_i32_0 : i32, i32
  }
  func.func @transform_5(%arg0: i32) -> (i32, i32) {
    %c0_i32 = arith.constant 0 : i32
    %c0_i32_0 = arith.constant 0 : i32
    return %arg0, %c0_i32 : i32, i32
  }
}

</mosaic_0001>

<bundles_post_ra>
// kernel: unet_forward.9
= control target key start
LH: loop header
LB: loop body
LE: loop exit
PB: predicated region body
PF: predicated region fallthrough
CT: control target
= control target key end

     0   :  { %v414_v0 = vmov 0.0   ;;  %vm415_vm0 = vmmov 0   ;;  %vm61_vm1 = vcmask 64512   ;;  %vm361_vm2 = vcmask 130048   ;;  %s501_s1 = inlined_call_operand.vmem [shape: f32[8,16], index: 1, kind: input, shape index: {}]   ;;  %s502_s0 = inlined_call_operand.vmem [shape: f32[4,4,8,8], index: 0, kind: input, shape index: {}]   ;;  %s503_s2 = inlined_call_operand.vmem [shape: f32[1,16], index: 2, kind: input, shape index: {}]   ;;  %s504_s3 = inlined_call_operand.vmem [shape: f32[8,16], index: 3, kind: output, shape index: {}]  }
   0x1   :  { %392 = vmatprep.subr.mxu0 %v414_v0  ;;  %v14_v1 = vld [vmem:[%s501_s1] sm:$0xff]  ;;  %397 = vmatprep.subr.mxu1 %v414_v0  ;;  %v17_v6 = vld [vmem:[%s502_s0 + $0x8] sm:$0xff]  ;;  %v18_v12 = vld [vmem:[%s502_s0 + $0x10] sm:$0xff] }
   0x2   :  { %v16_v2 = vld [vmem:[%s502_s0] sm:$0xff]  ;;  %393 = vmatpush3.msra.mxu0 %v14_v1  ;;  %394 = vmatprep.mubr.msk.f32.mxu0 %vm415_vm0, %v414_v0  ;;  %v368_v8 = vld [vmem:[%s502_s0 + $0x28] sm:$0xff]  ;;  %v369_v13 = vld [vmem:[%s502_s0 + $0x30] sm:$0xff] }
   0x3   :  { %v367_v3 = vld [vmem:[%s502_s0 + $0x20] sm:$0xff]  ;;  %398 = vmatpush3.msra.mxu1 %v14_v1  ;;  %399 = vmatprep.mubr.msk.f32.mxu1 %vm415_vm0, %v414_v0  ;;  %v372_v9 = vld [vmem:[%s502_s0 + $0x48] sm:$0xff]  ;;  %v26_v11 = vadd.f32 %v368_v8, %v17_v6  ;;  %v373_v14 = vld [vmem:[%s502_s0 + $0x50] sm:$0xff]  ;;  %v27_v16 = vadd.f32 %v369_v13, %v18_v12 }
   0x4   :  { %v25_v4 = vadd.f32 %v367_v3, %v16_v2  ;;  %v371_v5 = vld [vmem:[%s502_s0 + $0x40] sm:$0xff]  ;;  %402 = vmatprep.subr.mxu0 %v414_v0  ;;  %407 = vmatprep.subr.mxu1 %v414_v0  ;;  %v376_v15 = vld [vmem:[%s502_s0 + $0x68] sm:$0xff]  ;;  %v19_v17 = vld [vmem:[%s502_s0 + $0x18] sm:$0xff] }
   0x5   :  { %v375_v7 = vld [vmem:[%s502_s0 + $0x60] sm:$0xff]  ;;  %v370_v18 = vld [vmem:[%s502_s0 + $0x38] sm:$0xff]  ;;  %v35_v20 = vadd.f32 %v372_v9, %v26_v11  ;;  %v377_v21 = vld [vmem:[%s502_s0 + $0x70] sm:$0xff]  ;;  %v36_v24 = vadd.f32 %v373_v14, %v27_v16 }
   0x6   :  { %v34_v10 = vadd.f32 %v371_v5, %v25_v4  ;;  %v28_v22 = vadd.f32 %v370_v18, %v19_v17  ;;  %v374_v23 = vld [vmem:[%s502_s0 + $0x58] sm:$0xff]  ;;  %v379_v38 = vld [vmem:[%s503_s2] ss:$0 sm:$0xff] }
   0x7   :  { %v378_v25 = vld [vmem:[%s502_s0 + $0x78] sm:$0xff]  ;;  %v44_v27 = vadd.f32 %v376_v15, %v35_v20  ;;  %v45_v29 = vadd.f32 %v377_v21, %v36_v24 }
   0x8   :  { %v43_v19 = vadd.f32 %v375_v7, %v34_v10  ;;  %v37_v28 = vadd.f32 %v374_v23, %v28_v22 }
   0x9   :  { %v48_v31 = vmul.f32 0.5, %v44_v27  ;;  %v49_v33 = vmul.f32 0.5, %v45_v29 }
   0xa   :  { %v47_v26 = vmul.f32 0.5, %v43_v19  ;;  %v46_v32 = vadd.f32 %v378_v25, %v37_v28 }
   0xb   :  { %v52_v34 = vmax.f32 %v48_v31, 0.0  ;;  %v53_v36 = vmax.f32 %v49_v33, 0.0 }
   0xc   :  { %v51_v30 = vmax.f32 %v47_v26, 0.0  ;;  %v50_v35 = vmul.f32 0.5, %v46_v32 }
   0xd   :  { %400 = vmatmul.mubr.msk.f32.vlgmr.msra.gmra.mrb[0].mxu1 %vm61_vm1, %v52_v34 }
   0xe   :  { %395 = vmatmul.mubr.msk.f32.vlgmr.msra.gmra.mrb[0].mxu0 %vm61_vm1, %v51_v30  ;;  %v54_v37 = vmax.f32 %v50_v35, 0.0  ;;  %408 = vmatpush3.msra.mxu1 %v14_v1 }
   0xf   :  { %403 = vmatpush3.msra.mxu0 %v14_v1  ;;  %404 = vmatprep.mubr.msk.f32.mxu0 %vm415_vm0, %v414_v0 }
  0x10   :  { %409 = vmatprep.mubr.msk.f32.mxu1 %vm415_vm0, %v414_v0 }
  0x11   :  { %410 = vmatmul.mubr.msk.f32.vlgmr.msra.gmra.mrb[2].mxu1 %vm61_vm1, %v54_v37 }
  0x12   :  { %405 = vmatmul.mubr.msk.f32.vlgmr.msra.gmra.mrb[2].mxu0 %vm61_vm1, %v53_v36 }
  0xe0   :  { %v205_v42 = vpop.f32.mrb[0].mxu1 }
  0xe1   :  { %v131_v39 = vpop.f32.mrb[0].mxu0  ;;  %v206_v44 = vadd.f32 %v379_v38, %v205_v42  ;;  %v401_v45 = vpop.f32.mrb[1].mxu1 }
  0xe2   :  { %v132_v40 = vadd.f32 %v379_v38, %v131_v39  ;;  %v396_v41 = vpop.f32.mrb[1].mxu0 }
  0xe3   :  { %v209_v47 = vmax.f32 %v206_v44, 0.0 }
  0xe4   :  { %v135_v43 = vmax.f32 %v132_v40, 0.0  ;;  %v355_v50 = vpop.f32.mrb[2].mxu1 }
  0xe5   :  { %v280_v46 = vpop.f32.mrb[2].mxu0  ;;  %v356_v53 = vadd.f32 %v379_v38, %v355_v50  ;;  %v411_v54 = vpop.f32.mrb[3].mxu1 }
  0xe6   :  { %v281_v48 = vadd.f32 %v379_v38, %v280_v46  ;;  %v406_v49 = vpop.f32.mrb[3].mxu0  ;;  %v210_v51 = vmax.f32 %v135_v43, %v209_v47 }
  0xe7   :  { %v359_v56 = vmax.f32 %v356_v53, 0.0 }
  0xe8   :  { %v284_v52 = vmax.f32 %v281_v48, 0.0 }
  0xea   :  { %v285_v55 = vmax.f32 %v210_v51, %v284_v52 }
  0xec   :  { %v360_v57 = vmax.f32 %v285_v55, %v359_v56 }
  0xee   :  { %362 = vst.msk [vmem:[%s504_s3] sm:$0xff] %vm361_vm2, %v360_v57 }

// kernel: unet_forward.8
= control target key start
LH: loop header
LB: loop body
LE: loop exit
PB: predicated region body
PF: predicated region fallthrough
CT: control target
= control target key end

     0   :  { %vm650_vm0 = vcmask 1042432   ;;  %vm601_vm1 = vcmask 23552   ;;  %vm1490_vm2 = vcmask 64512   ;;  %s2998_s1 = inlined_call_operand.vmem [shape: f32[3,8], index: 1, kind: input, shape index: {}]   ;;  %s2999_s0 = inlined_call_operand.vmem [shape: f32[4,4,128,3], index: 0, kind: input, shape index: {}]   ;;  %s3000_s2 = inlined_call_operand.vmem [shape: f32[1,8], index: 2, kind: input, shape index: {}]   ;;  %s3001_s3 = inlined_call_operand.vmem [shape: f32[128,8], index: 3, kind: output, shape index: {}]  }
   0x1   :  { %v1967_v0 = vld [vmem:[%s2998_s1] sm:$0x7]  ;;  %v17_v11 = vld [vmem:[%s2999_s0 + $0x8] sm:$0xff]  ;;  %v18_v23 = vld [vmem:[%s2999_s0 + $0x10] sm:$0xff] }
   0x2   :  { %v16_v1 = vld [vmem:[%s2999_s0] sm:$0xff]  ;;  %1840 = vmatprep.subr.msk.mxu0 %vm650_vm0, %v1967_v0  ;;  %1866 = vmatprep.subr.msk.mxu1 %vm650_vm0, %v1967_v0  ;;  %v1512_v12 = vld [vmem:[%s2999_s0 + $0x208] sm:$0xff]  ;;  %v1513_v26 = vld [vmem:[%s2999_s0 + $0x210] sm:$0xff] }
   0x3   :  { %v1511_v2 = vld [vmem:[%s2999_s0 + $0x200] sm:$0xff]  ;;  %1841 = vmatpush3.msk.msra.mxu0 %vm650_vm0, %v1967_v0  ;;  %1867 = vmatpush3.msk.msra.mxu1 %vm650_vm0, %v1967_v0  ;;  %v1576_v13 = vld [vmem:[%s2999_s0 + $0x408] sm:$0xff]  ;;  %v146_v15 = vadd.f32 %v1512_v12, %v17_v11  ;;  %v1577_v27 = vld [vmem:[%s2999_s0 + $0x410] sm:$0xff]  ;;  %v147_v31 = vadd.f32 %v1513_v26, %v18_v23 }
   0x4   :  { %v145_v3 = vadd.f32 %v1511_v2, %v16_v1  ;;  %v1575_v4 = vld [vmem:[%s2999_s0 + $0x400] sm:$0xff]  ;;  %1892 = vmatprep.subr.msk.mxu0 %vm650_vm0, %v1967_v0  ;;  %1918 = vmatprep.subr.msk.mxu1 %vm650_vm0, %v1967_v0  ;;  %v33_v16 = vld [vmem:[%s2999_s0 + $0x88] sm:$0xff]  ;;  %v34_v32 = vld [vmem:[%s2999_s0 + $0x90] sm:$0xff] }
   0x5   :  { %v32_v5 = vld [vmem:[%s2999_s0 + $0x80] sm:$0xff]  ;;  %v1528_v17 = vld [vmem:[%s2999_s0 + $0x288] sm:$0xff]  ;;  %v275_v24 = vadd.f32 %v1576_v13, %v146_v15  ;;  %v1529_v33 = vld [vmem:[%s2999_s0 + $0x290] sm:$0xff]  ;;  %v276_v43 = vadd.f32 %v1577_v27, %v147_v31 }
   0x6   :  { %v1639_v6 = vld [vmem:[%s2999_s0 + $0x600] sm:$0xff]  ;;  %v274_v9 = vadd.f32 %v1575_v4, %v145_v3  ;;  %v1640_v20 = vld [vmem:[%s2999_s0 + $0x608] sm:$0xff]  ;;  %v162_v21 = vadd.f32 %v1528_v17, %v33_v16  ;;  %v1593_v34 = vld [vmem:[%s2999_s0 + $0x490] sm:$0xff]  ;;  %v163_v37 = vadd.f32 %v1529_v33, %v34_v32 }
   0x7   :  { %v1527_v7 = vld [vmem:[%s2999_s0 + $0x280] sm:$0xff]  ;;  %v1592_v22 = vld [vmem:[%s2999_s0 + $0x488] sm:$0xff]  ;;  %v404_v35 = vadd.f32 %v1640_v20, %v275_v24  ;;  %v1641_v36 = vld [vmem:[%s2999_s0 + $0x610] sm:$0xff] }
   0x8   :  { %v1591_v8 = vld [vmem:[%s2999_s0 + $0x480] sm:$0xff]  ;;  %v161_v10 = vadd.f32 %v1527_v7, %v32_v5  ;;  %v403_v18 = vadd.f32 %v1639_v6, %v274_v9  ;;  %v1656_v25 = vld [vmem:[%s2999_s0 + $0x688] sm:$0xff]  ;;  %v291_v30 = vadd.f32 %v1592_v22, %v162_v21  ;;  %v19_v38 = vld [vmem:[%s2999_s0 + $0x18] sm:$0xff]  ;;  %v292_v48 = vadd.f32 %v1593_v34, %v163_v37 }
   0x9   :  { %v1655_v14 = vld [vmem:[%s2999_s0 + $0x680] sm:$0xff]  ;;  %v1514_v39 = vld [vmem:[%s2999_s0 + $0x218] sm:$0xff]  ;;  %v1657_v44 = vld [vmem:[%s2999_s0 + $0x690] sm:$0xff]  ;;  %v468_v47 = vmul.f32 0.5, %v404_v35  ;;  %v405_v55 = vadd.f32 %v1641_v36, %v276_v43 }
   0xa   :  { %v290_v19 = vadd.f32 %v1591_v8, %v161_v10  ;;  %v467_v28 = vmul.f32 0.5, %v403_v18  ;;  %v420_v42 = vadd.f32 %v1656_v25, %v291_v30  ;;  %v1578_v45 = vld [vmem:[%s2999_s0 + $0x418] sm:$0xff]  ;;  %v148_v49 = vadd.f32 %v1514_v39, %v19_v38  ;;  %v20_v57 = vld [vmem:[%s2999_s0 + $0x20] sm:$0xff]  ;;  %v21_v10 = vld [vmem:[%s2999_s0 + $0x28] sm:$0xff] }
   0xb   :  { %v35_v46 = vld [vmem:[%s2999_s0 + $0x98] sm:$0xff]  ;;  %v1515_v58 = vld [vmem:[%s2999_s0 + $0x220] sm:$0xff]  ;;  %v532_v60 = vmax.f32 %v468_v47, 0.0  ;;  %v421_v61 = vadd.f32 %v1657_v44, %v292_v48  ;;  %v469_v5 = vmul.f32 0.5, %v405_v55  ;;  %v1516_v15 = vld [vmem:[%s2999_s0 + $0x228] sm:$0xff] }
   0xc   :  { %v419_v29 = vadd.f32 %v1655_v14, %v290_v19  ;;  %v531_v40 = vmax.f32 %v467_v28, 0.0  ;;  %v1642_v50 = vld [vmem:[%s2999_s0 + $0x618] sm:$0xff]  ;;  %v484_v54 = vmul.f32 0.5, %v420_v42  ;;  %v1579_v59 = vld [vmem:[%s2999_s0 + $0x420] sm:$0xff]  ;;  %v277_v62 = vadd.f32 %v1578_v45, %v148_v49  ;;  %v1580_v16 = vld [vmem:[%s2999_s0 + $0x428] sm:$0xff] }
   0xd   :  { %v1530_v51 = vld [vmem:[%s2999_s0 + $0x298] sm:$0xff]  ;;  %v149_v1 = vadd.f32 %v1515_v58, %v20_v57  ;;  %v36_v2 = vld [vmem:[%s2999_s0 + $0xa0] sm:$0xff]  ;;  %v485_v11 = vmul.f32 0.5, %v421_v61  ;;  %v533_v17 = vmax.f32 %v469_v5, 0.0  ;;  %v150_v20 = vadd.f32 %v1516_v15, %v21_v10  ;;  %v37_v21 = vld [vmem:[%s2999_s0 + $0xa8] sm:$0xff] }
   0xe   :  { %v483_v41 = vmul.f32 0.5, %v419_v29  ;;  %v1594_v52 = vld [vmem:[%s2999_s0 + $0x498] sm:$0xff]  ;;  %1842 = vmatprep.mubr.msk.f32.mxu0 %vm601_vm1, %v531_v40  ;;  %v164_v56 = vadd.f32 %v1530_v51, %v35_v46  ;;  %v1531_v3 = vld [vmem:[%s2999_s0 + $0x2a0] sm:$0xff]  ;;  %v548_v4 = vmax.f32 %v484_v54, 0.0  ;;  %v406_v12 = vadd.f32 %v1642_v50, %v277_v62  ;;  %v1532_v22 = vld [vmem:[%s2999_s0 + $0x2a8] sm:$0xff] }
   0xf   :  { %v1658_v63 = vld [vmem:[%s2999_s0 + $0x698] sm:$0xff]  ;;  %v1643_v7 = vld [vmem:[%s2999_s0 + $0x620] sm:$0xff]  ;;  %v165_v8 = vadd.f32 %v1531_v3, %v36_v2  ;;  %1843 = vmatmul.mubr.msk.f32.vlgmr.msra.gmra.mrb[0].mxu0 %vm601_vm1, %v532_v60  ;;  %v278_v13 = vadd.f32 %v1579_v59, %v149_v1  ;;  %v1596_v23 = vld [vmem:[%s2999_s0 + $0x4a8] sm:$0xff]  ;;  %v549_v24 = vmax.f32 %v485_v11, 0.0  ;;  %v166_v28 = vadd.f32 %v1532_v22, %v37_v21 }
  0x10   :  { %v547_v53 = vmax.f32 %v483_v41, 0.0  ;;  %v293_v6 = vadd.f32 %v1594_v52, %v164_v56  ;;  %v1595_v9 = vld [vmem:[%s2999_s0 + $0x4a0] sm:$0xff]  ;;  %1893 = vmatpush3.msk.msra.mxu0 %vm650_vm0, %v1967_v0  ;;  %v470_v25 = vmul.f32 0.5, %v406_v12  ;;  %v1644_v27 = vld [vmem:[%s2999_s0 + $0x628] sm:$0xff]  ;;  %v22_v29 = vld [vmem:[%s2999_s0 + $0x30] sm:$0xff]  ;;  %1845 = vmatprep.mubr.msk.f32.mxu0 %vm601_vm1, %v533_v17  ;;  %v279_v32 = vadd.f32 %v1580_v16, %v150_v20 }
  0x11   :  { %v1659_v14 = vld [vmem:[%s2999_s0 + $0x6a0] sm:$0xff]  ;;  %v294_v19 = vadd.f32 %v1595_v9, %v165_v8  ;;  %v407_v26 = vadd.f32 %v1643_v7, %v278_v13  ;;  %v1517_v30 = vld [vmem:[%s2999_s0 + $0x230] sm:$0xff]  ;;  %v1660_v33 = vld [vmem:[%s2999_s0 + $0x6a8] sm:$0xff]  ;;  %v295_v39 = vadd.f32 %v1596_v23, %v166_v28 }
  0x12   :  { %1868 = vmatprep.mubr.msk.f32.mxu1 %vm601_vm1, %v547_v53  ;;  %v422_v18 = vadd.f32 %v1658_v63, %v293_v6  ;;  %v151_v34 = vadd.f32 %v1517_v30, %v22_v29  ;;  %v1581_v35 = vld [vmem:[%s2999_s0 + $0x430] sm:$0xff]  ;;  %v534_v37 = vmax.f32 %v470_v25, 0.0  ;;  %v408_v45 = vadd.f32 %v1644_v27, %v279_v32  ;;  %v23_v47 = vld [vmem:[%s2999_s0 + $0x38] sm:$0xff]  ;;  %v24_v63 = vld [vmem:[%s2999_s0 + $0x40] sm:$0xff] }
  0x13   :  { %1869 = vmatmul.mubr.msk.f32.vlgmr.msra.gmra.mrb[0].mxu1 %vm601_vm1, %v548_v4  ;;  %v38_v36 = vld [vmem:[%s2999_s0 + $0xb0] sm:$0xff]  ;;  %v471_v38 = vmul.f32 0.5, %v407_v26  ;;  %v1518_v48 = vld [vmem:[%s2999_s0 + $0x238] sm:$0xff]  ;;  %v424_v51 = vadd.f32 %v1660_v33, %v295_v39  ;;  %v1519_v5 = vld [vmem:[%s2999_s0 + $0x240] sm:$0xff] }
  0x14   :  { %1919 = vmatpush3.msk.msra.mxu1 %vm650_vm0, %v1967_v0  ;;  %v486_v31 = vmul.f32 0.5, %v422_v18  ;;  %v423_v0 = vadd.f32 %v1659_v14, %v294_v19  ;;  %1871 = vmatprep.mubr.msk.f32.mxu1 %vm601_vm1, %v549_v24  ;;  %v1645_v40 = vld [vmem:[%s2999_s0 + $0x630] sm:$0xff]  ;;  %v280_v46 = vadd.f32 %v1581_v35, %v151_v34  ;;  %v1582_v49 = vld [vmem:[%s2999_s0 + $0x438] sm:$0xff]  ;;  %v152_v54 = vadd.f32 %v1518_v48, %v23_v47  ;;  %v1583_v6 = vld [vmem:[%s2999_s0 + $0x440] sm:$0xff] }
  0x15   :  { %v1533_v41 = vld [vmem:[%s2999_s0 + $0x2b0] sm:$0xff]  ;;  %1846 = vmatmul.mubr.msk.f32.gmra.mrb[2].mxu0 %vm601_vm1, %v534_v37  ;;  %v535_v50 = vmax.f32 %v471_v38, 0.0  ;;  %v39_v55 = vld [vmem:[%s2999_s0 + $0xb8] sm:$0xff]  ;;  %v472_v58 = vmul.f32 0.5, %v408_v45  ;;  %v488_v1 = vmul.f32 0.5, %v424_v51  ;;  %v153_v10 = vadd.f32 %v1519_v5, %v24_v63  ;;  %v40_v11 = vld [vmem:[%s2999_s0 + $0xc0] sm:$0xff] }
  0x16   :  { %v1597_v42 = vld [vmem:[%s2999_s0 + $0x4b0] sm:$0xff]  ;;  %v550_v43 = vmax.f32 %v486_v31, 0.0  ;;  %v487_v44 = vmul.f32 0.5, %v423_v0  ;;  %v167_v52 = vadd.f32 %v1533_v41, %v38_v36  ;;  %v1534_v56 = vld [vmem:[%s2999_s0 + $0x2b8] sm:$0xff]  ;;  %v409_v59 = vadd.f32 %v1645_v40, %v280_v46  ;;  %v1535_v12 = vld [vmem:[%s2999_s0 + $0x2c0] sm:$0xff] }
  0x17   :  { %v1661_v53 = vld [vmem:[%s2999_s0 + $0x6b0] sm:$0xff]  ;;  %v1646_v60 = vld [vmem:[%s2999_s0 + $0x638] sm:$0xff]  ;;  %v168_v61 = vadd.f32 %v1534_v56, %v39_v55  ;;  %1848 = vmatprep.mubr.msk.f32.mxu0 %vm601_vm1, %v535_v50  ;;  %v281_v3 = vadd.f32 %v1582_v49, %v152_v54  ;;  %v536_v7 = vmax.f32 %v472_v58, 0.0  ;;  %v1599_v13 = vld [vmem:[%s2999_s0 + $0x4c0] sm:$0xff]  ;;  %v552_v14 = vmax.f32 %v488_v1, 0.0 }
  0x18   :  { %1872 = vmatmul.mubr.msk.f32.gmra.mrb[2].mxu1 %vm601_vm1, %v550_v43  ;;  %v551_v57 = vmax.f32 %v487_v44, 0.0  ;;  %v1598_v62 = vld [vmem:[%s2999_s0 + $0x4b8] sm:$0xff]  ;;  %v296_v2 = vadd.f32 %v1597_v42, %v167_v52  ;;  %v473_v8 = vmul.f32 0.5, %v409_v59  ;;  %v1647_v17 = vld [vmem:[%s2999_s0 + $0x640] sm:$0xff]  ;;  %v169_v18 = vadd.f32 %v1535_v12, %v40_v11  ;;  %v25_v19 = vld [vmem:[%s2999_s0 + $0x48] sm:$0xff] }
  0x19   :  { %v1662_v4 = vld [vmem:[%s2999_s0 + $0x6b8] sm:$0xff]  ;;  %v297_v9 = vadd.f32 %v1598_v62, %v168_v61  ;;  %v410_v16 = vadd.f32 %v1646_v60, %v281_v3  ;;  %v1520_v20 = vld [vmem:[%s2999_s0 + $0x248] sm:$0xff]  ;;  %1849 = vmatmul.mubr.msk.f32.gmra.mrb[4].mxu0 %vm601_vm1, %v536_v7  ;;  %v282_v23 = vadd.f32 %v1583_v6, %v153_v10  ;;  %v1663_v24 = vld [vmem:[%s2999_s0 + $0x6c0] sm:$0xff] }
  0x1a   :  { %1874 = vmatprep.mubr.msk.f32.mxu1 %vm601_vm1, %v551_v57  ;;  %v425_v15 = vadd.f32 %v1661_v53, %v296_v2  ;;  %v537_v21 = vmax.f32 %v473_v8, 0.0  ;;  %v154_v25 = vadd.f32 %v1520_v20, %v25_v19  ;;  %v1584_v26 = vld [vmem:[%s2999_s0 + $0x448] sm:$0xff]  ;;  %v298_v30 = vadd.f32 %v1599_v13, %v169_v18  ;;  %v26_v37 = vld [vmem:[%s2999_s0 + $0x50] sm:$0xff]  ;;  %v27_v53 = vld [vmem:[%s2999_s0 + $0x58] sm:$0xff] }
  0x1b   :  { %v426_v22 = vadd.f32 %v1662_v4, %v297_v9  ;;  %v41_v27 = vld [vmem:[%s2999_s0 + $0xc8] sm:$0xff]  ;;  %v474_v29 = vmul.f32 0.5, %v410_v16  ;;  %v411_v34 = vadd.f32 %v1647_v17, %v282_v23  ;;  %v1521_v38 = vld [vmem:[%s2999_s0 + $0x250] sm:$0xff]  ;;  %v1522_v58 = vld [vmem:[%s2999_s0 + $0x258] sm:$0xff] }
  0x1c   :  { %1875 = vmatmul.mubr.msk.f32.gmra.mrb[4].mxu1 %vm601_vm1, %v552_v14  ;;  %v489_v28 = vmul.f32 0.5, %v425_v15  ;;  %v1648_v31 = vld [vmem:[%s2999_s0 + $0x648] sm:$0xff]  ;;  %1851 = vmatprep.mubr.msk.f32.mxu0 %vm601_vm1, %v537_v21  ;;  %v283_v35 = vadd.f32 %v1584_v26, %v154_v25  ;;  %v1585_v39 = vld [vmem:[%s2999_s0 + $0x450] sm:$0xff]  ;;  %v427_v42 = vadd.f32 %v1663_v24, %v298_v30  ;;  %v155_v44 = vadd.f32 %v1521_v38, %v26_v37  ;;  %v1586_v59 = vld [vmem:[%s2999_s0 + $0x458] sm:$0xff] }
  0x1d   :  { %v1536_v0 = vld [vmem:[%s2999_s0 + $0x2c8] sm:$0xff]  ;;  %v490_v33 = vmul.f32 0.5, %v426_v22  ;;  %v538_v41 = vmax.f32 %v474_v29, 0.0  ;;  %v42_v45 = vld [vmem:[%s2999_s0 + $0xd0] sm:$0xff]  ;;  %v475_v48 = vmul.f32 0.5, %v411_v34  ;;  %v156_v63 = vadd.f32 %v1522_v58, %v27_v53  ;;  %v43_v1 = vld [vmem:[%s2999_s0 + $0xd8] sm:$0xff] }
  0x1e   :  { %v1600_v32 = vld [vmem:[%s2999_s0 + $0x4c8] sm:$0xff]  ;;  %v170_v36 = vadd.f32 %v1536_v0, %v41_v27  ;;  %v553_v40 = vmax.f32 %v489_v28, 0.0  ;;  %v1537_v46 = vld [vmem:[%s2999_s0 + $0x2d0] sm:$0xff]  ;;  %v412_v49 = vadd.f32 %v1648_v31, %v283_v35  ;;  %v491_v54 = vmul.f32 0.5, %v427_v42  ;;  %v1538_v2 = vld [vmem:[%s2999_s0 + $0x2d8] sm:$0xff] }
  0x1f   :  { %v1664_v43 = vld [vmem:[%s2999_s0 + $0x6c8] sm:$0xff]  ;;  %v554_v47 = vmax.f32 %v490_v33, 0.0  ;;  %v1649_v51 = vld [vmem:[%s2999_s0 + $0x650] sm:$0xff]  ;;  %1852 = vmatmul.mubr.msk.f32.gmra.mrb[6].mxu0 %vm601_vm1, %v538_v41  ;;  %v284_v55 = vadd.f32 %v1585_v39, %v155_v44  ;;  %v171_v56 = vadd.f32 %v1537_v46, %v42_v45  ;;  %v539_v60 = vmax.f32 %v475_v48, 0.0  ;;  %v1602_v3 = vld [vmem:[%s2999_s0 + $0x4d8] sm:$0xff] }
  0x20   :  { %v299_v50 = vadd.f32 %v1600_v32, %v170_v36  ;;  %v1601_v52 = vld [vmem:[%s2999_s0 + $0x4d0] sm:$0xff]  ;;  %1877 = vmatprep.mubr.msk.f32.mxu1 %vm601_vm1, %v553_v40  ;;  %v476_v61 = vmul.f32 0.5, %v412_v49  ;;  %v555_v4 = vmax.f32 %v491_v54, 0.0  ;;  %v1650_v7 = vld [vmem:[%s2999_s0 + $0x658] sm:$0xff]  ;;  %v172_v8 = vadd.f32 %v1538_v2, %v43_v1  ;;  %v28_v9 = vld [vmem:[%s2999_s0 + $0x60] sm:$0xff] }
  0x21   :  { %v1665_v57 = vld [vmem:[%s2999_s0 + $0x6d0] sm:$0xff]  ;;  %1878 = vmatmul.mubr.msk.f32.gmra.mrb[6].mxu1 %vm601_vm1, %v554_v47  ;;  %v413_v5 = vadd.f32 %v1649_v51, %v284_v55  ;;  %v300_v6 = vadd.f32 %v1601_v52, %v171_v56  ;;  %v1523_v10 = vld [vmem:[%s2999_s0 + $0x260] sm:$0xff]  ;;  %1854 = vmatprep.mubr.msk.f32.mxu0 %vm601_vm1, %v539_v60  ;;  %v285_v13 = vadd.f32 %v1586_v59, %v156_v63  ;;  %v1666_v14 = vld [vmem:[%s2999_s0 + $0x6d8] sm:$0xff] }
  0x22   :  { %v428_v62 = vadd.f32 %v1664_v43, %v299_v50  ;;  %v540_v11 = vmax.f32 %v476_v61, 0.0  ;;  %v157_v15 = vadd.f32 %v1523_v10, %v28_v9  ;;  %v1587_v16 = vld [vmem:[%s2999_s0 + $0x460] sm:$0xff]  ;;  %1880 = vmatprep.mubr.msk.f32.mxu1 %vm601_vm1, %v555_v4  ;;  %v301_v20 = vadd.f32 %v1602_v3, %v172_v8  ;;  %v29_v28 = vld [vmem:[%s2999_s0 + $0x68] sm:$0xff]  ;;  %v30_v43 = vld [vmem:[%s2999_s0 + $0x70] sm:$0xff] }
  0x23   :  { %v44_v17 = vld [vmem:[%s2999_s0 + $0xe0] sm:$0xff]  ;;  %v477_v18 = vmul.f32 0.5, %v413_v5  ;;  %v429_v19 = vadd.f32 %v1665_v57, %v300_v6  ;;  %v414_v25 = vadd.f32 %v1650_v7, %v285_v13  ;;  %v1524_v29 = vld [vmem:[%s2999_s0 + $0x268] sm:$0xff]  ;;  %v1525_v48 = vld [vmem:[%s2999_s0 + $0x270] sm:$0xff] }
  0x24   :  { %v492_v12 = vmul.f32 0.5, %v428_v62  ;;  %v1651_v21 = vld [vmem:[%s2999_s0 + $0x660] sm:$0xff]  ;;  %1855 = vmatmul.mubr.msk.f32.gmra.mrb[8].mxu0 %vm601_vm1, %v540_v11  ;;  %v286_v26 = vadd.f32 %v1587_v16, %v157_v15  ;;  %v1588_v30 = vld [vmem:[%s2999_s0 + $0x468] sm:$0xff]  ;;  %v430_v32 = vadd.f32 %v1666_v14, %v301_v20  ;;  %v158_v34 = vadd.f32 %v1524_v29, %v29_v28  ;;  %v1589_v49 = vld [vmem:[%s2999_s0 + $0x470] sm:$0xff] }
  0x25   :  { %v1539_v22 = vld [vmem:[%s2999_s0 + $0x2e0] sm:$0xff]  ;;  %v541_v31 = vmax.f32 %v477_v18, 0.0  ;;  %v493_v0 = vmul.f32 0.5, %v429_v19  ;;  %v45_v35 = vld [vmem:[%s2999_s0 + $0xe8] sm:$0xff]  ;;  %v478_v37 = vmul.f32 0.5, %v414_v25  ;;  %v46_v54 = vld [vmem:[%s2999_s0 + $0xf0] sm:$0xff]  ;;  %v159_v59 = vadd.f32 %v1525_v48, %v30_v43 }
  0x26   :  { %v1603_v23 = vld [vmem:[%s2999_s0 + $0x4e0] sm:$0xff]  ;;  %v556_v24 = vmax.f32 %v492_v12, 0.0  ;;  %v173_v27 = vadd.f32 %v1539_v22, %v44_v17  ;;  %v1540_v36 = vld [vmem:[%s2999_s0 + $0x2e8] sm:$0xff]  ;;  %v415_v38 = vadd.f32 %v1651_v21, %v286_v26  ;;  %v494_v45 = vmul.f32 0.5, %v430_v32  ;;  %v1541_v55 = vld [vmem:[%s2999_s0 + $0x2f0] sm:$0xff] }
  0x27   :  { %v1667_v33 = vld [vmem:[%s2999_s0 + $0x6e0] sm:$0xff]  ;;  %v1652_v40 = vld [vmem:[%s2999_s0 + $0x668] sm:$0xff]  ;;  %v174_v41 = vadd.f32 %v1540_v36, %v45_v35  ;;  %1857 = vmatprep.mubr.msk.f32.mxu0 %vm601_vm1, %v541_v31  ;;  %v557_v44 = vmax.f32 %v493_v0, 0.0  ;;  %v287_v46 = vadd.f32 %v1588_v30, %v158_v34  ;;  %v542_v50 = vmax.f32 %v478_v37, 0.0  ;;  %v1605_v56 = vld [vmem:[%s2999_s0 + $0x4f0] sm:$0xff] }
  0x28   :  { %1881 = vmatmul.mubr.msk.f32.gmra.mrb[8].mxu1 %vm601_vm1, %v556_v24  ;;  %v302_v39 = vadd.f32 %v1603_v23, %v173_v27  ;;  %v1604_v42 = vld [vmem:[%s2999_s0 + $0x4e8] sm:$0xff]  ;;  %v479_v51 = vmul.f32 0.5, %v415_v38  ;;  %v558_v57 = vmax.f32 %v494_v45, 0.0  ;;  %v1653_v60 = vld [vmem:[%s2999_s0 + $0x670] sm:$0xff]  ;;  %v175_v61 = vadd.f32 %v1541_v55, %v46_v54  ;;  %v31_v62 = vld [vmem:[%s2999_s0 + $0x78] sm:$0xff] }
  0x29   :  { %v1668_v47 = vld [vmem:[%s2999_s0 + $0x6e8] sm:$0xff]  ;;  %v303_v53 = vadd.f32 %v1604_v42, %v174_v41  ;;  %1883 = vmatprep.mubr.msk.f32.mxu1 %vm601_vm1, %v557_v44  ;;  %v416_v58 = vadd.f32 %v1652_v40, %v287_v46  ;;  %v1526_v63 = vld [vmem:[%s2999_s0 + $0x278] sm:$0xff]  ;;  %1858 = vmatmul.mubr.msk.f32.gmra.mrb[10].mxu0 %vm601_vm1, %v542_v50  ;;  %v1669_v4 = vld [vmem:[%s2999_s0 + $0x6f0] sm:$0xff]  ;;  %v288_v9 = vadd.f32 %v1589_v49, %v159_v59 }
  0x2a   :  { %v431_v52 = vadd.f32 %v1667_v33, %v302_v39  ;;  %v543_v1 = vmax.f32 %v479_v51, 0.0  ;;  %v160_v5 = vadd.f32 %v1526_v63, %v31_v62  ;;  %v1590_v6 = vld [vmem:[%s2999_s0 + $0x478] sm:$0xff]  ;;  %v304_v10 = vadd.f32 %v1605_v56, %v175_v61  ;;  %v48_v18 = vld [vmem:[%s2999_s0 + $0x100] sm:$0xff]  ;;  %v49_v26 = vld [vmem:[%s2999_s0 + $0x108] sm:$0xff] }
  0x2b   :  { %v432_v3 = vadd.f32 %v1668_v47, %v303_v53  ;;  %v47_v7 = vld [vmem:[%s2999_s0 + $0xf8] sm:$0xff]  ;;  %v480_v8 = vmul.f32 0.5, %v416_v58  ;;  %v1543_v19 = vld [vmem:[%s2999_s0 + $0x300] sm:$0xff]  ;;  %v417_v22 = vadd.f32 %v1653_v60, %v288_v9  ;;  %v1544_v27 = vld [vmem:[%s2999_s0 + $0x308] sm:$0xff] }
  0x2c   :  { %v495_v2 = vmul.f32 0.5, %v431_v52  ;;  %1884 = vmatmul.mubr.msk.f32.gmra.mrb[10].mxu1 %vm601_vm1, %v558_v57  ;;  %v1654_v11 = vld [vmem:[%s2999_s0 + $0x678] sm:$0xff]  ;;  %1860 = vmatprep.mubr.msk.f32.mxu0 %vm601_vm1, %v543_v1  ;;  %v289_v16 = vadd.f32 %v1590_v6, %v160_v5  ;;  %v1607_v20 = vld [vmem:[%s2999_s0 + $0x500] sm:$0xff]  ;;  %v433_v23 = vadd.f32 %v1669_v4, %v304_v10  ;;  %v177_v25 = vadd.f32 %v1543_v19, %v48_v18  ;;  %v1608_v32 = vld [vmem:[%s2999_s0 + $0x508] sm:$0xff] }
  0x2d   :  { %v1542_v12 = vld [vmem:[%s2999_s0 + $0x2f8] sm:$0xff]  ;;  %v496_v15 = vmul.f32 0.5, %v432_v3  ;;  %v544_v21 = vmax.f32 %v480_v8, 0.0  ;;  %v1671_v31 = vld [vmem:[%s2999_s0 + $0x700] sm:$0xff]  ;;  %v178_v0 = vadd.f32 %v1544_v27, %v49_v26  ;;  %v481_v34 = vmul.f32 0.5, %v417_v22  ;;  %v1672_v37 = vld [vmem:[%s2999_s0 + $0x708] sm:$0xff] }
  0x2e   :  { %v1606_v13 = vld [vmem:[%s2999_s0 + $0x4f8] sm:$0xff]  ;;  %v559_v14 = vmax.f32 %v495_v2, 0.0  ;;  %v176_v17 = vadd.f32 %v1542_v12, %v47_v7  ;;  %v418_v29 = vadd.f32 %v1654_v11, %v289_v16  ;;  %v64_v33 = vld [vmem:[%s2999_s0 + $0x180] sm:$0xff]  ;;  %v497_v35 = vmul.f32 0.5, %v433_v23  ;;  %v65_v44 = vld [vmem:[%s2999_s0 + $0x188] sm:$0xff] }
  0x2f   :  { %v1670_v24 = vld [vmem:[%s2999_s0 + $0x6f8] sm:$0xff]  ;;  %v560_v28 = vmax.f32 %v496_v15, 0.0  ;;  %1861 = vmatmul.mubr.msk.f32.gmra.mrb[12].mxu0 %vm601_vm1, %v544_v21  ;;  %v306_v36 = vadd.f32 %v1607_v20, %v177_v25  ;;  %v1559_v38 = vld [vmem:[%s2999_s0 + $0x380] sm:$0xff]  ;;  %v307_v42 = vadd.f32 %v1608_v32, %v178_v0  ;;  %v1560_v45 = vld [vmem:[%s2999_s0 + $0x388] sm:$0xff]  ;;  %v545_v47 = vmax.f32 %v481_v34, 0.0 }
  0x30   :  { %1886 = vmatprep.mubr.msk.f32.mxu1 %vm601_vm1, %v559_v14  ;;  %v305_v30 = vadd.f32 %v1606_v13, %v176_v17  ;;  %v1623_v39 = vld [vmem:[%s2999_s0 + $0x580] sm:$0xff]  ;;  %v482_v40 = vmul.f32 0.5, %v418_v29  ;;  %v193_v43 = vadd.f32 %v1559_v38, %v64_v33  ;;  %v1624_v46 = vld [vmem:[%s2999_s0 + $0x588] sm:$0xff]  ;;  %v561_v48 = vmax.f32 %v497_v35, 0.0  ;;  %v50_v52 = vld [vmem:[%s2999_s0 + $0x110] sm:$0xff] }
  0x31   :  { %1887 = vmatmul.mubr.msk.f32.gmra.mrb[12].mxu1 %vm601_vm1, %v560_v28  ;;  %v435_v49 = vadd.f32 %v1671_v31, %v306_v36  ;;  %v1687_v50 = vld [vmem:[%s2999_s0 + $0x780] sm:$0xff]  ;;  %v194_v51 = vadd.f32 %v1560_v45, %v65_v44  ;;  %v1545_v53 = vld [vmem:[%s2999_s0 + $0x310] sm:$0xff]  ;;  %v436_v56 = vadd.f32 %v1672_v37, %v307_v42  ;;  %v1688_v58 = vld [vmem:[%s2999_s0 + $0x788] sm:$0xff]  ;;  %1863 = vmatprep.mubr.msk.f32.mxu0 %vm601_vm1, %v545_v47 }
  0x32   :  { %v434_v41 = vadd.f32 %v1670_v24, %v305_v30  ;;  %v546_v54 = vmax.f32 %v482_v40, 0.0  ;;  %v322_v57 = vadd.f32 %v1623_v39, %v193_v43  ;;  %v1609_v59 = vld [vmem:[%s2999_s0 + $0x510] sm:$0xff]  ;;  %v51_v60 = vld [vmem:[%s2999_s0 + $0x118] sm:$0xff]  ;;  %1889 = vmatprep.mubr.msk.f32.mxu1 %vm601_vm1, %v561_v48  ;;  %v179_v63 = vadd.f32 %v1545_v53, %v50_v52  ;;  %v52_v24 = vld [vmem:[%s2999_s0 + $0x120] sm:$0xff] }
  0x33   :  { %v499_v61 = vmul.f32 0.5, %v435_v49  ;;  %v323_v62 = vadd.f32 %v1624_v46, %v194_v51  ;;  %v1673_v1 = vld [vmem:[%s2999_s0 + $0x710] sm:$0xff]  ;;  %v1546_v2 = vld [vmem:[%s2999_s0 + $0x318] sm:$0xff]  ;;  %v500_v5 = vmul.f32 0.5, %v436_v56  ;;  %v1547_v29 = vld [vmem:[%s2999_s0 + $0x320] sm:$0xff] }
  0x34   :  { %v498_v55 = vmul.f32 0.5, %v434_v41  ;;  %v1610_v3 = vld [vmem:[%s2999_s0 + $0x518] sm:$0xff]  ;;  %1864 = vmatmul.mubr.msk.f32.gmra.mrb[14].mxu0 %vm601_vm1, %v546_v54  ;;  %v451_v6 = vadd.f32 %v1687_v50, %v322_v57  ;;  %v180_v7 = vadd.f32 %v1546_v2, %v51_v60  ;;  %v66_v8 = vld [vmem:[%s2999_s0 + $0x190] sm:$0xff]  ;;  %v308_v13 = vadd.f32 %v1609_v59, %v179_v63  ;;  %v1611_v30 = vld [vmem:[%s2999_s0 + $0x520] sm:$0xff] }
  0x35   :  { %v1561_v9 = vld [vmem:[%s2999_s0 + $0x390] sm:$0xff]  ;;  %v563_v11 = vmax.f32 %v499_v61, 0.0  ;;  %v452_v12 = vadd.f32 %v1688_v58, %v323_v62  ;;  %v1674_v14 = vld [vmem:[%s2999_s0 + $0x718] sm:$0xff]  ;;  %v564_v18 = vmax.f32 %v500_v5, 0.0  ;;  %v181_v33 = vadd.f32 %v1547_v29, %v52_v24  ;;  %v53_v34 = vld [vmem:[%s2999_s0 + $0x128] sm:$0xff] }
  0x36   :  { %v562_v4 = vmax.f32 %v498_v55, 0.0  ;;  %v1625_v10 = vld [vmem:[%s2999_s0 + $0x590] sm:$0xff]  ;;  %v195_v15 = vadd.f32 %v1561_v9, %v66_v8  ;;  %v67_v16 = vld [vmem:[%s2999_s0 + $0x198] sm:$0xff]  ;;  %v515_v19 = vmul.f32 0.5, %v451_v6  ;;  %v309_v20 = vadd.f32 %v1610_v3, %v180_v7  ;;  %v1548_v35 = vld [vmem:[%s2999_s0 + $0x328] sm:$0xff] }
  0x37   :  { %v1562_v17 = vld [vmem:[%s2999_s0 + $0x398] sm:$0xff]  ;;  %v1689_v21 = vld [vmem:[%s2999_s0 + $0x790] sm:$0xff]  ;;  %1894 = vmatprep.mubr.msk.f32.mxu0 %vm601_vm1, %v563_v11  ;;  %v516_v25 = vmul.f32 0.5, %v452_v12  ;;  %v437_v26 = vadd.f32 %v1673_v1, %v308_v13  ;;  %v1612_v36 = vld [vmem:[%s2999_s0 + $0x528] sm:$0xff]  ;;  %v182_v41 = vadd.f32 %v1548_v35, %v53_v34  ;;  %v310_v46 = vadd.f32 %v1611_v30, %v181_v33 }
  0x38   :  { %1890 = vmatmul.mubr.msk.f32.gmra.mrb[14].mxu1 %vm601_vm1, %v562_v4  ;;  %v196_v22 = vadd.f32 %v1562_v17, %v67_v16  ;;  %v1626_v23 = vld [vmem:[%s2999_s0 + $0x598] sm:$0xff]  ;;  %v324_v27 = vadd.f32 %v1625_v10, %v195_v15  ;;  %1895 = vmatmul.mubr.msk.f32.vlgmr.msra.gmra.mrb[16].mxu0 %vm601_vm1, %v564_v18  ;;  %v579_v31 = vmax.f32 %v515_v19, 0.0  ;;  %v438_v0 = vadd.f32 %v1674_v14, %v309_v20  ;;  %v1675_v40 = vld [vmem:[%s2999_s0 + $0x720] sm:$0xff]  ;;  %v1676_v47 = vld [vmem:[%s2999_s0 + $0x728] sm:$0xff] }
  0x39   :  { %v1690_v28 = vld [vmem:[%s2999_s0 + $0x798] sm:$0xff]  ;;  %v580_v37 = vmax.f32 %v516_v25, 0.0  ;;  %v501_v38 = vmul.f32 0.5, %v437_v26  ;;  %v68_v42 = vld [vmem:[%s2999_s0 + $0x1a0] sm:$0xff]  ;;  %v69_v50 = vld [vmem:[%s2999_s0 + $0x1a8] sm:$0xff]  ;;  %v311_v53 = vadd.f32 %v1612_v36, %v182_v41  ;;  %v439_v59 = vadd.f32 %v1675_v40, %v310_v46 }
  0x3a   :  { %v325_v32 = vadd.f32 %v1626_v23, %v196_v22  ;;  %v453_v39 = vadd.f32 %v1689_v21, %v324_v27  ;;  %v1563_v43 = vld [vmem:[%s2999_s0 + $0x3a0] sm:$0xff]  ;;  %1920 = vmatprep.mubr.msk.f32.mxu1 %vm601_vm1, %v579_v31  ;;  %v502_v44 = vmul.f32 0.5, %v438_v0  ;;  %v1564_v55 = vld [vmem:[%s2999_s0 + $0x3a8] sm:$0xff]  ;;  %v54_v61 = vld [vmem:[%s2999_s0 + $0x130] sm:$0xff] }
  0x3b   :  { %v197_v48 = vadd.f32 %v1563_v43, %v68_v42  ;;  %v1627_v49 = vld [vmem:[%s2999_s0 + $0x5a0] sm:$0xff]  ;;  %v565_v51 = vmax.f32 %v501_v38, 0.0  ;;  %v1628_v56 = vld [vmem:[%s2999_s0 + $0x5a8] sm:$0xff]  ;;  %v1549_v62 = vld [vmem:[%s2999_s0 + $0x330] sm:$0xff]  ;;  %v440_v2 = vadd.f32 %v1676_v47, %v311_v53  ;;  %v198_v3 = vadd.f32 %v1564_v55, %v69_v50 }
  0x3c   :  { %v454_v45 = vadd.f32 %v1690_v28, %v325_v32  ;;  %1921 = vmatmul.mubr.msk.f32.vlgmr.msra.gmra.mrb[16].mxu1 %vm601_vm1, %v580_v37  ;;  %v517_v52 = vmul.f32 0.5, %v453_v39  ;;  %v1691_v54 = vld [vmem:[%s2999_s0 + $0x7a0] sm:$0xff]  ;;  %v566_v57 = vmax.f32 %v502_v44, 0.0  ;;  %v1613_v63 = vld [vmem:[%s2999_s0 + $0x530] sm:$0xff]  ;;  %v1692_v4 = vld [vmem:[%s2999_s0 + $0x7a8] sm:$0xff]  ;;  %v183_v5 = vadd.f32 %v1549_v62, %v54_v61 }
  0x3d   :  { %v326_v60 = vadd.f32 %v1627_v49, %v197_v48  ;;  %1897 = vmatprep.mubr.msk.f32.mxu0 %vm601_vm1, %v565_v51  ;;  %v55_v6 = vld [vmem:[%s2999_s0 + $0x138] sm:$0xff]  ;;  %v503_v9 = vmul.f32 0.5, %v439_v59  ;;  %v1677_v11 = vld [vmem:[%s2999_s0 + $0x730] sm:$0xff]  ;;  %v504_v15 = vmul.f32 0.5, %v440_v2  ;;  %v327_v16 = vadd.f32 %v1628_v56, %v198_v3  ;;  %v56_v32 = vld [vmem:[%s2999_s0 + $0x140] sm:$0xff] }
  0x3e   :  { %v518_v58 = vmul.f32 0.5, %v454_v45  ;;  %v581_v1 = vmax.f32 %v517_v52, 0.0  ;;  %v1550_v7 = vld [vmem:[%s2999_s0 + $0x338] sm:$0xff]  ;;  %1898 = vmatmul.mubr.msk.f32.gmra.mrb[18].mxu0 %vm601_vm1, %v566_v57  ;;  %v70_v14 = vld [vmem:[%s2999_s0 + $0x1b0] sm:$0xff]  ;;  %v312_v17 = vadd.f32 %v1613_v63, %v183_v5  ;;  %v1551_v33 = vld [vmem:[%s2999_s0 + $0x340] sm:$0xff] }
  0x3f   :  { %v455_v10 = vadd.f32 %v1691_v54, %v326_v60  ;;  %v184_v12 = vadd.f32 %v1550_v7, %v55_v6  ;;  %v1614_v13 = vld [vmem:[%s2999_s0 + $0x538] sm:$0xff]  ;;  %v1565_v19 = vld [vmem:[%s2999_s0 + $0x3b0] sm:$0xff]  ;;  %v567_v21 = vmax.f32 %v503_v9, 0.0  ;;  %v568_v28 = vmax.f32 %v504_v15, 0.0  ;;  %v1615_v39 = vld [vmem:[%s2999_s0 + $0x540] sm:$0xff] }
  0x40   :  { %v582_v8 = vmax.f32 %v518_v58, 0.0  ;;  %1923 = vmatprep.mubr.msk.f32.mxu1 %vm601_vm1, %v581_v1  ;;  %v1678_v18 = vld [vmem:[%s2999_s0 + $0x738] sm:$0xff]  ;;  %v1629_v20 = vld [vmem:[%s2999_s0 + $0x5b0] sm:$0xff]  ;;  %v199_v24 = vadd.f32 %v1565_v19, %v70_v14  ;;  %v456_v29 = vadd.f32 %v1692_v4, %v327_v16  ;;  %v441_v30 = vadd.f32 %v1677_v11, %v312_v17  ;;  %v57_v40 = vld [vmem:[%s2999_s0 + $0x148] sm:$0xff] }
  0x41   :  { %v519_v22 = vmul.f32 0.5, %v455_v10  ;;  %v313_v23 = vadd.f32 %v1614_v13, %v184_v12  ;;  %v71_v25 = vld [vmem:[%s2999_s0 + $0x1b8] sm:$0xff]  ;;  %v1693_v31 = vld [vmem:[%s2999_s0 + $0x7b0] sm:$0xff]  ;;  %1900 = vmatprep.mubr.msk.f32.mxu0 %vm601_vm1, %v567_v21  ;;  %v185_v38 = vadd.f32 %v1551_v33, %v56_v32  ;;  %v1679_v44 = vld [vmem:[%s2999_s0 + $0x740] sm:$0xff] }
  0x42   :  { %1924 = vmatmul.mubr.msk.f32.gmra.mrb[18].mxu1 %vm601_vm1, %v582_v8  ;;  %v1566_v26 = vld [vmem:[%s2999_s0 + $0x3b8] sm:$0xff]  ;;  %v328_v36 = vadd.f32 %v1629_v20, %v199_v24  ;;  %1901 = vmatmul.mubr.msk.f32.gmra.mrb[20].mxu0 %vm601_vm1, %v568_v28  ;;  %v520_v41 = vmul.f32 0.5, %v456_v29  ;;  %v505_v42 = vmul.f32 0.5, %v441_v30  ;;  %v1552_v45 = vld [vmem:[%s2999_s0 + $0x348] sm:$0xff]  ;;  %v72_v51 = vld [vmem:[%s2999_s0 + $0x1c0] sm:$0xff] }
  0x43   :  { %v1630_v27 = vld [vmem:[%s2999_s0 + $0x5b8] sm:$0xff]  ;;  %v200_v0 = vadd.f32 %v1566_v26, %v71_v25  ;;  %v583_v34 = vmax.f32 %v519_v22, 0.0  ;;  %v442_v35 = vadd.f32 %v1678_v18, %v313_v23  ;;  %v1616_v46 = vld [vmem:[%s2999_s0 + $0x548] sm:$0xff]  ;;  %v314_v49 = vadd.f32 %v1615_v39, %v185_v38  ;;  %v1567_v52 = vld [vmem:[%s2999_s0 + $0x3c0] sm:$0xff] }
  0x44   :  { %v1694_v37 = vld [vmem:[%s2999_s0 + $0x7b8] sm:$0xff]  ;;  %v457_v48 = vadd.f32 %v1693_v31, %v328_v36  ;;  %v186_v50 = vadd.f32 %v1552_v45, %v57_v40  ;;  %v1631_v53 = vld [vmem:[%s2999_s0 + $0x5c0] sm:$0xff]  ;;  %v584_v54 = vmax.f32 %v520_v41, 0.0  ;;  %v569_v55 = vmax.f32 %v505_v42, 0.0  ;;  %v1680_v57 = vld [vmem:[%s2999_s0 + $0x748] sm:$0xff] }
  0x45   :  { %v329_v43 = vadd.f32 %v1630_v27, %v200_v0  ;;  %1926 = vmatprep.mubr.msk.f32.mxu1 %vm601_vm1, %v583_v34  ;;  %v506_v47 = vmul.f32 0.5, %v442_v35  ;;  %v201_v58 = vadd.f32 %v1567_v52, %v72_v51  ;;  %v73_v59 = vld [vmem:[%s2999_s0 + $0x1c8] sm:$0xff]  ;;  %v443_v63 = vadd.f32 %v1679_v44, %v314_v49  ;;  %v1695_v2 = vld [vmem:[%s2999_s0 + $0x7c0] sm:$0xff]  ;;  %v58_v4 = vld [vmem:[%s2999_s0 + $0x150] sm:$0xff] }
  0x46   :  { %v1568_v60 = vld [vmem:[%s2999_s0 + $0x3c8] sm:$0xff]  ;;  %v521_v62 = vmul.f32 0.5, %v457_v48  ;;  %v315_v1 = vadd.f32 %v1616_v46, %v186_v50  ;;  %1927 = vmatmul.mubr.msk.f32.gmra.mrb[20].mxu1 %vm601_vm1, %v584_v54  ;;  %1903 = vmatprep.mubr.msk.f32.mxu0 %vm601_vm1, %v569_v55  ;;  %v1553_v9 = vld [vmem:[%s2999_s0 + $0x350] sm:$0xff]  ;;  %v59_v15 = vld [vmem:[%s2999_s0 + $0x158] sm:$0xff] }
  0x47   :  { %v458_v56 = vadd.f32 %v1694_v37, %v329_v43  ;;  %v570_v61 = vmax.f32 %v506_v47, 0.0  ;;  %v1632_v3 = vld [vmem:[%s2999_s0 + $0x5c8] sm:$0xff]  ;;  %v330_v6 = vadd.f32 %v1631_v53, %v201_v58  ;;  %v202_v7 = vadd.f32 %v1568_v60, %v73_v59  ;;  %v1617_v10 = vld [vmem:[%s2999_s0 + $0x550] sm:$0xff]  ;;  %v1554_v16 = vld [vmem:[%s2999_s0 + $0x358] sm:$0xff] }
  0x48   :  { %v1696_v8 = vld [vmem:[%s2999_s0 + $0x7c8] sm:$0xff]  ;;  %v585_v11 = vmax.f32 %v521_v62, 0.0  ;;  %v507_v12 = vmul.f32 0.5, %v443_v63  ;;  %v444_v13 = vadd.f32 %v1680_v57, %v315_v1  ;;  %v187_v14 = vadd.f32 %v1553_v9, %v58_v4  ;;  %v1618_v17 = vld [vmem:[%s2999_s0 + $0x558] sm:$0xff]  ;;  %v1681_v21 = vld [vmem:[%s2999_s0 + $0x750] sm:$0xff] }
  0x49   :  { %v522_v5 = vmul.f32 0.5, %v458_v56  ;;  %1904 = vmatmul.mubr.msk.f32.gmra.mrb[22].mxu0 %vm601_vm1, %v570_v61  ;;  %v459_v19 = vadd.f32 %v1695_v2, %v330_v6  ;;  %v331_v20 = vadd.f32 %v1632_v3, %v202_v7  ;;  %v188_v22 = vadd.f32 %v1554_v16, %v59_v15  ;;  %v74_v23 = vld [vmem:[%s2999_s0 + $0x1d0] sm:$0xff]  ;;  %v1682_v28 = vld [vmem:[%s2999_s0 + $0x758] sm:$0xff]  ;;  %v60_v41 = vld [vmem:[%s2999_s0 + $0x160] sm:$0xff] }
  0x4a   :  { %v1569_v24 = vld [vmem:[%s2999_s0 + $0x3d0] sm:$0xff]  ;;  %1929 = vmatprep.mubr.msk.f32.mxu1 %vm601_vm1, %v585_v11  ;;  %v571_v25 = vmax.f32 %v507_v12, 0.0  ;;  %v508_v26 = vmul.f32 0.5, %v444_v13  ;;  %v316_v27 = vadd.f32 %v1617_v10, %v187_v14  ;;  %v75_v31 = vld [vmem:[%s2999_s0 + $0x1d8] sm:$0xff]  ;;  %v1555_v42 = vld [vmem:[%s2999_s0 + $0x360] sm:$0xff] }
  0x4b   :  { %v586_v18 = vmax.f32 %v522_v5, 0.0  ;;  %v203_v29 = vadd.f32 %v1569_v24, %v74_v23  ;;  %v1633_v30 = vld [vmem:[%s2999_s0 + $0x5d0] sm:$0xff]  ;;  %v523_v0 = vmul.f32 0.5, %v459_v19  ;;  %v460_v32 = vadd.f32 %v1696_v8, %v331_v20  ;;  %v1570_v35 = vld [vmem:[%s2999_s0 + $0x3d8] sm:$0xff]  ;;  %v1619_v43 = vld [vmem:[%s2999_s0 + $0x560] sm:$0xff] }
  0x4c   :  { %v317_v33 = vadd.f32 %v1618_v17, %v188_v22  ;;  %v1697_v34 = vld [vmem:[%s2999_s0 + $0x7d0] sm:$0xff]  ;;  %v1634_v36 = vld [vmem:[%s2999_s0 + $0x5d8] sm:$0xff]  ;;  %1906 = vmatprep.mubr.msk.f32.mxu0 %vm601_vm1, %v571_v25  ;;  %v572_v37 = vmax.f32 %v508_v26, 0.0  ;;  %v445_v38 = vadd.f32 %v1681_v21, %v316_v27  ;;  %v204_v40 = vadd.f32 %v1570_v35, %v75_v31  ;;  %v61_v49 = vld [vmem:[%s2999_s0 + $0x168] sm:$0xff] }
  0x4d   :  { %1930 = vmatmul.mubr.msk.f32.gmra.mrb[22].mxu1 %vm601_vm1, %v586_v18  ;;  %v332_v39 = vadd.f32 %v1633_v30, %v203_v29  ;;  %v587_v44 = vmax.f32 %v523_v0, 0.0  ;;  %v524_v45 = vmul.f32 0.5, %v460_v32  ;;  %v1698_v47 = vld [vmem:[%s2999_s0 + $0x7d8] sm:$0xff]  ;;  %v189_v48 = vadd.f32 %v1555_v42, %v60_v41  ;;  %v1556_v50 = vld [vmem:[%s2999_s0 + $0x368] sm:$0xff]  ;;  %v1683_v54 = vld [vmem:[%s2999_s0 + $0x760] sm:$0xff] }
  0x4e   :  { %v446_v46 = vadd.f32 %v1682_v28, %v317_v33  ;;  %1907 = vmatmul.mubr.msk.f32.gmra.mrb[24].mxu0 %vm601_vm1, %v572_v37  ;;  %v509_v51 = vmul.f32 0.5, %v445_v38  ;;  %v333_v53 = vadd.f32 %v1634_v36, %v204_v40  ;;  %v190_v55 = vadd.f32 %v1556_v50, %v61_v49  ;;  %v1620_v56 = vld [vmem:[%s2999_s0 + $0x568] sm:$0xff]  ;;  %v76_v57 = vld [vmem:[%s2999_s0 + $0x1e0] sm:$0xff]  ;;  %v62_v13 = vld [vmem:[%s2999_s0 + $0x170] sm:$0xff] }
  0x4f   :  { %v461_v52 = vadd.f32 %v1697_v34, %v332_v39  ;;  %1932 = vmatprep.mubr.msk.f32.mxu1 %vm601_vm1, %v587_v44  ;;  %v588_v58 = vmax.f32 %v524_v45, 0.0  ;;  %v318_v60 = vadd.f32 %v1619_v43, %v189_v48  ;;  %v1684_v61 = vld [vmem:[%s2999_s0 + $0x768] sm:$0xff]  ;;  %v1571_v62 = vld [vmem:[%s2999_s0 + $0x3e0] sm:$0xff]  ;;  %v1557_v14 = vld [vmem:[%s2999_s0 + $0x370] sm:$0xff] }
  0x50   :  { %v510_v59 = vmul.f32 0.5, %v446_v46  ;;  %v1635_v63 = vld [vmem:[%s2999_s0 + $0x5e0] sm:$0xff]  ;;  %v573_v1 = vmax.f32 %v509_v51, 0.0  ;;  %v462_v3 = vadd.f32 %v1698_v47, %v333_v53  ;;  %v319_v4 = vadd.f32 %v1620_v56, %v190_v55  ;;  %v77_v5 = vld [vmem:[%s2999_s0 + $0x1e8] sm:$0xff]  ;;  %v1621_v20 = vld [vmem:[%s2999_s0 + $0x570] sm:$0xff] }
  0x51   :  { %v525_v2 = vmul.f32 0.5, %v461_v52  ;;  %v1572_v6 = vld [vmem:[%s2999_s0 + $0x3e8] sm:$0xff]  ;;  %1933 = vmatmul.mubr.msk.f32.gmra.mrb[24].mxu1 %vm601_vm1, %v588_v58  ;;  %v447_v9 = vadd.f32 %v1683_v54, %v318_v60  ;;  %v205_v10 = vadd.f32 %v1571_v62, %v76_v57  ;;  %v1699_v11 = vld [vmem:[%s2999_s0 + $0x7e0] sm:$0xff]  ;;  %v191_v19 = vadd.f32 %v1557_v14, %v62_v13  ;;  %v63_v21 = vld [vmem:[%s2999_s0 + $0x178] sm:$0xff] }
  0x52   :  { %v1636_v7 = vld [vmem:[%s2999_s0 + $0x5e8] sm:$0xff]  ;;  %v574_v8 = vmax.f32 %v510_v59, 0.0  ;;  %v206_v12 = vadd.f32 %v1572_v6, %v77_v5  ;;  %1909 = vmatprep.mubr.msk.f32.mxu0 %vm601_vm1, %v573_v1  ;;  %v526_v16 = vmul.f32 0.5, %v462_v3  ;;  %v448_v17 = vadd.f32 %v1684_v61, %v319_v4  ;;  %v1685_v25 = vld [vmem:[%s2999_s0 + $0x770] sm:$0xff]  ;;  %v1558_v26 = vld [vmem:[%s2999_s0 + $0x378] sm:$0xff] }
  0x53   :  { %v589_v15 = vmax.f32 %v525_v2, 0.0  ;;  %v1700_v18 = vld [vmem:[%s2999_s0 + $0x7e8] sm:$0xff]  ;;  %v511_v22 = vmul.f32 0.5, %v447_v9  ;;  %v334_v23 = vadd.f32 %v1635_v63, %v205_v10  ;;  %v1622_v27 = vld [vmem:[%s2999_s0 + $0x578] sm:$0xff]  ;;  %v320_v30 = vadd.f32 %v1621_v20, %v191_v19  ;;  %v78_v0 = vld [vmem:[%s2999_s0 + $0x1f0] sm:$0xff] }
  0x54   :  { %1910 = vmatmul.mubr.msk.f32.gmra.mrb[26].mxu0 %vm601_vm1, %v574_v8  ;;  %v335_v24 = vadd.f32 %v1636_v7, %v206_v12  ;;  %v590_v28 = vmax.f32 %v526_v16, 0.0  ;;  %v512_v29 = vmul.f32 0.5, %v448_v17  ;;  %v192_v31 = vadd.f32 %v1558_v26, %v63_v21  ;;  %v1573_v32 = vld [vmem:[%s2999_s0 + $0x3f0] sm:$0xff]  ;;  %v1686_v37 = vld [vmem:[%s2999_s0 + $0x778] sm:$0xff]  ;;  %v2820_v2 = vld [vmem:[%s3000_s2] ss:$0 sm:$0xff] }
  0x55   :  { %1935 = vmatprep.mubr.msk.f32.mxu1 %vm601_vm1, %v589_v15  ;;  %v1637_v33 = vld [vmem:[%s2999_s0 + $0x5f0] sm:$0xff]  ;;  %v575_v34 = vmax.f32 %v511_v22, 0.0  ;;  %v463_v35 = vadd.f32 %v1699_v11, %v334_v23  ;;  %v207_v38 = vadd.f32 %v1573_v32, %v78_v0  ;;  %v79_v39 = vld [vmem:[%s2999_s0 + $0x1f8] sm:$0xff]  ;;  %v449_v42 = vadd.f32 %v1685_v25, %v320_v30 }
  0x56   :  { %v464_v36 = vadd.f32 %v1700_v18, %v335_v24  ;;  %v1574_v40 = vld [vmem:[%s2999_s0 + $0x3f8] sm:$0xff]  ;;  %1936 = vmatmul.mubr.msk.f32.gmra.mrb[26].mxu1 %vm601_vm1, %v590_v28  ;;  %v576_v41 = vmax.f32 %v512_v29, 0.0  ;;  %v321_v43 = vadd.f32 %v1622_v27, %v192_v31  ;;  %v1701_v44 = vld [vmem:[%s2999_s0 + $0x7f0] sm:$0xff] }
  0x57   :  { %v208_v45 = vadd.f32 %v1574_v40, %v79_v39  ;;  %v1638_v46 = vld [vmem:[%s2999_s0 + $0x5f8] sm:$0xff]  ;;  %1912 = vmatprep.mubr.msk.f32.mxu0 %vm601_vm1, %v575_v34  ;;  %v527_v47 = vmul.f32 0.5, %v463_v35  ;;  %v336_v49 = vadd.f32 %v1637_v33, %v207_v38  ;;  %v513_v51 = vmul.f32 0.5, %v449_v42 }
  0x58   :  { %v528_v48 = vmul.f32 0.5, %v464_v36  ;;  %v1702_v50 = vld [vmem:[%s2999_s0 + $0x7f8] sm:$0xff]  ;;  %1913 = vmatmul.mubr.msk.f32.gmra.mrb[28].mxu0 %vm601_vm1, %v576_v41  ;;  %v450_v52 = vadd.f32 %v1686_v37, %v321_v43 }
  0x59   :  { %v337_v53 = vadd.f32 %v1638_v46, %v208_v45  ;;  %v591_v54 = vmax.f32 %v527_v47, 0.0  ;;  %v465_v56 = vadd.f32 %v1701_v44, %v336_v49  ;;  %v577_v57 = vmax.f32 %v513_v51, 0.0 }
  0x5a   :  { %v592_v55 = vmax.f32 %v528_v48, 0.0  ;;  %v514_v58 = vmul.f32 0.5, %v450_v52 }
  0x5b   :  { %v466_v59 = vadd.f32 %v1702_v50, %v337_v53  ;;  %1938 = vmatprep.mubr.msk.f32.mxu1 %vm601_vm1, %v591_v54  ;;  %v529_v60 = vmul.f32 0.5, %v465_v56  ;;  %1915 = vmatprep.mubr.msk.f32.mxu0 %vm601_vm1, %v577_v57 }
  0x5c   :  { %1939 = vmatmul.mubr.msk.f32.gmra.mrb[28].mxu1 %vm601_vm1, %v592_v55  ;;  %v578_v61 = vmax.f32 %v514_v58, 0.0 }
  0x5d   :  { %v530_v62 = vmul.f32 0.5, %v466_v59  ;;  %v593_v63 = vmax.f32 %v529_v60, 0.0 }
  0x5e   :  { %1916 = vmatmul.mubr.msk.f32.gmra.mrb[30].mxu0 %vm601_vm1, %v578_v61 }
  0x5f   :  { %v594_v1 = vmax.f32 %v530_v62, 0.0  ;;  %1941 = vmatprep.mubr.msk.f32.mxu1 %vm601_vm1, %v593_v63 }
  0x61   :  { %1942 = vmatmul.mubr.msk.f32.gmra.mrb[30].mxu1 %vm601_vm1, %v594_v1 }
  0xe2   :  { %v1844_v3 = vpop.f32.mrb[0].mxu0 }
  0xe3   :  { %v726_v4 = vadd.f32 %v1844_v3, %v2820_v2  ;;  %v720_v6 = vpop.f32.mrb[1].mxu0 }
  0xe4   :  { %v721_v8 = vadd.f32 %v2820_v2, %v720_v6 }
  0xe5   :  { %v800_v10 = vmax.f32 %v726_v4, 0.0 }
  0xe6   :  { %v1870_v5 = vpop.f32.mrb[0].mxu1  ;;  %v799_v13 = vmax.f32 %v721_v8, 0.0 }
  0xe7   :  { %v935_v7 = vadd.f32 %v1870_v5, %v2820_v2  ;;  %v929_v9 = vpop.f32.mrb[1].mxu1 }
  0xe8   :  { %v930_v11 = vadd.f32 %v2820_v2, %v929_v9  ;;  %v1847_v16 = vpop.f32.mrb[2].mxu0 }
  0xe9   :  { %v1009_v12 = vmax.f32 %v935_v7, 0.0  ;;  %v736_v18 = vadd.f32 %v1847_v16, %v2820_v2  ;;  %v730_v20 = vpop.f32.mrb[3].mxu0 }
  0xea   :  { %v1008_v14 = vmax.f32 %v930_v11, 0.0  ;;  %v731_v22 = vadd.f32 %v2820_v2, %v730_v20 }
  0xeb   :  { %v2826_v15 = vmax.f32 %v800_v10, %v1009_v12  ;;  %v1873_v19 = vpop.f32.mrb[2].mxu1  ;;  %v802_v24 = vmax.f32 %v736_v18, 0.0 }
  0xec   :  { %v2828_v17 = vmax.f32 %v799_v13, %v1008_v14  ;;  %v945_v21 = vadd.f32 %v1873_v19, %v2820_v2  ;;  %v939_v23 = vpop.f32.mrb[3].mxu1  ;;  %v801_v27 = vmax.f32 %v731_v22, 0.0  ;;  %v1850_v29 = vpop.f32.mrb[4].mxu0 }
  0xed   :  { %v940_v25 = vadd.f32 %v2820_v2, %v939_v23  ;;  %v746_v31 = vadd.f32 %v1850_v29, %v2820_v2  ;;  %v740_v32 = vpop.f32.mrb[5].mxu0 }
  0xee   :  { %v1011_v26 = vmax.f32 %v945_v21, 0.0  ;;  %v741_v35 = vadd.f32 %v2820_v2, %v740_v32 }
  0xef   :  { %v1010_v28 = vmax.f32 %v940_v25, 0.0  ;;  %v1876_v0 = vpop.f32.mrb[4].mxu1  ;;  %v804_v37 = vmax.f32 %v746_v31, 0.0 }
  0xf0   :  { %v2834_v30 = vmax.f32 %v802_v24, %v1011_v26  ;;  %v955_v34 = vadd.f32 %v1876_v0, %v2820_v2  ;;  %v949_v36 = vpop.f32.mrb[5].mxu1  ;;  %v803_v40 = vmax.f32 %v741_v35, 0.0 }
  0xf1   :  { %v2837_v33 = vmax.f32 %v801_v27, %v1010_v28  ;;  %v950_v38 = vadd.f32 %v2820_v2, %v949_v36 }
  0xf2   :  { %v1013_v39 = vmax.f32 %v955_v34, 0.0  ;;  %v1853_v42 = vpop.f32.mrb[6].mxu0 }
  0xf3   :  { %v1012_v41 = vmax.f32 %v950_v38, 0.0  ;;  %v756_v44 = vadd.f32 %v1853_v42, %v2820_v2  ;;  %v750_v46 = vpop.f32.mrb[7].mxu0 }
  0xf4   :  { %v2842_v43 = vmax.f32 %v804_v37, %v1013_v39  ;;  %v1879_v45 = vpop.f32.mrb[6].mxu1  ;;  %v751_v49 = vadd.f32 %v2820_v2, %v750_v46 }
  0xf5   :  { %v2845_v47 = vmax.f32 %v803_v40, %v1012_v41  ;;  %v965_v48 = vadd.f32 %v1879_v45, %v2820_v2  ;;  %v959_v50 = vpop.f32.mrb[7].mxu1  ;;  %v806_v51 = vmax.f32 %v756_v44, 0.0 }
  0xf6   :  { %v960_v52 = vadd.f32 %v2820_v2, %v959_v50  ;;  %v805_v54 = vmax.f32 %v751_v49, 0.0 }
  0xf7   :  { %v1015_v53 = vmax.f32 %v965_v48, 0.0  ;;  %v1856_v56 = vpop.f32.mrb[8].mxu0 }
  0xf8   :  { %v1014_v55 = vmax.f32 %v960_v52, 0.0  ;;  %v766_v58 = vadd.f32 %v1856_v56, %v2820_v2  ;;  %v760_v59 = vpop.f32.mrb[9].mxu0 }
  0xf9   :  { %v2850_v57 = vmax.f32 %v806_v51, %v1015_v53  ;;  %v761_v62 = vadd.f32 %v2820_v2, %v760_v59 }
  0xfa   :  { %v2853_v60 = vmax.f32 %v805_v54, %v1014_v55  ;;  %v808_v63 = vmax.f32 %v766_v58, 0.0 }
  0xfb   :  { %v1882_v61 = vpop.f32.mrb[8].mxu1  ;;  %v807_v4 = vmax.f32 %v761_v62, 0.0 }
  0xfc   :  { %v975_v1 = vadd.f32 %v1882_v61, %v2820_v2  ;;  %v969_v3 = vpop.f32.mrb[9].mxu1  ;;  %v1859_v8 = vpop.f32.mrb[10].mxu0 }
  0xfd   :  { %v970_v5 = vadd.f32 %v2820_v2, %v969_v3  ;;  %v776_v10 = vadd.f32 %v1859_v8, %v2820_v2  ;;  %v770_v12 = vpop.f32.mrb[11].mxu0 }
  0xfe   :  { %v1017_v6 = vmax.f32 %v975_v1, 0.0  ;;  %v771_v16 = vadd.f32 %v2820_v2, %v770_v12 }
  0xff   :  { %v1016_v7 = vmax.f32 %v970_v5, 0.0  ;;  %v1885_v11 = vpop.f32.mrb[10].mxu1  ;;  %v810_v19 = vmax.f32 %v776_v10, 0.0 }
 0x100   :  { %v2858_v9 = vmax.f32 %v808_v63, %v1017_v6  ;;  %v985_v14 = vadd.f32 %v1885_v11, %v2820_v2  ;;  %v979_v18 = vpop.f32.mrb[11].mxu1  ;;  %v809_v22 = vmax.f32 %v771_v16, 0.0 }
 0x101   :  { %v2861_v13 = vmax.f32 %v807_v4, %v1016_v7  ;;  %v980_v20 = vadd.f32 %v2820_v2, %v979_v18 }
 0x102   :  { %v1019_v21 = vmax.f32 %v985_v14, 0.0  ;;  %v1862_v24 = vpop.f32.mrb[12].mxu0 }
 0x103   :  { %v1018_v23 = vmax.f32 %v980_v20, 0.0  ;;  %v786_v26 = vadd.f32 %v1862_v24, %v2820_v2  ;;  %v780_v28 = vpop.f32.mrb[13].mxu0 }
 0x104   :  { %v2866_v25 = vmax.f32 %v810_v19, %v1019_v21  ;;  %v1888_v27 = vpop.f32.mrb[12].mxu1  ;;  %v781_v0 = vadd.f32 %v2820_v2, %v780_v28 }
 0x105   :  { %v2869_v29 = vmax.f32 %v809_v22, %v1018_v23  ;;  %v995_v31 = vadd.f32 %v1888_v27, %v2820_v2  ;;  %v989_v32 = vpop.f32.mrb[13].mxu1  ;;  %v812_v34 = vmax.f32 %v786_v26, 0.0 }
 0x106   :  { %v990_v35 = vadd.f32 %v2820_v2, %v989_v32  ;;  %v811_v37 = vmax.f32 %v781_v0, 0.0 }
 0x107   :  { %v1021_v36 = vmax.f32 %v995_v31, 0.0  ;;  %v1865_v39 = vpop.f32.mrb[14].mxu0 }
 0x108   :  { %v1020_v38 = vmax.f32 %v990_v35, 0.0  ;;  %v796_v41 = vadd.f32 %v1865_v39, %v2820_v2  ;;  %v790_v42 = vpop.f32.mrb[15].mxu0 }
 0x109   :  { %v2874_v40 = vmax.f32 %v812_v34, %v1021_v36  ;;  %v791_v46 = vadd.f32 %v2820_v2, %v790_v42 }
 0x10a   :  { %v2877_v44 = vmax.f32 %v811_v37, %v1020_v38  ;;  %v814_v48 = vmax.f32 %v796_v41, 0.0 }
 0x10b   :  { %v1891_v45 = vpop.f32.mrb[14].mxu1  ;;  %v813_v51 = vmax.f32 %v791_v46, 0.0  ;;  %v1896_v53 = vpop.f32.mrb[16].mxu0 }
 0x10c   :  { %v1005_v49 = vadd.f32 %v1891_v45, %v2820_v2  ;;  %v999_v50 = vpop.f32.mrb[15].mxu1  ;;  %v1160_v55 = vadd.f32 %v1896_v53, %v2820_v2  ;;  %v1154_v56 = vpop.f32.mrb[17].mxu0 }
 0x10d   :  { %v1000_v52 = vadd.f32 %v2820_v2, %v999_v50  ;;  %v1155_v59 = vadd.f32 %v2820_v2, %v1154_v56 }
 0x10e   :  { %v1023_v54 = vmax.f32 %v1005_v49, 0.0  ;;  %v1234_v62 = vmax.f32 %v1160_v55, 0.0 }
 0x10f   :  { %v1022_v58 = vmax.f32 %v1000_v52, 0.0  ;;  %v1922_v63 = vpop.f32.mrb[16].mxu1  ;;  %v1233_v3 = vmax.f32 %v1155_v59, 0.0 }
 0x110   :  { %v2884_v61 = vmax.f32 %v814_v48, %v1023_v54  ;;  %v1385_v4 = vadd.f32 %v1922_v63, %v2820_v2  ;;  %v1379_v5 = vpop.f32.mrb[17].mxu1  ;;  %v1250_v6 = vmax.f32 %v2826_v15, %v1234_v62 }
 0x111   :  { %v2886_v1 = vmax.f32 %v813_v51, %v1022_v58  ;;  %v1380_v7 = vadd.f32 %v2820_v2, %v1379_v5  ;;  %v1249_v8 = vmax.f32 %v2828_v17, %v1233_v3  ;;  %v1899_v11 = vpop.f32.mrb[18].mxu0 }
 0x112   :  { %v1459_v10 = vmax.f32 %v1385_v4, 0.0  ;;  %v1170_v14 = vadd.f32 %v1899_v11, %v2820_v2  ;;  %v1164_v16 = vpop.f32.mrb[19].mxu0 }
 0x113   :  { %v1458_v12 = vmax.f32 %v1380_v7, 0.0  ;;  %v1165_v19 = vadd.f32 %v2820_v2, %v1164_v16 }
 0x114   :  { %v1475_v18 = vmax.f32 %v1250_v6, %v1459_v10  ;;  %v1236_v22 = vmax.f32 %v1170_v14, 0.0 }
 0x115   :  { %v1925_v20 = vpop.f32.mrb[18].mxu1  ;;  %v1474_v21 = vmax.f32 %v1249_v8, %v1458_v12  ;;  %v1235_v17 = vmax.f32 %v1165_v19, 0.0  ;;  %v1902_v28 = vpop.f32.mrb[20].mxu0 }
 0x116   :  { %v1395_v23 = vadd.f32 %v1925_v20, %v2820_v2  ;;  %v1389_v15 = vpop.f32.mrb[19].mxu1  ;;  %1492 = vst.msk [vmem:[%s3001_s3 + $0x8] sm:$0xff] %vm1490_vm2, %v1475_v18  ;;  %v1252_v26 = vmax.f32 %v2834_v30, %v1236_v22  ;;  %v1180_v32 = vadd.f32 %v1902_v28, %v2820_v2  ;;  %v1174_v34 = vpop.f32.mrb[21].mxu0 }
 0x117   :  { %v1390_v24 = vadd.f32 %v2820_v2, %v1389_v15  ;;  %1491 = vst.msk [vmem:[%s3001_s3] sm:$0xff] %vm1490_vm2, %v1474_v21  ;;  %v1251_v31 = vmax.f32 %v2837_v33, %v1235_v17  ;;  %v1175_v36 = vadd.f32 %v2820_v2, %v1174_v34 }
 0x118   :  { %v1461_v27 = vmax.f32 %v1395_v23, 0.0  ;;  %v1238_v38 = vmax.f32 %v1180_v32, 0.0 }
 0x119   :  { %v1460_v0 = vmax.f32 %v1390_v24, 0.0  ;;  %v1237_v39 = vmax.f32 %v1175_v36, 0.0  ;;  %v1928_v30 = vpop.f32.mrb[20].mxu1 }
 0x11a   :  { %v1477_v35 = vmax.f32 %v1252_v26, %v1461_v27  ;;  %v1254_v33 = vmax.f32 %v2842_v43, %v1238_v38  ;;  %v1405_v41 = vadd.f32 %v1928_v30, %v2820_v2  ;;  %v1399_v42 = vpop.f32.mrb[21].mxu1 }
 0x11b   :  { %v1476_v37 = vmax.f32 %v1251_v31, %v1460_v0  ;;  %v1253_v46 = vmax.f32 %v2845_v47, %v1237_v39  ;;  %v1400_v48 = vadd.f32 %v2820_v2, %v1399_v42 }
 0x11c   :  { %1494 = vst.msk [vmem:[%s3001_s3 + $0x18] sm:$0xff] %vm1490_vm2, %v1477_v35  ;;  %v1905_v45 = vpop.f32.mrb[22].mxu0  ;;  %v1463_v51 = vmax.f32 %v1405_v41, 0.0 }
 0x11d   :  { %1493 = vst.msk [vmem:[%s3001_s3 + $0x10] sm:$0xff] %vm1490_vm2, %v1476_v37  ;;  %v1190_v49 = vadd.f32 %v1905_v45, %v2820_v2  ;;  %v1184_v50 = vpop.f32.mrb[23].mxu0  ;;  %v1462_v53 = vmax.f32 %v1400_v48, 0.0 }
 0x11e   :  { %v1185_v52 = vadd.f32 %v2820_v2, %v1184_v50  ;;  %v1479_v56 = vmax.f32 %v1254_v33, %v1463_v51 }
 0x11f   :  { %v1240_v54 = vmax.f32 %v1190_v49, 0.0  ;;  %v1478_v62 = vmax.f32 %v1253_v46, %v1462_v53 }
 0x120   :  { %v1931_v55 = vpop.f32.mrb[22].mxu1  ;;  %v1239_v58 = vmax.f32 %v1185_v52, 0.0  ;;  %1496 = vst.msk [vmem:[%s3001_s3 + $0x28] sm:$0xff] %vm1490_vm2, %v1479_v56 }
 0x121   :  { %v1415_v43 = vadd.f32 %v1931_v55, %v2820_v2  ;;  %v1409_v59 = vpop.f32.mrb[23].mxu1  ;;  %v1256_v63 = vmax.f32 %v2850_v57, %v1240_v54  ;;  %v1908_v5 = vpop.f32.mrb[24].mxu0  ;;  %1495 = vst.msk [vmem:[%s3001_s3 + $0x20] sm:$0xff] %vm1490_vm2, %v1478_v62 }
 0x122   :  { %v1410_v47 = vadd.f32 %v2820_v2, %v1409_v59  ;;  %v1255_v3 = vmax.f32 %v2853_v60, %v1239_v58  ;;  %v1200_v7 = vadd.f32 %v1908_v5, %v2820_v2  ;;  %v1194_v57 = vpop.f32.mrb[25].mxu0 }
 0x123   :  { %v1465_v4 = vmax.f32 %v1415_v43, 0.0  ;;  %v1195_v10 = vadd.f32 %v2820_v2, %v1194_v57 }
 0x124   :  { %v1464_v6 = vmax.f32 %v1410_v47, 0.0  ;;  %v1242_v12 = vmax.f32 %v1200_v7, 0.0  ;;  %v1934_v14 = vpop.f32.mrb[24].mxu1 }
 0x125   :  { %v1481_v8 = vmax.f32 %v1256_v63, %v1465_v4  ;;  %v1241_v60 = vmax.f32 %v1195_v10, 0.0  ;;  %v1425_v16 = vadd.f32 %v1934_v14, %v2820_v2  ;;  %v1419_v18 = vpop.f32.mrb[25].mxu1 }
 0x126   :  { %v1480_v11 = vmax.f32 %v1255_v3, %v1464_v6  ;;  %v1258_v19 = vmax.f32 %v2858_v9, %v1242_v12  ;;  %v1420_v20 = vadd.f32 %v2820_v2, %v1419_v18 }
 0x127   :  { %1498 = vst.msk [vmem:[%s3001_s3 + $0x38] sm:$0xff] %vm1490_vm2, %v1481_v8  ;;  %v1911_v21 = vpop.f32.mrb[26].mxu0  ;;  %v1257_v22 = vmax.f32 %v2861_v13, %v1241_v60  ;;  %v1467_v23 = vmax.f32 %v1425_v16, 0.0 }
 0x128   :  { %1497 = vst.msk [vmem:[%s3001_s3 + $0x30] sm:$0xff] %vm1490_vm2, %v1480_v11  ;;  %v1210_v15 = vadd.f32 %v1911_v21, %v2820_v2  ;;  %v1204_v17 = vpop.f32.mrb[27].mxu0  ;;  %v1466_v24 = vmax.f32 %v1420_v20, 0.0 }
 0x129   :  { %v1205_v26 = vadd.f32 %v2820_v2, %v1204_v17  ;;  %v1483_v27 = vmax.f32 %v1258_v19, %v1467_v23  ;;  %v1937_v31 = vpop.f32.mrb[26].mxu1 }
 0x12a   :  { %v1244_v28 = vmax.f32 %v1210_v15, 0.0  ;;  %v1482_v0 = vmax.f32 %v1257_v22, %v1466_v24  ;;  %v1435_v34 = vadd.f32 %v1937_v31, %v2820_v2  ;;  %v1429_v9 = vpop.f32.mrb[27].mxu1 }
 0x12b   :  { %v1243_v32 = vmax.f32 %v1205_v26, 0.0  ;;  %1500 = vst.msk [vmem:[%s3001_s3 + $0x48] sm:$0xff] %vm1490_vm2, %v1483_v27  ;;  %v1430_v35 = vadd.f32 %v2820_v2, %v1429_v9  ;;  %v1914_v36 = vpop.f32.mrb[28].mxu0 }
 0x12c   :  { %v1260_v13 = vmax.f32 %v2866_v25, %v1244_v28  ;;  %1499 = vst.msk [vmem:[%s3001_s3 + $0x40] sm:$0xff] %vm1490_vm2, %v1482_v0  ;;  %v1469_v38 = vmax.f32 %v1435_v34, 0.0  ;;  %v1220_v39 = vadd.f32 %v1914_v36, %v2820_v2  ;;  %v1214_v30 = vpop.f32.mrb[29].mxu0 }
 0x12d   :  { %v1259_v37 = vmax.f32 %v2869_v29, %v1243_v32  ;;  %v1468_v33 = vmax.f32 %v1430_v35, 0.0  ;;  %v1215_v41 = vadd.f32 %v2820_v2, %v1214_v30 }
 0x12e   :  { %v1485_v42 = vmax.f32 %v1260_v13, %v1469_v38  ;;  %v1246_v45 = vmax.f32 %v1220_v39, 0.0 }
 0x12f   :  { %v1484_v25 = vmax.f32 %v1259_v37, %v1468_v33  ;;  %v1245_v46 = vmax.f32 %v1215_v41, 0.0  ;;  %v1940_v48 = vpop.f32.mrb[28].mxu1 }
 0x130   :  { %1502 = vst.msk [vmem:[%s3001_s3 + $0x58] sm:$0xff] %vm1490_vm2, %v1485_v42  ;;  %v1262_v49 = vmax.f32 %v2874_v40, %v1246_v45  ;;  %v1445_v29 = vadd.f32 %v1940_v48, %v2820_v2  ;;  %v1439_v50 = vpop.f32.mrb[29].mxu1 }
 0x131   :  { %1501 = vst.msk [vmem:[%s3001_s3 + $0x50] sm:$0xff] %vm1490_vm2, %v1484_v25  ;;  %v1261_v51 = vmax.f32 %v2877_v44, %v1245_v46  ;;  %v1440_v52 = vadd.f32 %v2820_v2, %v1439_v50  ;;  %v1917_v53 = vpop.f32.mrb[30].mxu0 }
 0x132   :  { %v1471_v54 = vmax.f32 %v1445_v29, 0.0  ;;  %v1230_v55 = vadd.f32 %v1917_v53, %v2820_v2  ;;  %v1224_v56 = vpop.f32.mrb[31].mxu0 }
 0x133   :  { %v1470_v58 = vmax.f32 %v1440_v52, 0.0  ;;  %v1225_v40 = vadd.f32 %v2820_v2, %v1224_v56 }
 0x134   :  { %v1943_v43 = vpop.f32.mrb[30].mxu1  ;;  %v1487_v59 = vmax.f32 %v1262_v49, %v1471_v54  ;;  %v1248_v62 = vmax.f32 %v1230_v55, 0.0 }
 0x135   :  { %v1455_v63 = vadd.f32 %v1943_v43, %v2820_v2  ;;  %v1449_v47 = vpop.f32.mrb[31].mxu1  ;;  %v1486_v3 = vmax.f32 %v1261_v51, %v1470_v58  ;;  %v1247_v4 = vmax.f32 %v1225_v40, 0.0 }
 0x136   :  { %v1450_v44 = vadd.f32 %v2820_v2, %v1449_v47  ;;  %1504 = vst.msk [vmem:[%s3001_s3 + $0x68] sm:$0xff] %vm1490_vm2, %v1487_v59  ;;  %v1264_v5 = vmax.f32 %v2884_v61, %v1248_v62 }
 0x137   :  { %v1473_v6 = vmax.f32 %v1455_v63, 0.0  ;;  %1503 = vst.msk [vmem:[%s3001_s3 + $0x60] sm:$0xff] %vm1490_vm2, %v1486_v3  ;;  %v1263_v7 = vmax.f32 %v2886_v1, %v1247_v4 }
 0x138   :  { %v1472_v57 = vmax.f32 %v1450_v44, 0.0 }
 0x139   :  { %v1489_v8 = vmax.f32 %v1264_v5, %v1473_v6 }
 0x13a   :  { %v1488_v10 = vmax.f32 %v1263_v7, %v1472_v57 }
 0x13b   :  { %1506 = vst.msk [vmem:[%s3001_s3 + $0x78] sm:$0xff] %vm1490_vm2, %v1489_v8 }
 0x13c   :  { %1505 = vst.msk [vmem:[%s3001_s3 + $0x70] sm:$0xff] %vm1490_vm2, %v1488_v10 }

// kernel: unet_forward.10
= control target key start
LH: loop header
LB: loop body
LE: loop exit
PB: predicated region body
PF: predicated region fallthrough
CT: control target
= control target key end

     0   :  { %v137_v0 = vmov 0.0|0.0   ;;  %vm138_vm0 = vmmov 0   ;;  %v139_v3 = vmov 0.0   ;;  %vm35_vm1 = vcmask 130048   ;;  %s184_s1 = inlined_call_operand.vmem [shape: f32[16,32], index: 1, kind: input, shape index: {}]   ;;  %s185_s0 = inlined_call_operand.vmem [shape: f32[4,1,2,16], index: 0, kind: input, shape index: {}]   ;;  %s186_s2 = inlined_call_operand.vmem [shape: f32[1,32], index: 2, kind: input, shape index: {}]   ;;  %s187_s3 = inlined_call_operand.vmem [shape: f32[2,32], index: 3, kind: output, shape index: {}]  }
   0x1   :  { %131 = vmatprep.subr.bf16.mxu0 %v137_v0  ;;  %v14_v1 = vld [vmem:[%s184_s1] sm:$0xff]  ;;  %v15_v2 = vld [vmem:[%s184_s1 + $0x8] sm:$0xff]  ;;  %128 = vmatprep.mubr.msk.f32.mxu0 %vm138_vm0, %v139_v3  ;;  %vm110_vm2 = vcmask 254976  }
   0x2   :  { %v17_v4 = vld [vmem:[%s185_s0] sm:$0x3]  ;;  %v132_v5 = vpack.c.bf16 %v15_v2, %v14_v1  ;;  %v116_v6 = vld [vmem:[%s185_s0 + $0x2] sm:$0x3]  ;;  %v117_v7 = vld [vmem:[%s185_s0 + $0x4] sm:$0x3] }
   0x3   :  { %v20_v8 = vadd.f32 %v116_v6, %v17_v4  ;;  %v118_v9 = vld [vmem:[%s185_s0 + $0x6] sm:$0x3]  ;;  %v119_v14 = vld [vmem:[%s186_s2] ss:$0 sm:$0xff] }
   0x4   :  { %133 = vmatpush3.bf16.msra.mxu0 %v132_v5 }
   0x5   :  { %v23_v10 = vadd.f32 %v117_v7, %v20_v8 }
   0x7   :  { %v26_v11 = vadd.f32 %v118_v9, %v23_v10 }
   0x9   :  { %v27_v12 = vmul.f32 0.5, %v26_v11 }
   0xb   :  { %v28_v13 = vmax.f32 %v27_v12, 0.0 }
   0xd   :  { %129 = vmatmul.mubr.msk.f32.vlgmr.msra.gmra.mrb[0].mxu0 %vm35_vm1, %v28_v13 }
  0xe0   :  { %v105_v15 = vpop.f32.mrb[0].mxu0 }
  0xe1   :  { %v106_v16 = vadd.f32 %v119_v14, %v105_v15  ;;  %v130_v17 = vpop.f32.mrb[1].mxu0 }
  0xe3   :  { %v109_v18 = vmax.f32 %v106_v16, 0.0 }
  0xe5   :  { %111 = vst.msk [vmem:[%s187_s3] sm:$0x3] %vm110_vm2, %v109_v18 }

// kernel: unet_forward.11
= control target key start
LH: loop header
LB: loop body
LE: loop exit
PB: predicated region body
PF: predicated region fallthrough
CT: control target
= control target key end

     0   :  { %v256_v3 = vmov 0.0   ;;  %vm121_vm0 = vcmask 261120   ;;  %vm46_vm1 = vcmask 523264   ;;  %v198_v39 = vlaneseq  ;;  %s371_s3 = inlined_call_operand.vmem [shape: f32[64,256], index: 3, kind: input, shape index: {}]   ;;  %s372_s2 = inlined_call_operand.vmem [shape: f32[32,256], index: 2, kind: input, shape index: {}]   ;;  %s373_s0 = inlined_call_operand.vmem [shape: f32[2,32], index: 0, kind: input, shape index: {}]   ;;  %s374_s1 = inlined_call_operand.vmem [shape: f32[2,64], index: 1, kind: input, shape index: {}]   ;;  %s375_s4 = inlined_call_operand.vmem [shape: f32[1,256], index: 4, kind: input, shape index: {}]   ;;  %s376_s5 = inlined_call_operand.vmem [shape: f32[2,256], index: 5, kind: output, shape index: {}]  }
   0x1   :  { %v31_v0 = vld [vmem:[%s371_s3 + $0x8] sm:$0xff]  ;;  %v33_v1 = vld [vmem:[%s371_s3 + $0x18] sm:$0xff]  ;;  %v30_v2 = vld [vmem:[%s371_s3] sm:$0xff]  ;;  %189 = vmatprep.mubr.f32.mxu0 %v256_v3  ;;  %114 = vmatprep.mubr.f32.mxu1 %v256_v3 }
   0x2   :  { %v229_v4 = vpack.c.bf16 %v33_v1, %v31_v0  ;;  %v32_v5 = vld [vmem:[%s371_s3 + $0x10] sm:$0xff]  ;;  %v35_v6 = vld [vmem:[%s371_s3 + $0x28] sm:$0xff]  ;;  %v37_v7 = vld [vmem:[%s371_s3 + $0x38] sm:$0xff]  ;;  %v199_v40 = vshrl.u32 %v198_v39, 7 }
   0x3   :  { %v231_v8 = vpack.c.bf16 %v32_v5, %v30_v2  ;;  %v233_v9 = vpack.c.bf16 %v37_v7, %v35_v6  ;;  %v34_v10 = vld [vmem:[%s371_s3 + $0x20] sm:$0xff]  ;;  %v36_v11 = vld [vmem:[%s371_s3 + $0x30] sm:$0xff]  ;;  %v22_v12 = vld [vmem:[%s372_s2 + $0x8] sm:$0xff] }
   0x4   :  { %230 = vmatprep.subr.bf16.mxu1 %v229_v4  ;;  %v24_v13 = vld [vmem:[%s372_s2 + $0x18] sm:$0xff]  ;;  %v39_v14 = vld [vmem:[%s371_s3 + $0x48] sm:$0xff]  ;;  %v235_v16 = vpack.c.bf16 %v36_v11, %v34_v10  ;;  %v21_v18 = vld [vmem:[%s372_s2] sm:$0xff]  ;;  %v200_v42 = vsub.s32 0, %v199_v40  ;;  %v204_v45 = vsub.s32 1, %v199_v40 }
   0x5   :  { %v41_v15 = vld [vmem:[%s371_s3 + $0x58] sm:$0xff]  ;;  %232 = vmatpush1.bf16.msra.mxu1 %v231_v8  ;;  %v245_v17 = vpack.c.bf16 %v24_v13, %v22_v12  ;;  %v23_v19 = vld [vmem:[%s372_s2 + $0x10] sm:$0xff]  ;;  %v38_v20 = vld [vmem:[%s371_s3 + $0x40] sm:$0xff] }
   0x6   :  { %234 = vmatprep.subr.bf16.mxu1 %v233_v9  ;;  %v237_v21 = vpack.c.bf16 %v41_v15, %v39_v14  ;;  %v247_v22 = vpack.c.bf16 %v23_v19, %v21_v18  ;;  %v40_v23 = vld [vmem:[%s371_s3 + $0x50] sm:$0xff]  ;;  %v26_v24 = vld [vmem:[%s372_s2 + $0x28] sm:$0xff]  ;;  %v28_v25 = vld [vmem:[%s372_s2 + $0x38] sm:$0xff] }
   0x7   :  { %246 = vmatprep.subr.bf16.mxu0 %v245_v17  ;;  %v249_v26 = vpack.c.bf16 %v28_v25, %v26_v24  ;;  %v43_v27 = vld [vmem:[%s371_s3 + $0x68] sm:$0xff]  ;;  %v45_v28 = vld [vmem:[%s371_s3 + $0x78] sm:$0xff]  ;;  %v25_v29 = vld [vmem:[%s372_s2 + $0x20] sm:$0xff]  ;;  %v239_v31 = vpack.c.bf16 %v40_v23, %v38_v20 }
   0x8   :  { %248 = vmatpush1.bf16.msra.mxu0 %v247_v22  ;;  %v27_v30 = vld [vmem:[%s372_s2 + $0x30] sm:$0xff]  ;;  %v241_v33 = vpack.c.bf16 %v45_v28, %v43_v27  ;;  %v42_v34 = vld [vmem:[%s371_s3 + $0x60] sm:$0xff] }
   0x9   :  { %236 = vmatpush1.bf16.msra.mxu1 %v235_v16  ;;  %250 = vmatprep.subr.bf16.mxu0 %v249_v26  ;;  %v251_v32 = vpack.c.bf16 %v27_v30, %v25_v29  ;;  %v44_v35 = vld [vmem:[%s371_s3 + $0x70] sm:$0xff]  ;;  %v20_v36 = vld [vmem:[%s373_s0] sm:$0x3] }
   0xa   :  { %238 = vmatprep.subr.bf16.mxu1 %v237_v21  ;;  %v243_v37 = vpack.c.bf16 %v44_v35, %v42_v34  ;;  %v29_v38 = vld [vmem:[%s374_s1] sm:$0x3] }
   0xb   :  { %v196_v43 = vld [vmem:[%s375_s4] sm:$0x3] }
   0xc   :  { %252 = vmatpush1.bf16.msra.mxu0 %v251_v32  ;;  %v201_v46 = vrot.slane %v196_v43, %v200_v42  ;;  %v205_v48 = vrot.slane %v196_v43, %v204_v45 }
   0xd   :  { %240 = vmatpush1.bf16.msra.mxu1 %v239_v31 }
   0xe   :  { %242 = vmatprep.subr.bf16.mxu1 %v241_v33 }
   0xf   :  { %227 = vmatmul.mubr.msk.f32.vlgmr.msra.gmra.mrb[0].mxu0 %vm121_vm0, %v20_v36 }
  0x11   :  { %244 = vmatpush1.bf16.msra.mxu1 %v243_v37 }
  0x14   :  { %226 = vmatmul.mubr.msk.f32.vlgmr.msra.gmra.mrb[0].mxu1 %vm46_vm1, %v29_v38 }
  0xe2   :  { %v191_v41 = vpop.f32.mrb[0].mxu0 }
  0xe3   :  { %v193_v44 = vpop.f32.mrb[1].mxu0 }
  0xe7   :  { %v116_v47 = vpop.f32.mrb[0].mxu1 }
  0xe8   :  { %v192_v49 = vadd.f32 %v191_v41, %v116_v47  ;;  %v118_v50 = vpop.f32.mrb[1].mxu1 }
  0xe9   :  { %v194_v51 = vadd.f32 %v193_v44, %v118_v50 }
  0xea   :  { %v208_v52 = vadd.f32 %v201_v46, %v192_v49 }
  0xeb   :  { %v209_v53 = vadd.f32 %v205_v48, %v194_v51 }
  0xed   :  { %v212_v54 = vcombine.low %v208_v52, %v209_v53 }
  0xef   :  { %228 = vst.sshfl [vmem:[%s376_s5] sm:$0x33 pattern:$0x76325410] %v212_v54 }

// kernel: unet_forward.12
= control target key start
LH: loop header
LB: loop body
LE: loop exit
PB: predicated region body
PF: predicated region fallthrough
CT: control target
= control target key end

     0   :  { %vm132_vm0 = vcmask 130048   ;;  %vm34_vm1 = vcmask 261120   ;;  %s407_s3 = inlined_call_operand.vmem [shape: f32[32,128], index: 3, kind: input, shape index: {}]   ;;  %s408_s2 = inlined_call_operand.vmem [shape: f32[16,128], index: 2, kind: input, shape index: {}]   ;;  %s409_s0 = inlined_call_operand.vmem [shape: f32[32,16], index: 0, kind: input, shape index: {}]   ;;  %s410_s1 = inlined_call_operand.vmem [shape: f32[32,32], index: 1, kind: input, shape index: {}]   ;;  %s411_s4 = inlined_call_operand.vmem [shape: f32[1,128], index: 4, kind: input, shape index: {}]   ;;  %s412_s5 = inlined_call_operand.vmem [shape: f32[32,128], index: 5, kind: output, shape index: {}]  }
   0x1   :  { %v30_v0 = vld [vmem:[%s407_s3] sm:$0xff]  ;;  %v31_v1 = vld [vmem:[%s407_s3 + $0x8] sm:$0xff]  ;;  %v32_v5 = vld [vmem:[%s407_s3 + $0x10] sm:$0xff] }
   0x2   :  { %v24_v2 = vld [vmem:[%s408_s2] sm:$0xff]  ;;  %v296_v3 = vpack.c.bf16 %v31_v1, %v30_v0  ;;  %v25_v4 = vld [vmem:[%s408_s2 + $0x8] sm:$0xff]  ;;  %v33_v6 = vld [vmem:[%s407_s3 + $0x18] sm:$0xff] }
   0x3   :  { %v304_v7 = vpack.c.bf16 %v25_v4, %v24_v2  ;;  %v300_v8 = vpack.c.bf16 %v33_v6, %v32_v5  ;;  %v20_v9 = vld [vmem:[%s409_s0] sm:$0xff]  ;;  %v21_v11 = vld [vmem:[%s409_s0 + $0x8] sm:$0xff]  ;;  %v22_v12 = vld [vmem:[%s409_s0 + $0x10] sm:$0xff] }
   0x4   :  { %297 = vmatprep.subr.bf16.mxu1 %v296_v3  ;;  %290 = vmatprep.mubr.msk.f32.mxu0 %vm132_vm0, %v20_v9  ;;  %v26_v10 = vld [vmem:[%s410_s1] sm:$0xff]  ;;  %v27_v13 = vld [vmem:[%s410_s1 + $0x8] sm:$0xff]  ;;  %v28_v14 = vld [vmem:[%s410_s1 + $0x10] sm:$0xff] }
   0x5   :  { %299 = vmatpush3.bf16.msra.mxu1 %v296_v3  ;;  %305 = vmatprep.subr.bf16.mxu0 %v304_v7  ;;  %v23_v15 = vld [vmem:[%s409_s0 + $0x18] sm:$0xff]  ;;  %v257_v20 = vld [vmem:[%s411_s4] ss:$0 sm:$0xff] }
   0x6   :  { %301 = vmatprep.subr.bf16.mxu1 %v300_v8  ;;  %307 = vmatpush3.bf16.msra.mxu0 %v304_v7  ;;  %v29_v16 = vld [vmem:[%s410_s1 + $0x18] sm:$0xff] }
   0x7   :  { %280 = vmatprep.mubr.msk.f32.mxu1 %vm34_vm1, %v26_v10 }
   0x9   :  { %303 = vmatpush3.bf16.msra.mxu1 %v300_v8  ;;  %291 = vmatmul.mubr.msk.f32.vlgmr.msra.gmra.mrb[0].mxu0 %vm132_vm0, %v21_v11 }
   0xa   :  { %293 = vmatprep.mubr.msk.f32.mxu0 %vm132_vm0, %v22_v12 }
   0xc   :  { %281 = vmatmul.mubr.msk.f32.vlgmr.msra.gmra.mrb[0].mxu1 %vm34_vm1, %v27_v13 }
   0xd   :  { %283 = vmatprep.mubr.msk.f32.mxu1 %vm34_vm1, %v28_v14  ;;  %294 = vmatmul.mubr.msk.f32.gmra.mrb[2].mxu0 %vm132_vm0, %v23_v15 }
  0x10   :  { %284 = vmatmul.mubr.msk.f32.gmra.mrb[2].mxu1 %vm34_vm1, %v29_v16 }
  0xdc   :  { %v292_v17 = vpop.f32.mrb[0].mxu0 }
  0xdd   :  { %v211_v18 = vpop.f32.mrb[1].mxu0 }
  0xdf   :  { %v282_v19 = vpop.f32.mrb[0].mxu1 }
  0xe0   :  { %v217_v21 = vadd.f32 %v292_v17, %v282_v19  ;;  %v113_v22 = vpop.f32.mrb[1].mxu1  ;;  %v295_v23 = vpop.f32.mrb[2].mxu0 }
  0xe1   :  { %v212_v24 = vadd.f32 %v211_v18, %v113_v22  ;;  %v221_v25 = vpop.f32.mrb[3].mxu0 }
  0xe2   :  { %v238_v26 = vadd.f32 %v257_v20, %v217_v21 }
  0xe3   :  { %v237_v27 = vadd.f32 %v257_v20, %v212_v24  ;;  %v285_v28 = vpop.f32.mrb[2].mxu1 }
  0xe4   :  { %242 = vst [vmem:[%s412_s5 + $0x8] sm:$0xff] %v238_v26  ;;  %v227_v29 = vadd.f32 %v295_v23, %v285_v28  ;;  %v123_v30 = vpop.f32.mrb[3].mxu1 }
  0xe5   :  { %241 = vst [vmem:[%s412_s5] sm:$0xff] %v237_v27  ;;  %v222_v31 = vadd.f32 %v221_v25, %v123_v30 }
  0xe6   :  { %v240_v32 = vadd.f32 %v257_v20, %v227_v29 }
  0xe7   :  { %v239_v33 = vadd.f32 %v257_v20, %v222_v31 }
  0xe8   :  { %244 = vst [vmem:[%s412_s5 + $0x18] sm:$0xff] %v240_v32 }
  0xe9   :  { %243 = vst [vmem:[%s412_s5 + $0x10] sm:$0xff] %v239_v33 }

// kernel: unet_forward.13
= control target key start
LH: loop header
LB: loop body
LE: loop exit
PB: predicated region body
PF: predicated region fallthrough
CT: control target
= control target key end

     0   :  { %vm86_vm0 = vcmask 64512   ;;  %vm664_vm1 = vcmask 261120   ;;  %s1567_s1 = inlined_call_operand.vmem [shape: f32[8,32], index: 1, kind: input, shape index: {}]   ;;  %s1568_s0 = inlined_call_operand.vmem [shape: f32[512,8], index: 0, kind: input, shape index: {}]   ;;  %s1569_s2 = inlined_call_operand.vmem [shape: f32[1,32], index: 2, kind: input, shape index: {}]   ;;  %s1570_s3 = inlined_call_operand.vmem [shape: f32[512,32], index: 3, kind: output, shape index: {}]  }
   0x1   :  { %v78_v0 = vld [vmem:[%s1567_s1] sm:$0xff]  ;;  %v15_v3 = vld [vmem:[%s1568_s0 + $0x8] sm:$0xff]  ;;  %v16_v5 = vld [vmem:[%s1568_s0 + $0x10] sm:$0xff] }
   0x2   :  { %v14_v1 = vld [vmem:[%s1568_s0] sm:$0xff]  ;;  %863 = vmatprep.subr.mxu0 %v78_v0  ;;  %961 = vmatprep.subr.mxu1 %v78_v0  ;;  %v47_v4 = vld [vmem:[%s1568_s0 + $0x108] sm:$0xff]  ;;  %v48_v6 = vld [vmem:[%s1568_s0 + $0x110] sm:$0xff] }
   0x3   :  { %v46_v2 = vld [vmem:[%s1568_s0 + $0x100] sm:$0xff]  ;;  %864 = vmatpush3.msra.mxu0 %v78_v0  ;;  %962 = vmatpush3.msra.mxu1 %v78_v0  ;;  %v17_v7 = vld [vmem:[%s1568_s0 + $0x18] sm:$0xff]  ;;  %v19_v11 = vld [vmem:[%s1568_s0 + $0x28] sm:$0xff] }
   0x4   :  { %865 = vmatprep.mubr.msk.f32.mxu0 %vm86_vm0, %v14_v1  ;;  %913 = vmatprep.mubr.msk.f32.mxu1 %vm86_vm0, %v46_v2  ;;  %v49_v8 = vld [vmem:[%s1568_s0 + $0x118] sm:$0xff]  ;;  %v18_v9 = vld [vmem:[%s1568_s0 + $0x20] sm:$0xff]  ;;  %v51_v12 = vld [vmem:[%s1568_s0 + $0x128] sm:$0xff] }
   0x5   :  { %866 = vmatmul.mubr.msk.f32.vlgmr.msra.gmra.mrb[0].mxu0 %vm86_vm0, %v15_v3  ;;  %914 = vmatmul.mubr.msk.f32.vlgmr.msra.gmra.mrb[0].mxu1 %vm86_vm0, %v47_v4  ;;  %v50_v10 = vld [vmem:[%s1568_s0 + $0x120] sm:$0xff]  ;;  %v20_v13 = vld [vmem:[%s1568_s0 + $0x30] sm:$0xff]  ;;  %v21_v15 = vld [vmem:[%s1568_s0 + $0x38] sm:$0xff] }
   0x6   :  { %868 = vmatprep.mubr.msk.f32.mxu0 %vm86_vm0, %v16_v5  ;;  %916 = vmatprep.mubr.msk.f32.mxu1 %vm86_vm0, %v48_v6  ;;  %v52_v14 = vld [vmem:[%s1568_s0 + $0x130] sm:$0xff]  ;;  %v53_v16 = vld [vmem:[%s1568_s0 + $0x138] sm:$0xff]  ;;  %v22_v17 = vld [vmem:[%s1568_s0 + $0x40] sm:$0xff] }
   0x7   :  { %v54_v18 = vld [vmem:[%s1568_s0 + $0x140] sm:$0xff]  ;;  %v23_v19 = vld [vmem:[%s1568_s0 + $0x48] sm:$0xff]  ;;  %v24_v21 = vld [vmem:[%s1568_s0 + $0x50] sm:$0xff] }
   0x8   :  { %v55_v20 = vld [vmem:[%s1568_s0 + $0x148] sm:$0xff]  ;;  %v56_v22 = vld [vmem:[%s1568_s0 + $0x150] sm:$0xff]  ;;  %v25_v23 = vld [vmem:[%s1568_s0 + $0x58] sm:$0xff] }
   0x9   :  { %869 = vmatmul.mubr.msk.f32.gmra.mrb[2].mxu0 %vm86_vm0, %v17_v7  ;;  %917 = vmatmul.mubr.msk.f32.gmra.mrb[2].mxu1 %vm86_vm0, %v49_v8  ;;  %v57_v24 = vld [vmem:[%s1568_s0 + $0x158] sm:$0xff]  ;;  %v26_v25 = vld [vmem:[%s1568_s0 + $0x60] sm:$0xff]  ;;  %v27_v27 = vld [vmem:[%s1568_s0 + $0x68] sm:$0xff] }
   0xa   :  { %871 = vmatprep.mubr.msk.f32.mxu0 %vm86_vm0, %v18_v9  ;;  %919 = vmatprep.mubr.msk.f32.mxu1 %vm86_vm0, %v50_v10  ;;  %v58_v26 = vld [vmem:[%s1568_s0 + $0x160] sm:$0xff]  ;;  %v59_v28 = vld [vmem:[%s1568_s0 + $0x168] sm:$0xff]  ;;  %v28_v29 = vld [vmem:[%s1568_s0 + $0x70] sm:$0xff] }
   0xb   :  { %v60_v30 = vld [vmem:[%s1568_s0 + $0x170] sm:$0xff]  ;;  %v29_v31 = vld [vmem:[%s1568_s0 + $0x78] sm:$0xff]  ;;  %v30_v33 = vld [vmem:[%s1568_s0 + $0x80] sm:$0xff] }
   0xc   :  { %v61_v32 = vld [vmem:[%s1568_s0 + $0x178] sm:$0xff]  ;;  %v62_v34 = vld [vmem:[%s1568_s0 + $0x180] sm:$0xff]  ;;  %v31_v35 = vld [vmem:[%s1568_s0 + $0x88] sm:$0xff] }
   0xd   :  { %872 = vmatmul.mubr.msk.f32.gmra.mrb[4].mxu0 %vm86_vm0, %v19_v11  ;;  %920 = vmatmul.mubr.msk.f32.gmra.mrb[4].mxu1 %vm86_vm0, %v51_v12  ;;  %v63_v36 = vld [vmem:[%s1568_s0 + $0x188] sm:$0xff]  ;;  %v32_v37 = vld [vmem:[%s1568_s0 + $0x90] sm:$0xff]  ;;  %v33_v39 = vld [vmem:[%s1568_s0 + $0x98] sm:$0xff] }
   0xe   :  { %874 = vmatprep.mubr.msk.f32.mxu0 %vm86_vm0, %v20_v13  ;;  %922 = vmatprep.mubr.msk.f32.mxu1 %vm86_vm0, %v52_v14  ;;  %v64_v38 = vld [vmem:[%s1568_s0 + $0x190] sm:$0xff]  ;;  %v65_v40 = vld [vmem:[%s1568_s0 + $0x198] sm:$0xff]  ;;  %v34_v41 = vld [vmem:[%s1568_s0 + $0xa0] sm:$0xff] }
   0xf   :  { %v66_v42 = vld [vmem:[%s1568_s0 + $0x1a0] sm:$0xff]  ;;  %v35_v43 = vld [vmem:[%s1568_s0 + $0xa8] sm:$0xff]  ;;  %v36_v45 = vld [vmem:[%s1568_s0 + $0xb0] sm:$0xff] }
  0x10   :  { %v67_v44 = vld [vmem:[%s1568_s0 + $0x1a8] sm:$0xff]  ;;  %v68_v46 = vld [vmem:[%s1568_s0 + $0x1b0] sm:$0xff]  ;;  %v37_v47 = vld [vmem:[%s1568_s0 + $0xb8] sm:$0xff] }
  0x11   :  { %875 = vmatmul.mubr.msk.f32.gmra.mrb[6].mxu0 %vm86_vm0, %v21_v15  ;;  %923 = vmatmul.mubr.msk.f32.gmra.mrb[6].mxu1 %vm86_vm0, %v53_v16  ;;  %v69_v48 = vld [vmem:[%s1568_s0 + $0x1b8] sm:$0xff]  ;;  %v38_v49 = vld [vmem:[%s1568_s0 + $0xc0] sm:$0xff]  ;;  %v39_v51 = vld [vmem:[%s1568_s0 + $0xc8] sm:$0xff] }
  0x12   :  { %877 = vmatprep.mubr.msk.f32.mxu0 %vm86_vm0, %v22_v17  ;;  %925 = vmatprep.mubr.msk.f32.mxu1 %vm86_vm0, %v54_v18  ;;  %v70_v50 = vld [vmem:[%s1568_s0 + $0x1c0] sm:$0xff]  ;;  %v71_v52 = vld [vmem:[%s1568_s0 + $0x1c8] sm:$0xff]  ;;  %v40_v53 = vld [vmem:[%s1568_s0 + $0xd0] sm:$0xff] }
  0x13   :  { %v72_v54 = vld [vmem:[%s1568_s0 + $0x1d0] sm:$0xff]  ;;  %v41_v55 = vld [vmem:[%s1568_s0 + $0xd8] sm:$0xff]  ;;  %v42_v57 = vld [vmem:[%s1568_s0 + $0xe0] sm:$0xff] }
  0x14   :  { %v73_v56 = vld [vmem:[%s1568_s0 + $0x1d8] sm:$0xff]  ;;  %v74_v58 = vld [vmem:[%s1568_s0 + $0x1e0] sm:$0xff]  ;;  %v43_v59 = vld [vmem:[%s1568_s0 + $0xe8] sm:$0xff] }
  0x15   :  { %878 = vmatmul.mubr.msk.f32.gmra.mrb[8].mxu0 %vm86_vm0, %v23_v19  ;;  %926 = vmatmul.mubr.msk.f32.gmra.mrb[8].mxu1 %vm86_vm0, %v55_v20  ;;  %v75_v60 = vld [vmem:[%s1568_s0 + $0x1e8] sm:$0xff]  ;;  %v44_v61 = vld [vmem:[%s1568_s0 + $0xf0] sm:$0xff]  ;;  %v45_v63 = vld [vmem:[%s1568_s0 + $0xf8] sm:$0xff] }
  0x16   :  { %880 = vmatprep.mubr.msk.f32.mxu0 %vm86_vm0, %v24_v21  ;;  %928 = vmatprep.mubr.msk.f32.mxu1 %vm86_vm0, %v56_v22  ;;  %v76_v62 = vld [vmem:[%s1568_s0 + $0x1f0] sm:$0xff]  ;;  %v77_v0 = vld [vmem:[%s1568_s0 + $0x1f8] sm:$0xff]  ;;  %v1245_v1 = vld [vmem:[%s1569_s2] ss:$0 sm:$0xff] }
  0x19   :  { %881 = vmatmul.mubr.msk.f32.gmra.mrb[10].mxu0 %vm86_vm0, %v25_v23  ;;  %929 = vmatmul.mubr.msk.f32.gmra.mrb[10].mxu1 %vm86_vm0, %v57_v24 }
  0x1a   :  { %883 = vmatprep.mubr.msk.f32.mxu0 %vm86_vm0, %v26_v25  ;;  %931 = vmatprep.mubr.msk.f32.mxu1 %vm86_vm0, %v58_v26 }
  0x1d   :  { %884 = vmatmul.mubr.msk.f32.gmra.mrb[12].mxu0 %vm86_vm0, %v27_v27  ;;  %932 = vmatmul.mubr.msk.f32.gmra.mrb[12].mxu1 %vm86_vm0, %v59_v28 }
  0x1e   :  { %886 = vmatprep.mubr.msk.f32.mxu0 %vm86_vm0, %v28_v29  ;;  %934 = vmatprep.mubr.msk.f32.mxu1 %vm86_vm0, %v60_v30 }
  0x21   :  { %887 = vmatmul.mubr.msk.f32.gmra.mrb[14].mxu0 %vm86_vm0, %v29_v31  ;;  %935 = vmatmul.mubr.msk.f32.gmra.mrb[14].mxu1 %vm86_vm0, %v61_v32 }
  0x22   :  { %889 = vmatprep.mubr.msk.f32.mxu0 %vm86_vm0, %v30_v33  ;;  %937 = vmatprep.mubr.msk.f32.mxu1 %vm86_vm0, %v62_v34 }
  0x25   :  { %890 = vmatmul.mubr.msk.f32.gmra.mrb[16].mxu0 %vm86_vm0, %v31_v35  ;;  %938 = vmatmul.mubr.msk.f32.gmra.mrb[16].mxu1 %vm86_vm0, %v63_v36 }
  0x26   :  { %892 = vmatprep.mubr.msk.f32.mxu0 %vm86_vm0, %v32_v37  ;;  %940 = vmatprep.mubr.msk.f32.mxu1 %vm86_vm0, %v64_v38 }
  0x29   :  { %893 = vmatmul.mubr.msk.f32.gmra.mrb[18].mxu0 %vm86_vm0, %v33_v39  ;;  %941 = vmatmul.mubr.msk.f32.gmra.mrb[18].mxu1 %vm86_vm0, %v65_v40 }
  0x2a   :  { %895 = vmatprep.mubr.msk.f32.mxu0 %vm86_vm0, %v34_v41  ;;  %943 = vmatprep.mubr.msk.f32.mxu1 %vm86_vm0, %v66_v42 }
  0x2d   :  { %896 = vmatmul.mubr.msk.f32.gmra.mrb[20].mxu0 %vm86_vm0, %v35_v43  ;;  %944 = vmatmul.mubr.msk.f32.gmra.mrb[20].mxu1 %vm86_vm0, %v67_v44 }
  0x2e   :  { %898 = vmatprep.mubr.msk.f32.mxu0 %vm86_vm0, %v36_v45  ;;  %946 = vmatprep.mubr.msk.f32.mxu1 %vm86_vm0, %v68_v46 }
  0x31   :  { %899 = vmatmul.mubr.msk.f32.gmra.mrb[22].mxu0 %vm86_vm0, %v37_v47  ;;  %947 = vmatmul.mubr.msk.f32.gmra.mrb[22].mxu1 %vm86_vm0, %v69_v48 }
  0x32   :  { %901 = vmatprep.mubr.msk.f32.mxu0 %vm86_vm0, %v38_v49  ;;  %949 = vmatprep.mubr.msk.f32.mxu1 %vm86_vm0, %v70_v50 }
  0x35   :  { %902 = vmatmul.mubr.msk.f32.gmra.mrb[24].mxu0 %vm86_vm0, %v39_v51  ;;  %950 = vmatmul.mubr.msk.f32.gmra.mrb[24].mxu1 %vm86_vm0, %v71_v52 }
  0x36   :  { %904 = vmatprep.mubr.msk.f32.mxu0 %vm86_vm0, %v40_v53  ;;  %952 = vmatprep.mubr.msk.f32.mxu1 %vm86_vm0, %v72_v54 }
  0x39   :  { %905 = vmatmul.mubr.msk.f32.gmra.mrb[26].mxu0 %vm86_vm0, %v41_v55  ;;  %953 = vmatmul.mubr.msk.f32.gmra.mrb[26].mxu1 %vm86_vm0, %v73_v56 }
  0x3a   :  { %907 = vmatprep.mubr.msk.f32.mxu0 %vm86_vm0, %v42_v57  ;;  %955 = vmatprep.mubr.msk.f32.mxu1 %vm86_vm0, %v74_v58 }
  0x3d   :  { %908 = vmatmul.mubr.msk.f32.gmra.mrb[28].mxu0 %vm86_vm0, %v43_v59  ;;  %956 = vmatmul.mubr.msk.f32.gmra.mrb[28].mxu1 %vm86_vm0, %v75_v60 }
  0x3e   :  { %910 = vmatprep.mubr.msk.f32.mxu0 %vm86_vm0, %v44_v61  ;;  %958 = vmatprep.mubr.msk.f32.mxu1 %vm86_vm0, %v76_v62 }
  0x41   :  { %911 = vmatmul.mubr.msk.f32.gmra.mrb[30].mxu0 %vm86_vm0, %v45_v63  ;;  %959 = vmatmul.mubr.msk.f32.gmra.mrb[30].mxu1 %vm86_vm0, %v77_v0 }
  0xd8   :  { %v867_v2 = vpop.f32.mrb[0].mxu0  ;;  %v915_v3 = vpop.f32.mrb[0].mxu1 }
  0xd9   :  { %v351_v4 = vadd.f32 %v867_v2, %v1245_v1  ;;  %v511_v5 = vadd.f32 %v915_v3, %v1245_v1  ;;  %v345_v6 = vpop.f32.mrb[1].mxu0  ;;  %v505_v7 = vpop.f32.mrb[1].mxu1 }
  0xda   :  { %v346_v8 = vadd.f32 %v1245_v1, %v345_v6  ;;  %v506_v9 = vadd.f32 %v1245_v1, %v505_v7 }
  0xdb   :  { %666 = vst.msk [vmem:[%s1570_s3 + $0x8] sm:$0xff] %vm664_vm1, %v351_v4  ;;  %698 = vst.msk [vmem:[%s1570_s3 + $0x108] sm:$0xff] %vm664_vm1, %v511_v5 }
  0xdc   :  { %665 = vst.msk [vmem:[%s1570_s3] sm:$0xff] %vm664_vm1, %v346_v8  ;;  %697 = vst.msk [vmem:[%s1570_s3 + $0x100] sm:$0xff] %vm664_vm1, %v506_v9  ;;  %v870_v10 = vpop.f32.mrb[2].mxu0  ;;  %v918_v11 = vpop.f32.mrb[2].mxu1 }
  0xdd   :  { %v361_v12 = vadd.f32 %v870_v10, %v1245_v1  ;;  %v521_v13 = vadd.f32 %v918_v11, %v1245_v1  ;;  %v355_v14 = vpop.f32.mrb[3].mxu0  ;;  %v515_v15 = vpop.f32.mrb[3].mxu1 }
  0xde   :  { %v356_v16 = vadd.f32 %v1245_v1, %v355_v14  ;;  %v516_v17 = vadd.f32 %v1245_v1, %v515_v15 }
  0xdf   :  { %668 = vst.msk [vmem:[%s1570_s3 + $0x18] sm:$0xff] %vm664_vm1, %v361_v12  ;;  %700 = vst.msk [vmem:[%s1570_s3 + $0x118] sm:$0xff] %vm664_vm1, %v521_v13 }
  0xe0   :  { %667 = vst.msk [vmem:[%s1570_s3 + $0x10] sm:$0xff] %vm664_vm1, %v356_v16  ;;  %699 = vst.msk [vmem:[%s1570_s3 + $0x110] sm:$0xff] %vm664_vm1, %v516_v17  ;;  %v873_v18 = vpop.f32.mrb[4].mxu0  ;;  %v921_v19 = vpop.f32.mrb[4].mxu1 }
  0xe1   :  { %v371_v20 = vadd.f32 %v873_v18, %v1245_v1  ;;  %v531_v21 = vadd.f32 %v921_v19, %v1245_v1  ;;  %v365_v22 = vpop.f32.mrb[5].mxu0  ;;  %v525_v23 = vpop.f32.mrb[5].mxu1 }
  0xe2   :  { %v366_v24 = vadd.f32 %v1245_v1, %v365_v22  ;;  %v526_v25 = vadd.f32 %v1245_v1, %v525_v23 }
  0xe3   :  { %670 = vst.msk [vmem:[%s1570_s3 + $0x28] sm:$0xff] %vm664_vm1, %v371_v20  ;;  %702 = vst.msk [vmem:[%s1570_s3 + $0x128] sm:$0xff] %vm664_vm1, %v531_v21 }
  0xe4   :  { %669 = vst.msk [vmem:[%s1570_s3 + $0x20] sm:$0xff] %vm664_vm1, %v366_v24  ;;  %701 = vst.msk [vmem:[%s1570_s3 + $0x120] sm:$0xff] %vm664_vm1, %v526_v25  ;;  %v876_v26 = vpop.f32.mrb[6].mxu0  ;;  %v924_v27 = vpop.f32.mrb[6].mxu1 }
  0xe5   :  { %v381_v28 = vadd.f32 %v876_v26, %v1245_v1  ;;  %v541_v29 = vadd.f32 %v924_v27, %v1245_v1  ;;  %v375_v30 = vpop.f32.mrb[7].mxu0  ;;  %v535_v31 = vpop.f32.mrb[7].mxu1 }
  0xe6   :  { %v376_v32 = vadd.f32 %v1245_v1, %v375_v30  ;;  %v536_v33 = vadd.f32 %v1245_v1, %v535_v31 }
  0xe7   :  { %672 = vst.msk [vmem:[%s1570_s3 + $0x38] sm:$0xff] %vm664_vm1, %v381_v28  ;;  %704 = vst.msk [vmem:[%s1570_s3 + $0x138] sm:$0xff] %vm664_vm1, %v541_v29 }
  0xe8   :  { %671 = vst.msk [vmem:[%s1570_s3 + $0x30] sm:$0xff] %vm664_vm1, %v376_v32  ;;  %703 = vst.msk [vmem:[%s1570_s3 + $0x130] sm:$0xff] %vm664_vm1, %v536_v33  ;;  %v879_v34 = vpop.f32.mrb[8].mxu0  ;;  %v927_v35 = vpop.f32.mrb[8].mxu1 }
  0xe9   :  { %v391_v36 = vadd.f32 %v879_v34, %v1245_v1  ;;  %v551_v37 = vadd.f32 %v927_v35, %v1245_v1  ;;  %v385_v38 = vpop.f32.mrb[9].mxu0  ;;  %v545_v39 = vpop.f32.mrb[9].mxu1 }
  0xea   :  { %v386_v40 = vadd.f32 %v1245_v1, %v385_v38  ;;  %v546_v41 = vadd.f32 %v1245_v1, %v545_v39 }
  0xeb   :  { %674 = vst.msk [vmem:[%s1570_s3 + $0x48] sm:$0xff] %vm664_vm1, %v391_v36  ;;  %706 = vst.msk [vmem:[%s1570_s3 + $0x148] sm:$0xff] %vm664_vm1, %v551_v37 }
  0xec   :  { %673 = vst.msk [vmem:[%s1570_s3 + $0x40] sm:$0xff] %vm664_vm1, %v386_v40  ;;  %705 = vst.msk [vmem:[%s1570_s3 + $0x140] sm:$0xff] %vm664_vm1, %v546_v41  ;;  %v882_v42 = vpop.f32.mrb[10].mxu0  ;;  %v930_v43 = vpop.f32.mrb[10].mxu1 }
  0xed   :  { %v401_v44 = vadd.f32 %v882_v42, %v1245_v1  ;;  %v561_v45 = vadd.f32 %v930_v43, %v1245_v1  ;;  %v395_v46 = vpop.f32.mrb[11].mxu0  ;;  %v555_v47 = vpop.f32.mrb[11].mxu1 }
  0xee   :  { %v396_v48 = vadd.f32 %v1245_v1, %v395_v46  ;;  %v556_v49 = vadd.f32 %v1245_v1, %v555_v47 }
  0xef   :  { %676 = vst.msk [vmem:[%s1570_s3 + $0x58] sm:$0xff] %vm664_vm1, %v401_v44  ;;  %708 = vst.msk [vmem:[%s1570_s3 + $0x158] sm:$0xff] %vm664_vm1, %v561_v45 }
  0xf0   :  { %675 = vst.msk [vmem:[%s1570_s3 + $0x50] sm:$0xff] %vm664_vm1, %v396_v48  ;;  %707 = vst.msk [vmem:[%s1570_s3 + $0x150] sm:$0xff] %vm664_vm1, %v556_v49  ;;  %v885_v50 = vpop.f32.mrb[12].mxu0  ;;  %v933_v51 = vpop.f32.mrb[12].mxu1 }
  0xf1   :  { %v411_v52 = vadd.f32 %v885_v50, %v1245_v1  ;;  %v571_v53 = vadd.f32 %v933_v51, %v1245_v1  ;;  %v405_v54 = vpop.f32.mrb[13].mxu0  ;;  %v565_v55 = vpop.f32.mrb[13].mxu1 }
  0xf2   :  { %v406_v56 = vadd.f32 %v1245_v1, %v405_v54  ;;  %v566_v57 = vadd.f32 %v1245_v1, %v565_v55 }
  0xf3   :  { %678 = vst.msk [vmem:[%s1570_s3 + $0x68] sm:$0xff] %vm664_vm1, %v411_v52  ;;  %710 = vst.msk [vmem:[%s1570_s3 + $0x168] sm:$0xff] %vm664_vm1, %v571_v53 }
  0xf4   :  { %677 = vst.msk [vmem:[%s1570_s3 + $0x60] sm:$0xff] %vm664_vm1, %v406_v56  ;;  %709 = vst.msk [vmem:[%s1570_s3 + $0x160] sm:$0xff] %vm664_vm1, %v566_v57  ;;  %v888_v58 = vpop.f32.mrb[14].mxu0  ;;  %v936_v59 = vpop.f32.mrb[14].mxu1 }
  0xf5   :  { %v421_v60 = vadd.f32 %v888_v58, %v1245_v1  ;;  %v581_v61 = vadd.f32 %v936_v59, %v1245_v1  ;;  %v415_v62 = vpop.f32.mrb[15].mxu0  ;;  %v575_v63 = vpop.f32.mrb[15].mxu1 }
  0xf6   :  { %v416_v0 = vadd.f32 %v1245_v1, %v415_v62  ;;  %v576_v2 = vadd.f32 %v1245_v1, %v575_v63 }
  0xf7   :  { %680 = vst.msk [vmem:[%s1570_s3 + $0x78] sm:$0xff] %vm664_vm1, %v421_v60  ;;  %712 = vst.msk [vmem:[%s1570_s3 + $0x178] sm:$0xff] %vm664_vm1, %v581_v61 }
  0xf8   :  { %679 = vst.msk [vmem:[%s1570_s3 + $0x70] sm:$0xff] %vm664_vm1, %v416_v0  ;;  %711 = vst.msk [vmem:[%s1570_s3 + $0x170] sm:$0xff] %vm664_vm1, %v576_v2  ;;  %v891_v3 = vpop.f32.mrb[16].mxu0  ;;  %v939_v4 = vpop.f32.mrb[16].mxu1 }
  0xf9   :  { %v431_v5 = vadd.f32 %v891_v3, %v1245_v1  ;;  %v591_v6 = vadd.f32 %v939_v4, %v1245_v1  ;;  %v425_v7 = vpop.f32.mrb[17].mxu0  ;;  %v585_v8 = vpop.f32.mrb[17].mxu1 }
  0xfa   :  { %v426_v9 = vadd.f32 %v1245_v1, %v425_v7  ;;  %v586_v10 = vadd.f32 %v1245_v1, %v585_v8 }
  0xfb   :  { %682 = vst.msk [vmem:[%s1570_s3 + $0x88] sm:$0xff] %vm664_vm1, %v431_v5  ;;  %714 = vst.msk [vmem:[%s1570_s3 + $0x188] sm:$0xff] %vm664_vm1, %v591_v6 }
  0xfc   :  { %681 = vst.msk [vmem:[%s1570_s3 + $0x80] sm:$0xff] %vm664_vm1, %v426_v9  ;;  %713 = vst.msk [vmem:[%s1570_s3 + $0x180] sm:$0xff] %vm664_vm1, %v586_v10  ;;  %v894_v11 = vpop.f32.mrb[18].mxu0  ;;  %v942_v12 = vpop.f32.mrb[18].mxu1 }
  0xfd   :  { %v441_v13 = vadd.f32 %v894_v11, %v1245_v1  ;;  %v601_v14 = vadd.f32 %v942_v12, %v1245_v1  ;;  %v435_v15 = vpop.f32.mrb[19].mxu0  ;;  %v595_v16 = vpop.f32.mrb[19].mxu1 }
  0xfe   :  { %v436_v17 = vadd.f32 %v1245_v1, %v435_v15  ;;  %v596_v18 = vadd.f32 %v1245_v1, %v595_v16 }
  0xff   :  { %684 = vst.msk [vmem:[%s1570_s3 + $0x98] sm:$0xff] %vm664_vm1, %v441_v13  ;;  %716 = vst.msk [vmem:[%s1570_s3 + $0x198] sm:$0xff] %vm664_vm1, %v601_v14 }
 0x100   :  { %683 = vst.msk [vmem:[%s1570_s3 + $0x90] sm:$0xff] %vm664_vm1, %v436_v17  ;;  %715 = vst.msk [vmem:[%s1570_s3 + $0x190] sm:$0xff] %vm664_vm1, %v596_v18  ;;  %v897_v19 = vpop.f32.mrb[20].mxu0  ;;  %v945_v20 = vpop.f32.mrb[20].mxu1 }
 0x101   :  { %v451_v21 = vadd.f32 %v897_v19, %v1245_v1  ;;  %v611_v22 = vadd.f32 %v945_v20, %v1245_v1  ;;  %v445_v23 = vpop.f32.mrb[21].mxu0  ;;  %v605_v24 = vpop.f32.mrb[21].mxu1 }
 0x102   :  { %v446_v25 = vadd.f32 %v1245_v1, %v445_v23  ;;  %v606_v26 = vadd.f32 %v1245_v1, %v605_v24 }
 0x103   :  { %686 = vst.msk [vmem:[%s1570_s3 + $0xa8] sm:$0xff] %vm664_vm1, %v451_v21  ;;  %718 = vst.msk [vmem:[%s1570_s3 + $0x1a8] sm:$0xff] %vm664_vm1, %v611_v22 }
 0x104   :  { %685 = vst.msk [vmem:[%s1570_s3 + $0xa0] sm:$0xff] %vm664_vm1, %v446_v25  ;;  %717 = vst.msk [vmem:[%s1570_s3 + $0x1a0] sm:$0xff] %vm664_vm1, %v606_v26  ;;  %v900_v27 = vpop.f32.mrb[22].mxu0  ;;  %v948_v28 = vpop.f32.mrb[22].mxu1 }
 0x105   :  { %v461_v29 = vadd.f32 %v900_v27, %v1245_v1  ;;  %v621_v30 = vadd.f32 %v948_v28, %v1245_v1  ;;  %v455_v31 = vpop.f32.mrb[23].mxu0  ;;  %v615_v32 = vpop.f32.mrb[23].mxu1 }
 0x106   :  { %v456_v33 = vadd.f32 %v1245_v1, %v455_v31  ;;  %v616_v34 = vadd.f32 %v1245_v1, %v615_v32 }
 0x107   :  { %688 = vst.msk [vmem:[%s1570_s3 + $0xb8] sm:$0xff] %vm664_vm1, %v461_v29  ;;  %720 = vst.msk [vmem:[%s1570_s3 + $0x1b8] sm:$0xff] %vm664_vm1, %v621_v30 }
 0x108   :  { %687 = vst.msk [vmem:[%s1570_s3 + $0xb0] sm:$0xff] %vm664_vm1, %v456_v33  ;;  %719 = vst.msk [vmem:[%s1570_s3 + $0x1b0] sm:$0xff] %vm664_vm1, %v616_v34  ;;  %v903_v35 = vpop.f32.mrb[24].mxu0  ;;  %v951_v36 = vpop.f32.mrb[24].mxu1 }
 0x109   :  { %v471_v37 = vadd.f32 %v903_v35, %v1245_v1  ;;  %v631_v38 = vadd.f32 %v951_v36, %v1245_v1  ;;  %v465_v39 = vpop.f32.mrb[25].mxu0  ;;  %v625_v40 = vpop.f32.mrb[25].mxu1 }
 0x10a   :  { %v466_v41 = vadd.f32 %v1245_v1, %v465_v39  ;;  %v626_v42 = vadd.f32 %v1245_v1, %v625_v40 }
 0x10b   :  { %690 = vst.msk [vmem:[%s1570_s3 + $0xc8] sm:$0xff] %vm664_vm1, %v471_v37  ;;  %722 = vst.msk [vmem:[%s1570_s3 + $0x1c8] sm:$0xff] %vm664_vm1, %v631_v38 }
 0x10c   :  { %689 = vst.msk [vmem:[%s1570_s3 + $0xc0] sm:$0xff] %vm664_vm1, %v466_v41  ;;  %721 = vst.msk [vmem:[%s1570_s3 + $0x1c0] sm:$0xff] %vm664_vm1, %v626_v42  ;;  %v906_v43 = vpop.f32.mrb[26].mxu0  ;;  %v954_v44 = vpop.f32.mrb[26].mxu1 }
 0x10d   :  { %v481_v45 = vadd.f32 %v906_v43, %v1245_v1  ;;  %v641_v46 = vadd.f32 %v954_v44, %v1245_v1  ;;  %v475_v47 = vpop.f32.mrb[27].mxu0  ;;  %v635_v48 = vpop.f32.mrb[27].mxu1 }
 0x10e   :  { %v476_v49 = vadd.f32 %v1245_v1, %v475_v47  ;;  %v636_v50 = vadd.f32 %v1245_v1, %v635_v48 }
 0x10f   :  { %692 = vst.msk [vmem:[%s1570_s3 + $0xd8] sm:$0xff] %vm664_vm1, %v481_v45  ;;  %724 = vst.msk [vmem:[%s1570_s3 + $0x1d8] sm:$0xff] %vm664_vm1, %v641_v46 }
 0x110   :  { %691 = vst.msk [vmem:[%s1570_s3 + $0xd0] sm:$0xff] %vm664_vm1, %v476_v49  ;;  %723 = vst.msk [vmem:[%s1570_s3 + $0x1d0] sm:$0xff] %vm664_vm1, %v636_v50  ;;  %v909_v51 = vpop.f32.mrb[28].mxu0  ;;  %v957_v52 = vpop.f32.mrb[28].mxu1 }
 0x111   :  { %v491_v53 = vadd.f32 %v909_v51, %v1245_v1  ;;  %v651_v54 = vadd.f32 %v957_v52, %v1245_v1  ;;  %v485_v55 = vpop.f32.mrb[29].mxu0  ;;  %v645_v56 = vpop.f32.mrb[29].mxu1 }
 0x112   :  { %v486_v57 = vadd.f32 %v1245_v1, %v485_v55  ;;  %v646_v58 = vadd.f32 %v1245_v1, %v645_v56 }
 0x113   :  { %694 = vst.msk [vmem:[%s1570_s3 + $0xe8] sm:$0xff] %vm664_vm1, %v491_v53  ;;  %726 = vst.msk [vmem:[%s1570_s3 + $0x1e8] sm:$0xff] %vm664_vm1, %v651_v54 }
 0x114   :  { %693 = vst.msk [vmem:[%s1570_s3 + $0xe0] sm:$0xff] %vm664_vm1, %v486_v57  ;;  %725 = vst.msk [vmem:[%s1570_s3 + $0x1e0] sm:$0xff] %vm664_vm1, %v646_v58  ;;  %v912_v59 = vpop.f32.mrb[30].mxu0  ;;  %v960_v60 = vpop.f32.mrb[30].mxu1 }
 0x115   :  { %v501_v61 = vadd.f32 %v912_v59, %v1245_v1  ;;  %v661_v62 = vadd.f32 %v960_v60, %v1245_v1  ;;  %v495_v63 = vpop.f32.mrb[31].mxu0  ;;  %v655_v0 = vpop.f32.mrb[31].mxu1 }
 0x116   :  { %v496_v2 = vadd.f32 %v1245_v1, %v495_v63  ;;  %v656_v3 = vadd.f32 %v1245_v1, %v655_v0 }
 0x117   :  { %696 = vst.msk [vmem:[%s1570_s3 + $0xf8] sm:$0xff] %vm664_vm1, %v501_v61  ;;  %728 = vst.msk [vmem:[%s1570_s3 + $0x1f8] sm:$0xff] %vm664_vm1, %v661_v62 }
 0x118   :  { %695 = vst.msk [vmem:[%s1570_s3 + $0xf0] sm:$0xff] %vm664_vm1, %v496_v2  ;;  %727 = vst.msk [vmem:[%s1570_s3 + $0x1f0] sm:$0xff] %vm664_vm1, %v656_v3 }

// kernel: unet_forward.14
= control target key start
LH: loop header
LB: loop body
LE: loop exit
PB: predicated region body
PF: predicated region fallthrough
CT: control target
= control target key end

     0   :  { %s878_s12 = smov 0   ;;  %s1098_s0 = inlined_call_operand.vmem [shape: f32[2048,72], index: 0, kind: input, shape index: {}]   ;;  %s1099_s1 = inlined_call_operand.vmem [shape: f32[72,8], index: 1, kind: input, shape index: {}]   ;;  %s1100_s2 = inlined_call_operand.vmem [shape: f32[1,8], index: 2, kind: input, shape index: {}]   ;;  %s1101_s3 = inlined_call_operand.vmem [shape: f32[2048,8], index: 3, kind: output, shape index: {}]  }
   0x1 LB: > { %s665_s13 = sadd.s32 4294967295, %s856_s12   ;;  %p669_p0 = scmp.ge.s32.totalorder %s856_s12, 1  ;;  %s856_s12 = sphi %s878_s12, %s13_s12  }
   0x2   : > { %p138_p1 = scmp.lt.s32.totalorder %s856_s12, 9 }
   0x4   : > { %p139_p2 = pnand %p669_p0, %p138_p1 }
   0x5   : > { %v206_v0 = vld [vmem:[%s1099_s1] sm:$0xff] (!%p139_p2)  ;;  %v207_v1 = vld [vmem:[%s1099_s1 + $0x8] sm:$0xff] (!%p139_p2)  ;;  %v208_v2 = vld [vmem:[%s1099_s1 + $0x10] sm:$0xff] (!%p139_p2)  ;;  %s670_s20 = sshll.u32 (!%p139_p2), %s665_s13, 5  ;;  %vm222_vm0 = vcmask (!%p139_p2), 588800   ;;  %vm576_vm1 = vcmask (!%p139_p2), 64512  }
   0x6   : > { %142 = sbr.rel (%p139_p2) target bundleno = 273 (0x111), region = 32  ;;  %v816_v3 = vpack.c.bf16 (!%p139_p2), %v207_v1, %v206_v0  ;;  %v209_v4 = vld [vmem:[%s1099_s1 + $0x18] sm:$0xff] (!%p139_p2)  ;;  %p163_p3 = scmp.lt.s32.totalorder (!%p139_p2), %s670_s20, 255  ;;  %v210_v6 = vld [vmem:[%s1099_s1 + $0x20] sm:$0xff] (!%p139_p2)  ;;  %v211_v7 = vld [vmem:[%s1099_s1 + $0x28] sm:$0xff] (!%p139_p2) }
   0x7   : > { %v820_v5 = vpack.c.bf16 (!%p139_p2), %v209_v4, %v208_v2  ;;  %v824_v8 = vpack.c.bf16 (!%p139_p2), %v211_v7, %v210_v6  ;;  %v212_v9 = vld [vmem:[%s1099_s1 + $0x30] sm:$0xff] (!%p139_p2)  ;;  %v213_v10 = vld [vmem:[%s1099_s1 + $0x38] sm:$0xff] (!%p139_p2)  ;;  %v214_v14 = vld [vmem:[%s1099_s1 + $0x40] sm:$0xff] (!%p139_p2) }
   0x8   : > { %817 = vmatprep.subr.bf16.mxu0 (!%p139_p2), %v816_v3  ;;  %832 = vmatprep.subr.bf16.mxu1 (!%p139_p2), %v816_v3  ;;  %v828_v13 = vpack.c.bf16 (!%p139_p2), %v213_v10, %v212_v9  ;;  %v990_v45 = vld [vmem:[%s1100_s2] ss:$0 sm:$0xff] (!%p139_p2) }
   0x9   : > { %819 = vmatpush3.bf16.msra.mxu0 (!%p139_p2), %v816_v3  ;;  %837 = vmatpush3.bf16.msra.mxu1 (!%p139_p2), %v816_v3 }
   0xa   : > { %821 = vmatprep.subr.bf16.mxu0 (!%p139_p2), %v820_v5  ;;  %833 = vmatprep.subr.bf16.mxu1 (!%p139_p2), %v820_v5 }
   0xd   : > { %s1103_s20 = smov (!%p163_p3, %s670_s20), 255  ;;  %823 = vmatpush3.bf16.msra.mxu0 %v820_v5  ;;  %838 = vmatpush3.bf16.msra.mxu1 %v820_v5 }
   0xe   : > { %s671_s27 = sshll.u32 %s1103_s20, 3  ;;  %825 = vmatprep.subr.bf16.mxu0 %v824_v8  ;;  %834 = vmatprep.subr.bf16.mxu1 %v824_v8 }
   0xf   : > { %s918_s7 = scalar_lea.vmem %s1098_s0, %s671_s27  ;;  %s999_s15 = scalar_lea.vmem %s1101_s3, %s671_s27 }
  0x10   : > { %v174_v11 = vld [vmem:[%s918_s7] sm:$0xff]  ;;  %v175_v15 = vld [vmem:[%s918_s7 + $0x8] sm:$0xff]  ;;  %v176_v17 = vld [vmem:[%s918_s7 + $0x10] sm:$0xff] }
  0x11   : > { %v190_v12 = vld [vmem:[%s918_s7 + $0x80] sm:$0xff]  ;;  %768 = vmatprep.mubr.msk.f32.mxu0 %vm222_vm0, %v174_v11  ;;  %827 = vmatpush3.bf16.msra.mxu0 %v824_v8  ;;  %v191_v16 = vld [vmem:[%s918_s7 + $0x88] sm:$0xff]  ;;  %v192_v18 = vld [vmem:[%s918_s7 + $0x90] sm:$0xff] }
  0x12   : > { %792 = vmatprep.mubr.msk.f32.mxu1 %vm222_vm0, %v190_v12  ;;  %839 = vmatpush3.bf16.msra.mxu1 %v824_v8  ;;  %v177_v19 = vld [vmem:[%s918_s7 + $0x18] sm:$0xff]  ;;  %v178_v21 = vld [vmem:[%s918_s7 + $0x20] sm:$0xff]  ;;  %v179_v23 = vld [vmem:[%s918_s7 + $0x28] sm:$0xff] }
  0x13   : > { %829 = vmatprep.subr.bf16.mxu0 %v828_v13  ;;  %835 = vmatprep.subr.bf16.mxu1 %v828_v13  ;;  %v193_v20 = vld [vmem:[%s918_s7 + $0x98] sm:$0xff]  ;;  %v194_v22 = vld [vmem:[%s918_s7 + $0xa0] sm:$0xff]  ;;  %v195_v24 = vld [vmem:[%s918_s7 + $0xa8] sm:$0xff] }
  0x14   : > { %v180_v25 = vld [vmem:[%s918_s7 + $0x30] sm:$0xff]  ;;  %v181_v27 = vld [vmem:[%s918_s7 + $0x38] sm:$0xff]  ;;  %v182_v29 = vld [vmem:[%s918_s7 + $0x40] sm:$0xff] }
  0x15   : > { %831 = vmatpush3.bf16.msra.mxu0 %v828_v13  ;;  %v196_v26 = vld [vmem:[%s918_s7 + $0xb0] sm:$0xff]  ;;  %v197_v28 = vld [vmem:[%s918_s7 + $0xb8] sm:$0xff]  ;;  %v198_v30 = vld [vmem:[%s918_s7 + $0xc0] sm:$0xff] }
  0x16   : > { %840 = vmatpush3.bf16.msra.mxu1 %v828_v13  ;;  %766 = vmatprep.subr.mxu0 %v214_v14  ;;  %v183_v31 = vld [vmem:[%s918_s7 + $0x48] sm:$0xff]  ;;  %v184_v33 = vld [vmem:[%s918_s7 + $0x50] sm:$0xff]  ;;  %v185_v35 = vld [vmem:[%s918_s7 + $0x58] sm:$0xff] }
  0x17   : > { %836 = vmatprep.subr.mxu1 %v214_v14  ;;  %v199_v32 = vld [vmem:[%s918_s7 + $0xc8] sm:$0xff]  ;;  %v200_v34 = vld [vmem:[%s918_s7 + $0xd0] sm:$0xff]  ;;  %v201_v36 = vld [vmem:[%s918_s7 + $0xd8] sm:$0xff] }
  0x18   : > { %v186_v37 = vld [vmem:[%s918_s7 + $0x60] sm:$0xff]  ;;  %v187_v39 = vld [vmem:[%s918_s7 + $0x68] sm:$0xff]  ;;  %v188_v41 = vld [vmem:[%s918_s7 + $0x70] sm:$0xff] }
  0x19   : > { %767 = vmatpush3.msra.mxu0 %v214_v14  ;;  %v202_v38 = vld [vmem:[%s918_s7 + $0xe0] sm:$0xff]  ;;  %v203_v40 = vld [vmem:[%s918_s7 + $0xe8] sm:$0xff]  ;;  %v204_v42 = vld [vmem:[%s918_s7 + $0xf0] sm:$0xff] }
  0x1a   : > { %841 = vmatpush3.msra.mxu1 %v214_v14  ;;  %769 = vmatmul.mubr.msk.f32.vlgmr.msra.gmra.mrb[0].mxu0 %vm222_vm0, %v175_v15  ;;  %v189_v43 = vld [vmem:[%s918_s7 + $0x78] sm:$0xff] }
  0x1b   : > { %793 = vmatmul.mubr.msk.f32.vlgmr.msra.gmra.mrb[0].mxu1 %vm222_vm0, %v191_v16  ;;  %771 = vmatprep.mubr.msk.f32.mxu0 %vm222_vm0, %v176_v17  ;;  %v205_v44 = vld [vmem:[%s918_s7 + $0xf8] sm:$0xff] }
  0x1c   : > { %795 = vmatprep.mubr.msk.f32.mxu1 %vm222_vm0, %v192_v18 }
  0x1e   : > { %772 = vmatmul.mubr.msk.f32.gmra.mrb[2].mxu0 %vm222_vm0, %v177_v19 }
  0x1f   : > { %796 = vmatmul.mubr.msk.f32.gmra.mrb[2].mxu1 %vm222_vm0, %v193_v20  ;;  %774 = vmatprep.mubr.msk.f32.mxu0 %vm222_vm0, %v178_v21 }
  0x20   : > { %798 = vmatprep.mubr.msk.f32.mxu1 %vm222_vm0, %v194_v22 }
  0x22   : > { %775 = vmatmul.mubr.msk.f32.gmra.mrb[4].mxu0 %vm222_vm0, %v179_v23 }
  0x23   : > { %799 = vmatmul.mubr.msk.f32.gmra.mrb[4].mxu1 %vm222_vm0, %v195_v24  ;;  %777 = vmatprep.mubr.msk.f32.mxu0 %vm222_vm0, %v180_v25 }
  0x24   : > { %801 = vmatprep.mubr.msk.f32.mxu1 %vm222_vm0, %v196_v26 }
  0x26   : > { %778 = vmatmul.mubr.msk.f32.gmra.mrb[6].mxu0 %vm222_vm0, %v181_v27 }
  0x27   : > { %802 = vmatmul.mubr.msk.f32.gmra.mrb[6].mxu1 %vm222_vm0, %v197_v28  ;;  %780 = vmatprep.mubr.msk.f32.mxu0 %vm222_vm0, %v182_v29 }
  0x28   : > { %804 = vmatprep.mubr.msk.f32.mxu1 %vm222_vm0, %v198_v30 }
  0x2a   : > { %781 = vmatmul.mubr.msk.f32.gmra.mrb[8].mxu0 %vm222_vm0, %v183_v31 }
  0x2b   : > { %805 = vmatmul.mubr.msk.f32.gmra.mrb[8].mxu1 %vm222_vm0, %v199_v32  ;;  %783 = vmatprep.mubr.msk.f32.mxu0 %vm222_vm0, %v184_v33 }
  0x2c   : > { %807 = vmatprep.mubr.msk.f32.mxu1 %vm222_vm0, %v200_v34 }
  0x2e   : > { %784 = vmatmul.mubr.msk.f32.gmra.mrb[10].mxu0 %vm222_vm0, %v185_v35 }
  0x2f   : > { %808 = vmatmul.mubr.msk.f32.gmra.mrb[10].mxu1 %vm222_vm0, %v201_v36  ;;  %786 = vmatprep.mubr.msk.f32.mxu0 %vm222_vm0, %v186_v37 }
  0x30   : > { %810 = vmatprep.mubr.msk.f32.mxu1 %vm222_vm0, %v202_v38 }
  0x32   : > { %787 = vmatmul.mubr.msk.f32.gmra.mrb[12].mxu0 %vm222_vm0, %v187_v39 }
  0x33   : > { %811 = vmatmul.mubr.msk.f32.gmra.mrb[12].mxu1 %vm222_vm0, %v203_v40  ;;  %789 = vmatprep.mubr.msk.f32.mxu0 %vm222_vm0, %v188_v41 }
  0x34   : > { %813 = vmatprep.mubr.msk.f32.mxu1 %vm222_vm0, %v204_v42 }
  0x36   : > { %790 = vmatmul.mubr.msk.f32.gmra.mrb[14].mxu0 %vm222_vm0, %v189_v43 }
  0x37   : > { %814 = vmatmul.mubr.msk.f32.gmra.mrb[14].mxu1 %vm222_vm0, %v205_v44 }
  0xed   : > { %v770_v46 = vpop.f32.mrb[0].mxu0 }
  0xee   : > { %v794_v47 = vpop.f32.mrb[0].mxu1  ;;  %v391_v48 = vadd.f32 %v770_v46, %v990_v45  ;;  %v385_v50 = vpop.f32.mrb[1].mxu0 }
  0xef   : > { %v471_v49 = vadd.f32 %v794_v47, %v990_v45  ;;  %v465_v51 = vpop.f32.mrb[1].mxu1  ;;  %v386_v52 = vadd.f32 %v990_v45, %v385_v50 }
  0xf0   : > { %v466_v53 = vadd.f32 %v990_v45, %v465_v51  ;;  %v545_v54 = vmax.f32 %v391_v48, 0.0 }
  0xf1   : > { %v561_v55 = vmax.f32 %v471_v49, 0.0  ;;  %v544_v56 = vmax.f32 %v386_v52, 0.0  ;;  %v773_v58 = vpop.f32.mrb[2].mxu0 }
  0xf2   : > { %v560_v57 = vmax.f32 %v466_v53, 0.0  ;;  %v797_v59 = vpop.f32.mrb[2].mxu1  ;;  %578 = vst.msk [vmem:[%s999_s15 + $0x8] sm:$0xff] %vm576_vm1, %v545_v54  ;;  %v401_v60 = vadd.f32 %v773_v58, %v990_v45  ;;  %v395_v62 = vpop.f32.mrb[3].mxu0 }
  0xf3   : > { %594 = vst.msk [vmem:[%s999_s15 + $0x88] sm:$0xff] %vm576_vm1, %v561_v55  ;;  %v481_v61 = vadd.f32 %v797_v59, %v990_v45  ;;  %v475_v63 = vpop.f32.mrb[3].mxu1  ;;  %577 = vst.msk [vmem:[%s999_s15] sm:$0xff] %vm576_vm1, %v544_v56  ;;  %v396_v0 = vadd.f32 %v990_v45, %v395_v62 }
  0xf4   : > { %593 = vst.msk [vmem:[%s999_s15 + $0x80] sm:$0xff] %vm576_vm1, %v560_v57  ;;  %v476_v1 = vadd.f32 %v990_v45, %v475_v63  ;;  %v547_v2 = vmax.f32 %v401_v60, 0.0 }
  0xf5   : > { %v563_v3 = vmax.f32 %v481_v61, 0.0  ;;  %v546_v4 = vmax.f32 %v396_v0, 0.0  ;;  %v776_v6 = vpop.f32.mrb[4].mxu0 }
  0xf6   : > { %v562_v5 = vmax.f32 %v476_v1, 0.0  ;;  %v800_v7 = vpop.f32.mrb[4].mxu1  ;;  %580 = vst.msk [vmem:[%s999_s15 + $0x18] sm:$0xff] %vm576_vm1, %v547_v2  ;;  %v411_v8 = vadd.f32 %v776_v6, %v990_v45  ;;  %v405_v10 = vpop.f32.mrb[5].mxu0 }
  0xf7   : > { %596 = vst.msk [vmem:[%s999_s15 + $0x98] sm:$0xff] %vm576_vm1, %v563_v3  ;;  %v491_v9 = vadd.f32 %v800_v7, %v990_v45  ;;  %v485_v11 = vpop.f32.mrb[5].mxu1  ;;  %579 = vst.msk [vmem:[%s999_s15 + $0x10] sm:$0xff] %vm576_vm1, %v546_v4  ;;  %v406_v12 = vadd.f32 %v990_v45, %v405_v10 }
  0xf8   : > { %595 = vst.msk [vmem:[%s999_s15 + $0x90] sm:$0xff] %vm576_vm1, %v562_v5  ;;  %v486_v13 = vadd.f32 %v990_v45, %v485_v11  ;;  %v549_v14 = vmax.f32 %v411_v8, 0.0 }
  0xf9   : > { %v565_v15 = vmax.f32 %v491_v9, 0.0  ;;  %v548_v16 = vmax.f32 %v406_v12, 0.0  ;;  %v779_v18 = vpop.f32.mrb[6].mxu0 }
  0xfa   : > { %v564_v17 = vmax.f32 %v486_v13, 0.0  ;;  %v803_v19 = vpop.f32.mrb[6].mxu1  ;;  %582 = vst.msk [vmem:[%s999_s15 + $0x28] sm:$0xff] %vm576_vm1, %v549_v14  ;;  %v421_v20 = vadd.f32 %v779_v18, %v990_v45  ;;  %v415_v22 = vpop.f32.mrb[7].mxu0 }
  0xfb   : > { %598 = vst.msk [vmem:[%s999_s15 + $0xa8] sm:$0xff] %vm576_vm1, %v565_v15  ;;  %v501_v21 = vadd.f32 %v803_v19, %v990_v45  ;;  %v495_v23 = vpop.f32.mrb[7].mxu1  ;;  %581 = vst.msk [vmem:[%s999_s15 + $0x20] sm:$0xff] %vm576_vm1, %v548_v16  ;;  %v416_v24 = vadd.f32 %v990_v45, %v415_v22 }
  0xfc   : > { %597 = vst.msk [vmem:[%s999_s15 + $0xa0] sm:$0xff] %vm576_vm1, %v564_v17  ;;  %v496_v25 = vadd.f32 %v990_v45, %v495_v23  ;;  %v551_v26 = vmax.f32 %v421_v20, 0.0 }
  0xfd   : > { %v567_v27 = vmax.f32 %v501_v21, 0.0  ;;  %v550_v28 = vmax.f32 %v416_v24, 0.0  ;;  %v782_v30 = vpop.f32.mrb[8].mxu0 }
  0xfe   : > { %v566_v29 = vmax.f32 %v496_v25, 0.0  ;;  %v806_v31 = vpop.f32.mrb[8].mxu1  ;;  %584 = vst.msk [vmem:[%s999_s15 + $0x38] sm:$0xff] %vm576_vm1, %v551_v26  ;;  %v431_v32 = vadd.f32 %v782_v30, %v990_v45  ;;  %v425_v34 = vpop.f32.mrb[9].mxu0 }
  0xff   : > { %600 = vst.msk [vmem:[%s999_s15 + $0xb8] sm:$0xff] %vm576_vm1, %v567_v27  ;;  %v511_v33 = vadd.f32 %v806_v31, %v990_v45  ;;  %v505_v35 = vpop.f32.mrb[9].mxu1  ;;  %583 = vst.msk [vmem:[%s999_s15 + $0x30] sm:$0xff] %vm576_vm1, %v550_v28  ;;  %v426_v36 = vadd.f32 %v990_v45, %v425_v34 }
 0x100   : > { %599 = vst.msk [vmem:[%s999_s15 + $0xb0] sm:$0xff] %vm576_vm1, %v566_v29  ;;  %v506_v37 = vadd.f32 %v990_v45, %v505_v35  ;;  %v553_v38 = vmax.f32 %v431_v32, 0.0 }
 0x101   : > { %v569_v39 = vmax.f32 %v511_v33, 0.0  ;;  %v552_v40 = vmax.f32 %v426_v36, 0.0  ;;  %v785_v42 = vpop.f32.mrb[10].mxu0 }
 0x102   : > { %v568_v41 = vmax.f32 %v506_v37, 0.0  ;;  %v809_v43 = vpop.f32.mrb[10].mxu1  ;;  %586 = vst.msk [vmem:[%s999_s15 + $0x48] sm:$0xff] %vm576_vm1, %v553_v38  ;;  %v441_v44 = vadd.f32 %v785_v42, %v990_v45  ;;  %v435_v47 = vpop.f32.mrb[11].mxu0 }
 0x103   : > { %602 = vst.msk [vmem:[%s999_s15 + $0xc8] sm:$0xff] %vm576_vm1, %v569_v39  ;;  %v521_v46 = vadd.f32 %v809_v43, %v990_v45  ;;  %v515_v48 = vpop.f32.mrb[11].mxu1  ;;  %585 = vst.msk [vmem:[%s999_s15 + $0x40] sm:$0xff] %vm576_vm1, %v552_v40  ;;  %v436_v49 = vadd.f32 %v990_v45, %v435_v47 }
 0x104   : > { %601 = vst.msk [vmem:[%s999_s15 + $0xc0] sm:$0xff] %vm576_vm1, %v568_v41  ;;  %v516_v50 = vadd.f32 %v990_v45, %v515_v48  ;;  %v555_v51 = vmax.f32 %v441_v44, 0.0 }
 0x105   : > { %v571_v52 = vmax.f32 %v521_v46, 0.0  ;;  %v554_v53 = vmax.f32 %v436_v49, 0.0  ;;  %v788_v55 = vpop.f32.mrb[12].mxu0 }
 0x106   : > { %v570_v54 = vmax.f32 %v516_v50, 0.0  ;;  %v812_v56 = vpop.f32.mrb[12].mxu1  ;;  %588 = vst.msk [vmem:[%s999_s15 + $0x58] sm:$0xff] %vm576_vm1, %v555_v51  ;;  %v451_v57 = vadd.f32 %v788_v55, %v990_v45  ;;  %v445_v59 = vpop.f32.mrb[13].mxu0 }
 0x107   : > { %604 = vst.msk [vmem:[%s999_s15 + $0xd8] sm:$0xff] %vm576_vm1, %v571_v52  ;;  %v531_v58 = vadd.f32 %v812_v56, %v990_v45  ;;  %v525_v60 = vpop.f32.mrb[13].mxu1  ;;  %587 = vst.msk [vmem:[%s999_s15 + $0x50] sm:$0xff] %vm576_vm1, %v554_v53  ;;  %v446_v61 = vadd.f32 %v990_v45, %v445_v59 }
 0x108   : > { %603 = vst.msk [vmem:[%s999_s15 + $0xd0] sm:$0xff] %vm576_vm1, %v570_v54  ;;  %v526_v62 = vadd.f32 %v990_v45, %v525_v60  ;;  %v557_v63 = vmax.f32 %v451_v57, 0.0 }
 0x109   : > { %v573_v0 = vmax.f32 %v531_v58, 0.0  ;;  %v556_v1 = vmax.f32 %v446_v61, 0.0  ;;  %v791_v3 = vpop.f32.mrb[14].mxu0 }
 0x10a   : > { %v572_v2 = vmax.f32 %v526_v62, 0.0  ;;  %v815_v4 = vpop.f32.mrb[14].mxu1  ;;  %590 = vst.msk [vmem:[%s999_s15 + $0x68] sm:$0xff] %vm576_vm1, %v557_v63  ;;  %v461_v5 = vadd.f32 %v791_v3, %v990_v45  ;;  %v455_v7 = vpop.f32.mrb[15].mxu0 }
 0x10b   : > { %606 = vst.msk [vmem:[%s999_s15 + $0xe8] sm:$0xff] %vm576_vm1, %v573_v0  ;;  %v541_v6 = vadd.f32 %v815_v4, %v990_v45  ;;  %v535_v8 = vpop.f32.mrb[15].mxu1  ;;  %589 = vst.msk [vmem:[%s999_s15 + $0x60] sm:$0xff] %vm576_vm1, %v556_v1  ;;  %v456_v9 = vadd.f32 %v990_v45, %v455_v7 }
 0x10c   : > { %605 = vst.msk [vmem:[%s999_s15 + $0xe0] sm:$0xff] %vm576_vm1, %v572_v2  ;;  %v536_v10 = vadd.f32 %v990_v45, %v535_v8  ;;  %v559_v11 = vmax.f32 %v461_v5, 0.0 }
 0x10d   : > { %v575_v12 = vmax.f32 %v541_v6, 0.0  ;;  %v558_v13 = vmax.f32 %v456_v9, 0.0 }
 0x10e   : > { %v574_v14 = vmax.f32 %v536_v10, 0.0  ;;  %592 = vst.msk [vmem:[%s999_s15 + $0x78] sm:$0xff] %vm576_vm1, %v559_v11 }
 0x10f   : > { %608 = vst.msk [vmem:[%s999_s15 + $0xf8] sm:$0xff] %vm576_vm1, %v575_v12  ;;  %591 = vst.msk [vmem:[%s999_s15 + $0x70] sm:$0xff] %vm576_vm1, %v558_v13 }
 0x110   : > { %607 = vst.msk [vmem:[%s999_s15 + $0xf0] sm:$0xff] %vm576_vm1, %v574_v14 }
 0x111 PF: > { %s13_s12 = sadd.s32 1, %s856_s12  }
 0x112   : > { %p10_p4 = scmp.ge.s32.totalorder %s13_s12, 10  }
 0x114   :  { %12 = sbr.rel (!%p10_p4) target bundleno = 1 (0x1), region = 62 }

// kernel: unet_forward.15
= control target key start
LH: loop header
LB: loop body
LE: loop exit
PB: predicated region body
PF: predicated region fallthrough
CT: control target
= control target key end

     0   :  { %s1410_s18 = smov 0   ;;  %s1702_s0 = inlined_call_operand.vmem [shape: f32[2048,72], index: 0, kind: input, shape index: {}]   ;;  %s1703_s1 = inlined_call_operand.vmem [shape: f32[72,8], index: 1, kind: input, shape index: {}]   ;;  %s1704_s2 = inlined_call_operand.vmem [shape: f32[1,8], index: 2, kind: input, shape index: {}]   ;;  %s1705_s3 = inlined_call_operand.vmem [shape: f32[8,2], index: 3, kind: input, shape index: {}]   ;;  %s1706_s4 = inlined_call_operand.vmem [shape: f32[1,2], index: 4, kind: input, shape index: {}]   ;;  %s1707_s5 = inlined_call_operand.vmem [shape: f32[2048,2], index: 5, kind: output, shape index: {}]  }
   0x1 LB: > { %s1081_s19 = sadd.s32 4294967295, %s1378_s18   ;;  %p1085_p0 = scmp.ge.s32.totalorder %s1378_s18, 1  ;;  %s1378_s18 = sphi %s1410_s18, %s15_s18  }
   0x2   : > { %p188_p1 = scmp.lt.s32.totalorder %s1378_s18, 9 }
   0x4   : > { %p189_p2 = pnand %p1085_p0, %p188_p1 }
   0x5   : > { %v260_v0 = vld [vmem:[%s1703_s1] sm:$0xff] (!%p189_p2)  ;;  %v261_v1 = vld [vmem:[%s1703_s1 + $0x8] sm:$0xff] (!%p189_p2)  ;;  %v262_v2 = vld [vmem:[%s1703_s1 + $0x10] sm:$0xff] (!%p189_p2)  ;;  %s1086_s26 = sshll.u32 (!%p189_p2), %s1081_s19, 5  ;;  %vm276_vm0 = vcmask (!%p189_p2), 588800   ;;  %vm638_vm1 = vcmask (!%p189_p2), 64512  }
   0x6   : > { %192 = sbr.rel (%p189_p2) target bundleno = 522 (0x20a), region = 40  ;;  %v1348_v3 = vpack.c.bf16 (!%p189_p2), %v261_v1, %v260_v0  ;;  %v263_v4 = vld [vmem:[%s1703_s1 + $0x18] sm:$0xff] (!%p189_p2)  ;;  %p217_p3 = scmp.lt.s32.totalorder (!%p189_p2), %s1086_s26, 255  ;;  %v264_v6 = vld [vmem:[%s1703_s1 + $0x20] sm:$0xff] (!%p189_p2)  ;;  %v265_v7 = vld [vmem:[%s1703_s1 + $0x28] sm:$0xff] (!%p189_p2)  ;;  %vm992_vm2 = vcmask (!%p189_p2), 15360  }
   0x7   : > { %v1352_v5 = vpack.c.bf16 (!%p189_p2), %v263_v4, %v262_v2  ;;  %v1356_v8 = vpack.c.bf16 (!%p189_p2), %v265_v7, %v264_v6  ;;  %v266_v9 = vld [vmem:[%s1703_s1 + $0x30] sm:$0xff] (!%p189_p2)  ;;  %v267_v10 = vld [vmem:[%s1703_s1 + $0x38] sm:$0xff] (!%p189_p2)  ;;  %v268_v13 = vld [vmem:[%s1703_s1 + $0x40] sm:$0xff] (!%p189_p2) }
   0x8   : > { %1349 = vmatprep.subr.bf16.mxu0 (!%p189_p2), %v1348_v3  ;;  %v1360_v12 = vpack.c.bf16 (!%p189_p2), %v267_v10, %v266_v9  ;;  %v630_v45 = vld [vmem:[%s1705_s3] sm:$0xff] (!%p189_p2) }
   0x9   : > { %1351 = vmatpush3.bf16.msra.mxu0 (!%p189_p2), %v1348_v3  ;;  %1298 = vmatprep.subr.mxu1 (!%p189_p2), %v630_v45  ;;  %v1525_v46 = vld [vmem:[%s1704_s2] ss:$0 sm:$0xff] (!%p189_p2) }
   0xa   : > { %1353 = vmatprep.subr.bf16.mxu0 (!%p189_p2), %v1352_v5  ;;  %1299 = vmatpush3.msra.mxu1 (!%p189_p2), %v630_v45 }
   0xd   : > { %s1709_s26 = smov (!%p217_p3, %s1086_s26), 255  ;;  %1355 = vmatpush3.bf16.msra.mxu0 %v1352_v5 }
   0xe   : > { %s1087_s8 = sshll.u32 %s1709_s26, 3  ;;  %1357 = vmatprep.subr.bf16.mxu0 %v1356_v8 }
   0xf   : > { %s1450_s15 = scalar_lea.vmem %s1702_s0, %s1087_s8  ;;  %s1602_s28 = scalar_lea.vmem %s1707_s5, %s1087_s8 }
  0x10   : > { %v228_v11 = vld [vmem:[%s1450_s15] sm:$0xff]  ;;  %v229_v14 = vld [vmem:[%s1450_s15 + $0x8] sm:$0xff]  ;;  %v230_v15 = vld [vmem:[%s1450_s15 + $0x10] sm:$0xff] }
  0x11   : > { %1250 = vmatprep.mubr.msk.f32.mxu0 %vm276_vm0, %v228_v11  ;;  %1359 = vmatpush3.bf16.msra.mxu0 %v1356_v8  ;;  %v231_v16 = vld [vmem:[%s1450_s15 + $0x18] sm:$0xff]  ;;  %v232_v17 = vld [vmem:[%s1450_s15 + $0x20] sm:$0xff]  ;;  %v233_v18 = vld [vmem:[%s1450_s15 + $0x28] sm:$0xff] }
  0x12   : > { %1361 = vmatprep.subr.bf16.mxu0 %v1360_v12  ;;  %v234_v19 = vld [vmem:[%s1450_s15 + $0x30] sm:$0xff]  ;;  %v235_v20 = vld [vmem:[%s1450_s15 + $0x38] sm:$0xff]  ;;  %v236_v21 = vld [vmem:[%s1450_s15 + $0x40] sm:$0xff] }
  0x13   : > { %v237_v22 = vld [vmem:[%s1450_s15 + $0x48] sm:$0xff]  ;;  %v238_v23 = vld [vmem:[%s1450_s15 + $0x50] sm:$0xff]  ;;  %v239_v24 = vld [vmem:[%s1450_s15 + $0x58] sm:$0xff] }
  0x14   : > { %v240_v25 = vld [vmem:[%s1450_s15 + $0x60] sm:$0xff]  ;;  %v241_v26 = vld [vmem:[%s1450_s15 + $0x68] sm:$0xff]  ;;  %v242_v27 = vld [vmem:[%s1450_s15 + $0x70] sm:$0xff] }
  0x15   : > { %1363 = vmatpush3.bf16.msra.mxu0 %v1360_v12  ;;  %v243_v28 = vld [vmem:[%s1450_s15 + $0x78] sm:$0xff]  ;;  %v244_v29 = vld [vmem:[%s1450_s15 + $0x80] sm:$0xff]  ;;  %v245_v30 = vld [vmem:[%s1450_s15 + $0x88] sm:$0xff] }
  0x16   : > { %1248 = vmatprep.subr.mxu0 %v268_v13  ;;  %v246_v31 = vld [vmem:[%s1450_s15 + $0x90] sm:$0xff]  ;;  %v247_v32 = vld [vmem:[%s1450_s15 + $0x98] sm:$0xff]  ;;  %v248_v33 = vld [vmem:[%s1450_s15 + $0xa0] sm:$0xff] }
  0x17   : > { %v249_v34 = vld [vmem:[%s1450_s15 + $0xa8] sm:$0xff]  ;;  %v250_v35 = vld [vmem:[%s1450_s15 + $0xb0] sm:$0xff]  ;;  %v251_v36 = vld [vmem:[%s1450_s15 + $0xb8] sm:$0xff] }
  0x18   : > { %v252_v37 = vld [vmem:[%s1450_s15 + $0xc0] sm:$0xff]  ;;  %v253_v38 = vld [vmem:[%s1450_s15 + $0xc8] sm:$0xff]  ;;  %v254_v39 = vld [vmem:[%s1450_s15 + $0xd0] sm:$0xff] }
  0x19   : > { %1249 = vmatpush3.msra.mxu0 %v268_v13  ;;  %v255_v40 = vld [vmem:[%s1450_s15 + $0xd8] sm:$0xff]  ;;  %v256_v41 = vld [vmem:[%s1450_s15 + $0xe0] sm:$0xff]  ;;  %v257_v42 = vld [vmem:[%s1450_s15 + $0xe8] sm:$0xff] }
  0x1a   : > { %1251 = vmatmul.mubr.msk.f32.vlgmr.msra.gmra.mrb[0].mxu0 %vm276_vm0, %v229_v14  ;;  %v258_v43 = vld [vmem:[%s1450_s15 + $0xf0] sm:$0xff]  ;;  %v259_v44 = vld [vmem:[%s1450_s15 + $0xf8] sm:$0xff] }
  0x1b   : > { %1253 = vmatprep.mubr.msk.f32.mxu0 %vm276_vm0, %v230_v15 }
  0x1e   : > { %1254 = vmatmul.mubr.msk.f32.gmra.mrb[2].mxu0 %vm276_vm0, %v231_v16 }
  0x1f   : > { %1256 = vmatprep.mubr.msk.f32.mxu0 %vm276_vm0, %v232_v17 }
  0x22   : > { %1257 = vmatmul.mubr.msk.f32.gmra.mrb[4].mxu0 %vm276_vm0, %v233_v18 }
  0x23   : > { %1259 = vmatprep.mubr.msk.f32.mxu0 %vm276_vm0, %v234_v19 }
  0x26   : > { %1260 = vmatmul.mubr.msk.f32.gmra.mrb[6].mxu0 %vm276_vm0, %v235_v20 }
  0x27   : > { %1262 = vmatprep.mubr.msk.f32.mxu0 %vm276_vm0, %v236_v21 }
  0x2a   : > { %1263 = vmatmul.mubr.msk.f32.gmra.mrb[8].mxu0 %vm276_vm0, %v237_v22 }
  0x2b   : > { %1265 = vmatprep.mubr.msk.f32.mxu0 %vm276_vm0, %v238_v23 }
  0x2e   : > { %1266 = vmatmul.mubr.msk.f32.gmra.mrb[10].mxu0 %vm276_vm0, %v239_v24 }
  0x2f   : > { %1268 = vmatprep.mubr.msk.f32.mxu0 %vm276_vm0, %v240_v25 }
  0x32   : > { %1269 = vmatmul.mubr.msk.f32.gmra.mrb[12].mxu0 %vm276_vm0, %v241_v26 }
  0x33   : > { %1271 = vmatprep.mubr.msk.f32.mxu0 %vm276_vm0, %v242_v27 }
  0x36   : > { %1272 = vmatmul.mubr.msk.f32.gmra.mrb[14].mxu0 %vm276_vm0, %v243_v28 }
  0x37   : > { %1274 = vmatprep.mubr.msk.f32.mxu0 %vm276_vm0, %v244_v29 }
  0x3a   : > { %1275 = vmatmul.mubr.msk.f32.gmra.mrb[16].mxu0 %vm276_vm0, %v245_v30 }
  0x3b   : > { %1277 = vmatprep.mubr.msk.f32.mxu0 %vm276_vm0, %v246_v31 }
  0x3e   : > { %1278 = vmatmul.mubr.msk.f32.gmra.mrb[18].mxu0 %vm276_vm0, %v247_v32 }
  0x3f   : > { %1280 = vmatprep.mubr.msk.f32.mxu0 %vm276_vm0, %v248_v33 }
  0x42   : > { %1281 = vmatmul.mubr.msk.f32.gmra.mrb[20].mxu0 %vm276_vm0, %v249_v34 }
  0x43   : > { %1283 = vmatprep.mubr.msk.f32.mxu0 %vm276_vm0, %v250_v35 }
  0x46   : > { %1284 = vmatmul.mubr.msk.f32.gmra.mrb[22].mxu0 %vm276_vm0, %v251_v36 }
  0x47   : > { %1286 = vmatprep.mubr.msk.f32.mxu0 %vm276_vm0, %v252_v37 }
  0x4a   : > { %1287 = vmatmul.mubr.msk.f32.gmra.mrb[24].mxu0 %vm276_vm0, %v253_v38 }
  0x4b   : > { %1289 = vmatprep.mubr.msk.f32.mxu0 %vm276_vm0, %v254_v39 }
  0x4e   : > { %1290 = vmatmul.mubr.msk.f32.gmra.mrb[26].mxu0 %vm276_vm0, %v255_v40 }
  0x4f   : > { %1292 = vmatprep.mubr.msk.f32.mxu0 %vm276_vm0, %v256_v41 }
  0x52   : > { %1293 = vmatmul.mubr.msk.f32.gmra.mrb[28].mxu0 %vm276_vm0, %v257_v42 }
  0x53   : > { %1295 = vmatprep.mubr.msk.f32.mxu0 %vm276_vm0, %v258_v43 }
  0x56   : > { %1296 = vmatmul.mubr.msk.f32.gmra.mrb[30].mxu0 %vm276_vm0, %v259_v44 }
  0xed   : > { %v1252_v47 = vpop.f32.mrb[0].mxu0 }
  0xee   : > { %v445_v48 = vadd.f32 %v1252_v47, %v1525_v46  ;;  %v439_v49 = vpop.f32.mrb[1].mxu0 }
  0xef   : > { %v440_v50 = vadd.f32 %v1525_v46, %v439_v49 }
  0xf0   : > { %v599_v53 = vmax.f32 %v445_v48, 0.0 }
  0xf1   : > { %v598_v51 = vmax.f32 %v440_v50, 0.0  ;;  %v1255_v52 = vpop.f32.mrb[2].mxu0 }
  0xf2   : > { %v455_v54 = vadd.f32 %v1255_v52, %v1525_v46  ;;  %v449_v55 = vpop.f32.mrb[3].mxu0 }
  0xf3   : > { %v450_v56 = vadd.f32 %v1525_v46, %v449_v55  ;;  %1300 = vmatprep.mubr.msk.f32.mxu1 %vm638_vm1, %v598_v51 }
  0xf4   : > { %1301 = vmatmul.mubr.msk.f32.vlgmr.msra.gmra.mrb[0].mxu1 %vm638_vm1, %v599_v53  ;;  %v601_v59 = vmax.f32 %v455_v54, 0.0 }
  0xf5   : > { %v600_v57 = vmax.f32 %v450_v56, 0.0  ;;  %v1258_v58 = vpop.f32.mrb[4].mxu0 }
  0xf6   : > { %v465_v60 = vadd.f32 %v1258_v58, %v1525_v46  ;;  %v459_v61 = vpop.f32.mrb[5].mxu0 }
  0xf7   : > { %v460_v62 = vadd.f32 %v1525_v46, %v459_v61  ;;  %1303 = vmatprep.mubr.msk.f32.mxu1 %vm638_vm1, %v600_v57 }
  0xf8   : > { %1304 = vmatmul.mubr.msk.f32.gmra.mrb[2].mxu1 %vm638_vm1, %v601_v59  ;;  %v603_v1 = vmax.f32 %v465_v60, 0.0 }
  0xf9   : > { %v602_v63 = vmax.f32 %v460_v62, 0.0  ;;  %v1261_v0 = vpop.f32.mrb[6].mxu0 }
  0xfa   : > { %v475_v2 = vadd.f32 %v1261_v0, %v1525_v46  ;;  %v469_v3 = vpop.f32.mrb[7].mxu0 }
  0xfb   : > { %v470_v4 = vadd.f32 %v1525_v46, %v469_v3  ;;  %1306 = vmatprep.mubr.msk.f32.mxu1 %vm638_vm1, %v602_v63 }
  0xfc   : > { %1307 = vmatmul.mubr.msk.f32.gmra.mrb[4].mxu1 %vm638_vm1, %v603_v1  ;;  %v605_v7 = vmax.f32 %v475_v2, 0.0 }
  0xfd   : > { %v604_v5 = vmax.f32 %v470_v4, 0.0  ;;  %v1264_v6 = vpop.f32.mrb[8].mxu0 }
  0xfe   : > { %v485_v8 = vadd.f32 %v1264_v6, %v1525_v46  ;;  %v479_v9 = vpop.f32.mrb[9].mxu0 }
  0xff   : > { %v480_v10 = vadd.f32 %v1525_v46, %v479_v9  ;;  %1309 = vmatprep.mubr.msk.f32.mxu1 %vm638_vm1, %v604_v5 }
 0x100   : > { %1310 = vmatmul.mubr.msk.f32.gmra.mrb[6].mxu1 %vm638_vm1, %v605_v7  ;;  %v607_v13 = vmax.f32 %v485_v8, 0.0 }
 0x101   : > { %v606_v11 = vmax.f32 %v480_v10, 0.0  ;;  %v1267_v12 = vpop.f32.mrb[10].mxu0 }
 0x102   : > { %v495_v14 = vadd.f32 %v1267_v12, %v1525_v46  ;;  %v489_v15 = vpop.f32.mrb[11].mxu0 }
 0x103   : > { %v490_v16 = vadd.f32 %v1525_v46, %v489_v15  ;;  %1312 = vmatprep.mubr.msk.f32.mxu1 %vm638_vm1, %v606_v11 }
 0x104   : > { %1313 = vmatmul.mubr.msk.f32.gmra.mrb[8].mxu1 %vm638_vm1, %v607_v13  ;;  %v609_v19 = vmax.f32 %v495_v14, 0.0 }
 0x105   : > { %v608_v17 = vmax.f32 %v490_v16, 0.0  ;;  %v1270_v18 = vpop.f32.mrb[12].mxu0  ;;  %v1594_v16 = vld [vmem:[%s1706_s4] ss:$0 sm:$0xff] }
 0x106   : > { %v505_v20 = vadd.f32 %v1270_v18, %v1525_v46  ;;  %v499_v21 = vpop.f32.mrb[13].mxu0 }
 0x107   : > { %v500_v22 = vadd.f32 %v1525_v46, %v499_v21  ;;  %1315 = vmatprep.mubr.msk.f32.mxu1 %vm638_vm1, %v608_v17 }
 0x108   : > { %1316 = vmatmul.mubr.msk.f32.gmra.mrb[10].mxu1 %vm638_vm1, %v609_v19  ;;  %v611_v25 = vmax.f32 %v505_v20, 0.0 }
 0x109   : > { %v610_v23 = vmax.f32 %v500_v22, 0.0  ;;  %v1273_v24 = vpop.f32.mrb[14].mxu0 }
 0x10a   : > { %v515_v26 = vadd.f32 %v1273_v24, %v1525_v46  ;;  %v509_v27 = vpop.f32.mrb[15].mxu0 }
 0x10b   : > { %v510_v28 = vadd.f32 %v1525_v46, %v509_v27  ;;  %1318 = vmatprep.mubr.msk.f32.mxu1 %vm638_vm1, %v610_v23 }
 0x10c   : > { %1319 = vmatmul.mubr.msk.f32.gmra.mrb[12].mxu1 %vm638_vm1, %v611_v25  ;;  %v613_v31 = vmax.f32 %v515_v26, 0.0 }
 0x10d   : > { %v612_v29 = vmax.f32 %v510_v28, 0.0  ;;  %v1276_v30 = vpop.f32.mrb[16].mxu0 }
 0x10e   : > { %v525_v32 = vadd.f32 %v1276_v30, %v1525_v46  ;;  %v519_v33 = vpop.f32.mrb[17].mxu0 }
 0x10f   : > { %v520_v34 = vadd.f32 %v1525_v46, %v519_v33  ;;  %1321 = vmatprep.mubr.msk.f32.mxu1 %vm638_vm1, %v612_v29 }
 0x110   : > { %1322 = vmatmul.mubr.msk.f32.gmra.mrb[14].mxu1 %vm638_vm1, %v613_v31  ;;  %v615_v37 = vmax.f32 %v525_v32, 0.0 }
 0x111   : > { %v614_v35 = vmax.f32 %v520_v34, 0.0  ;;  %v1279_v36 = vpop.f32.mrb[18].mxu0 }
 0x112   : > { %v535_v38 = vadd.f32 %v1279_v36, %v1525_v46  ;;  %v529_v39 = vpop.f32.mrb[19].mxu0 }
 0x113   : > { %v530_v40 = vadd.f32 %v1525_v46, %v529_v39  ;;  %1324 = vmatprep.mubr.msk.f32.mxu1 %vm638_vm1, %v614_v35 }
 0x114   : > { %1325 = vmatmul.mubr.msk.f32.gmra.mrb[16].mxu1 %vm638_vm1, %v615_v37  ;;  %v617_v43 = vmax.f32 %v535_v38, 0.0 }
 0x115   : > { %v616_v41 = vmax.f32 %v530_v40, 0.0  ;;  %v1282_v42 = vpop.f32.mrb[20].mxu0 }
 0x116   : > { %v545_v44 = vadd.f32 %v1282_v42, %v1525_v46  ;;  %v539_v45 = vpop.f32.mrb[21].mxu0 }
 0x117   : > { %v540_v47 = vadd.f32 %v1525_v46, %v539_v45  ;;  %1327 = vmatprep.mubr.msk.f32.mxu1 %vm638_vm1, %v616_v41 }
 0x118   : > { %1328 = vmatmul.mubr.msk.f32.gmra.mrb[18].mxu1 %vm638_vm1, %v617_v43  ;;  %v619_v50 = vmax.f32 %v545_v44, 0.0 }
 0x119   : > { %v618_v48 = vmax.f32 %v540_v47, 0.0  ;;  %v1285_v49 = vpop.f32.mrb[22].mxu0 }
 0x11a   : > { %v555_v51 = vadd.f32 %v1285_v49, %v1525_v46  ;;  %v549_v52 = vpop.f32.mrb[23].mxu0 }
 0x11b   : > { %v550_v53 = vadd.f32 %v1525_v46, %v549_v52  ;;  %1330 = vmatprep.mubr.msk.f32.mxu1 %vm638_vm1, %v618_v48 }
 0x11c   : > { %1331 = vmatmul.mubr.msk.f32.gmra.mrb[20].mxu1 %vm638_vm1, %v619_v50  ;;  %v621_v56 = vmax.f32 %v555_v51, 0.0 }
 0x11d   : > { %v620_v54 = vmax.f32 %v550_v53, 0.0  ;;  %v1288_v55 = vpop.f32.mrb[24].mxu0 }
 0x11e   : > { %v565_v57 = vadd.f32 %v1288_v55, %v1525_v46  ;;  %v559_v58 = vpop.f32.mrb[25].mxu0 }
 0x11f   : > { %v560_v59 = vadd.f32 %v1525_v46, %v559_v58  ;;  %1333 = vmatprep.mubr.msk.f32.mxu1 %vm638_vm1, %v620_v54 }
 0x120   : > { %1334 = vmatmul.mubr.msk.f32.gmra.mrb[22].mxu1 %vm638_vm1, %v621_v56  ;;  %v623_v62 = vmax.f32 %v565_v57, 0.0 }
 0x121   : > { %v622_v60 = vmax.f32 %v560_v59, 0.0  ;;  %v1291_v61 = vpop.f32.mrb[26].mxu0 }
 0x122   : > { %v575_v63 = vadd.f32 %v1291_v61, %v1525_v46  ;;  %v569_v0 = vpop.f32.mrb[27].mxu0 }
 0x123   : > { %v570_v1 = vadd.f32 %v1525_v46, %v569_v0  ;;  %1336 = vmatprep.mubr.msk.f32.mxu1 %vm638_vm1, %v622_v60 }
 0x124   : > { %1337 = vmatmul.mubr.msk.f32.gmra.mrb[24].mxu1 %vm638_vm1, %v623_v62  ;;  %v625_v4 = vmax.f32 %v575_v63, 0.0 }
 0x125   : > { %v624_v2 = vmax.f32 %v570_v1, 0.0  ;;  %v1294_v3 = vpop.f32.mrb[28].mxu0 }
 0x126   : > { %v585_v5 = vadd.f32 %v1294_v3, %v1525_v46  ;;  %v579_v6 = vpop.f32.mrb[29].mxu0 }
 0x127   : > { %v580_v7 = vadd.f32 %v1525_v46, %v579_v6  ;;  %1339 = vmatprep.mubr.msk.f32.mxu1 %vm638_vm1, %v624_v2 }
 0x128   : > { %1340 = vmatmul.mubr.msk.f32.gmra.mrb[26].mxu1 %vm638_vm1, %v625_v4  ;;  %v627_v10 = vmax.f32 %v585_v5, 0.0 }
 0x129   : > { %v626_v8 = vmax.f32 %v580_v7, 0.0  ;;  %v1297_v9 = vpop.f32.mrb[30].mxu0 }
 0x12a   : > { %v595_v11 = vadd.f32 %v1297_v9, %v1525_v46  ;;  %v589_v12 = vpop.f32.mrb[31].mxu0 }
 0x12b   : > { %v590_v13 = vadd.f32 %v1525_v46, %v589_v12  ;;  %1342 = vmatprep.mubr.msk.f32.mxu1 %vm638_vm1, %v626_v8 }
 0x12c   : > { %1343 = vmatmul.mubr.msk.f32.gmra.mrb[28].mxu1 %vm638_vm1, %v627_v10  ;;  %v629_v15 = vmax.f32 %v595_v11, 0.0 }
 0x12d   : > { %v628_v14 = vmax.f32 %v590_v13, 0.0 }
 0x12f   : > { %1345 = vmatprep.mubr.msk.f32.mxu1 %vm638_vm1, %v628_v14 }
 0x130   : > { %1346 = vmatmul.mubr.msk.f32.gmra.mrb[30].mxu1 %vm638_vm1, %v629_v15 }
 0x1c7   : > { %v1302_v17 = vpop.f32.mrb[0].mxu1 }
 0x1c8   : > { %v807_v18 = vadd.f32 %v1302_v17, %v1594_v16  ;;  %v801_v19 = vpop.f32.mrb[1].mxu1 }
 0x1c9   : > { %v802_v46 = vadd.f32 %v1594_v16, %v801_v19 }
 0x1ca   : > { %v961_v20 = vmax.f32 %v807_v18, 0.0 }
 0x1cb   : > { %v960_v21 = vmax.f32 %v802_v46, 0.0  ;;  %v1305_v22 = vpop.f32.mrb[2].mxu1 }
 0x1cc   : > { %994 = vst.msk [vmem:[%s1602_s28 + $0x8] sm:$0xff] %vm992_vm2, %v961_v20  ;;  %v817_v23 = vadd.f32 %v1305_v22, %v1594_v16  ;;  %v811_v24 = vpop.f32.mrb[3].mxu1 }
 0x1cd   : > { %993 = vst.msk [vmem:[%s1602_s28] sm:$0xff] %vm992_vm2, %v960_v21  ;;  %v812_v25 = vadd.f32 %v1594_v16, %v811_v24 }
 0x1ce   : > { %v963_v26 = vmax.f32 %v817_v23, 0.0 }
 0x1cf   : > { %v962_v27 = vmax.f32 %v812_v25, 0.0  ;;  %v1308_v28 = vpop.f32.mrb[4].mxu1 }
 0x1d0   : > { %996 = vst.msk [vmem:[%s1602_s28 + $0x18] sm:$0xff] %vm992_vm2, %v963_v26  ;;  %v827_v29 = vadd.f32 %v1308_v28, %v1594_v16  ;;  %v821_v30 = vpop.f32.mrb[5].mxu1 }
 0x1d1   : > { %995 = vst.msk [vmem:[%s1602_s28 + $0x10] sm:$0xff] %vm992_vm2, %v962_v27  ;;  %v822_v31 = vadd.f32 %v1594_v16, %v821_v30 }
 0x1d2   : > { %v965_v32 = vmax.f32 %v827_v29, 0.0 }
 0x1d3   : > { %v964_v33 = vmax.f32 %v822_v31, 0.0  ;;  %v1311_v34 = vpop.f32.mrb[6].mxu1 }
 0x1d4   : > { %998 = vst.msk [vmem:[%s1602_s28 + $0x28] sm:$0xff] %vm992_vm2, %v965_v32  ;;  %v837_v35 = vadd.f32 %v1311_v34, %v1594_v16  ;;  %v831_v36 = vpop.f32.mrb[7].mxu1 }
 0x1d5   : > { %997 = vst.msk [vmem:[%s1602_s28 + $0x20] sm:$0xff] %vm992_vm2, %v964_v33  ;;  %v832_v37 = vadd.f32 %v1594_v16, %v831_v36 }
 0x1d6   : > { %v967_v38 = vmax.f32 %v837_v35, 0.0 }
 0x1d7   : > { %v966_v39 = vmax.f32 %v832_v37, 0.0  ;;  %v1314_v40 = vpop.f32.mrb[8].mxu1 }
 0x1d8   : > { %1000 = vst.msk [vmem:[%s1602_s28 + $0x38] sm:$0xff] %vm992_vm2, %v967_v38  ;;  %v847_v41 = vadd.f32 %v1314_v40, %v1594_v16  ;;  %v841_v42 = vpop.f32.mrb[9].mxu1 }
 0x1d9   : > { %999 = vst.msk [vmem:[%s1602_s28 + $0x30] sm:$0xff] %vm992_vm2, %v966_v39  ;;  %v842_v43 = vadd.f32 %v1594_v16, %v841_v42 }
 0x1da   : > { %v969_v44 = vmax.f32 %v847_v41, 0.0 }
 0x1db   : > { %v968_v45 = vmax.f32 %v842_v43, 0.0  ;;  %v1317_v47 = vpop.f32.mrb[10].mxu1 }
 0x1dc   : > { %1002 = vst.msk [vmem:[%s1602_s28 + $0x48] sm:$0xff] %vm992_vm2, %v969_v44  ;;  %v857_v48 = vadd.f32 %v1317_v47, %v1594_v16  ;;  %v851_v49 = vpop.f32.mrb[11].mxu1 }
 0x1dd   : > { %1001 = vst.msk [vmem:[%s1602_s28 + $0x40] sm:$0xff] %vm992_vm2, %v968_v45  ;;  %v852_v50 = vadd.f32 %v1594_v16, %v851_v49 }
 0x1de   : > { %v971_v51 = vmax.f32 %v857_v48, 0.0 }
 0x1df   : > { %v970_v52 = vmax.f32 %v852_v50, 0.0  ;;  %v1320_v53 = vpop.f32.mrb[12].mxu1 }
 0x1e0   : > { %1004 = vst.msk [vmem:[%s1602_s28 + $0x58] sm:$0xff] %vm992_vm2, %v971_v51  ;;  %v867_v54 = vadd.f32 %v1320_v53, %v1594_v16  ;;  %v861_v55 = vpop.f32.mrb[13].mxu1 }
 0x1e1   : > { %1003 = vst.msk [vmem:[%s1602_s28 + $0x50] sm:$0xff] %vm992_vm2, %v970_v52  ;;  %v862_v56 = vadd.f32 %v1594_v16, %v861_v55 }
 0x1e2   : > { %v973_v57 = vmax.f32 %v867_v54, 0.0 }
 0x1e3   : > { %v972_v58 = vmax.f32 %v862_v56, 0.0  ;;  %v1323_v59 = vpop.f32.mrb[14].mxu1 }
 0x1e4   : > { %1006 = vst.msk [vmem:[%s1602_s28 + $0x68] sm:$0xff] %vm992_vm2, %v973_v57  ;;  %v877_v60 = vadd.f32 %v1323_v59, %v1594_v16  ;;  %v871_v61 = vpop.f32.mrb[15].mxu1 }
 0x1e5   : > { %1005 = vst.msk [vmem:[%s1602_s28 + $0x60] sm:$0xff] %vm992_vm2, %v972_v58  ;;  %v872_v62 = vadd.f32 %v1594_v16, %v871_v61 }
 0x1e6   : > { %v975_v63 = vmax.f32 %v877_v60, 0.0 }
 0x1e7   : > { %v974_v0 = vmax.f32 %v872_v62, 0.0  ;;  %v1326_v1 = vpop.f32.mrb[16].mxu1 }
 0x1e8   : > { %1008 = vst.msk [vmem:[%s1602_s28 + $0x78] sm:$0xff] %vm992_vm2, %v975_v63  ;;  %v887_v2 = vadd.f32 %v1326_v1, %v1594_v16  ;;  %v881_v3 = vpop.f32.mrb[17].mxu1 }
 0x1e9   : > { %1007 = vst.msk [vmem:[%s1602_s28 + $0x70] sm:$0xff] %vm992_vm2, %v974_v0  ;;  %v882_v4 = vadd.f32 %v1594_v16, %v881_v3 }
 0x1ea   : > { %v977_v5 = vmax.f32 %v887_v2, 0.0 }
 0x1eb   : > { %v976_v6 = vmax.f32 %v882_v4, 0.0  ;;  %v1329_v7 = vpop.f32.mrb[18].mxu1 }
 0x1ec   : > { %1010 = vst.msk [vmem:[%s1602_s28 + $0x88] sm:$0xff] %vm992_vm2, %v977_v5  ;;  %v897_v8 = vadd.f32 %v1329_v7, %v1594_v16  ;;  %v891_v9 = vpop.f32.mrb[19].mxu1 }
 0x1ed   : > { %1009 = vst.msk [vmem:[%s1602_s28 + $0x80] sm:$0xff] %vm992_vm2, %v976_v6  ;;  %v892_v10 = vadd.f32 %v1594_v16, %v891_v9 }
 0x1ee   : > { %v979_v11 = vmax.f32 %v897_v8, 0.0 }
 0x1ef   : > { %v978_v12 = vmax.f32 %v892_v10, 0.0  ;;  %v1332_v13 = vpop.f32.mrb[20].mxu1 }
 0x1f0   : > { %1012 = vst.msk [vmem:[%s1602_s28 + $0x98] sm:$0xff] %vm992_vm2, %v979_v11  ;;  %v907_v14 = vadd.f32 %v1332_v13, %v1594_v16  ;;  %v901_v15 = vpop.f32.mrb[21].mxu1 }
 0x1f1   : > { %1011 = vst.msk [vmem:[%s1602_s28 + $0x90] sm:$0xff] %vm992_vm2, %v978_v12  ;;  %v902_v17 = vadd.f32 %v1594_v16, %v901_v15 }
 0x1f2   : > { %v981_v18 = vmax.f32 %v907_v14, 0.0 }
 0x1f3   : > { %v980_v19 = vmax.f32 %v902_v17, 0.0  ;;  %v1335_v46 = vpop.f32.mrb[22].mxu1 }
 0x1f4   : > { %1014 = vst.msk [vmem:[%s1602_s28 + $0xa8] sm:$0xff] %vm992_vm2, %v981_v18  ;;  %v917_v20 = vadd.f32 %v1335_v46, %v1594_v16  ;;  %v911_v21 = vpop.f32.mrb[23].mxu1 }
 0x1f5   : > { %1013 = vst.msk [vmem:[%s1602_s28 + $0xa0] sm:$0xff] %vm992_vm2, %v980_v19  ;;  %v912_v22 = vadd.f32 %v1594_v16, %v911_v21 }
 0x1f6   : > { %v983_v23 = vmax.f32 %v917_v20, 0.0 }
 0x1f7   : > { %v982_v24 = vmax.f32 %v912_v22, 0.0  ;;  %v1338_v25 = vpop.f32.mrb[24].mxu1 }
 0x1f8   : > { %1016 = vst.msk [vmem:[%s1602_s28 + $0xb8] sm:$0xff] %vm992_vm2, %v983_v23  ;;  %v927_v26 = vadd.f32 %v1338_v25, %v1594_v16  ;;  %v921_v27 = vpop.f32.mrb[25].mxu1 }
 0x1f9   : > { %1015 = vst.msk [vmem:[%s1602_s28 + $0xb0] sm:$0xff] %vm992_vm2, %v982_v24  ;;  %v922_v28 = vadd.f32 %v1594_v16, %v921_v27 }
 0x1fa   : > { %v985_v29 = vmax.f32 %v927_v26, 0.0 }
 0x1fb   : > { %v984_v30 = vmax.f32 %v922_v28, 0.0  ;;  %v1341_v31 = vpop.f32.mrb[26].mxu1 }
 0x1fc   : > { %1018 = vst.msk [vmem:[%s1602_s28 + $0xc8] sm:$0xff] %vm992_vm2, %v985_v29  ;;  %v937_v32 = vadd.f32 %v1341_v31, %v1594_v16  ;;  %v931_v33 = vpop.f32.mrb[27].mxu1 }
 0x1fd   : > { %1017 = vst.msk [vmem:[%s1602_s28 + $0xc0] sm:$0xff] %vm992_vm2, %v984_v30  ;;  %v932_v34 = vadd.f32 %v1594_v16, %v931_v33 }
 0x1fe   : > { %v987_v35 = vmax.f32 %v937_v32, 0.0 }
 0x1ff   : > { %v986_v36 = vmax.f32 %v932_v34, 0.0  ;;  %v1344_v37 = vpop.f32.mrb[28].mxu1 }
 0x200   : > { %1020 = vst.msk [vmem:[%s1602_s28 + $0xd8] sm:$0xff] %vm992_vm2, %v987_v35  ;;  %v947_v38 = vadd.f32 %v1344_v37, %v1594_v16  ;;  %v941_v39 = vpop.f32.mrb[29].mxu1 }
 0x201   : > { %1019 = vst.msk [vmem:[%s1602_s28 + $0xd0] sm:$0xff] %vm992_vm2, %v986_v36  ;;  %v942_v40 = vadd.f32 %v1594_v16, %v941_v39 }
 0x202   : > { %v989_v41 = vmax.f32 %v947_v38, 0.0 }
 0x203   : > { %v988_v42 = vmax.f32 %v942_v40, 0.0  ;;  %v1347_v43 = vpop.f32.mrb[30].mxu1 }
 0x204   : > { %1022 = vst.msk [vmem:[%s1602_s28 + $0xe8] sm:$0xff] %vm992_vm2, %v989_v41  ;;  %v957_v44 = vadd.f32 %v1347_v43, %v1594_v16  ;;  %v951_v45 = vpop.f32.mrb[31].mxu1 }
 0x205   : > { %1021 = vst.msk [vmem:[%s1602_s28 + $0xe0] sm:$0xff] %vm992_vm2, %v988_v42  ;;  %v952_v47 = vadd.f32 %v1594_v16, %v951_v45 }
 0x206   : > { %v991_v48 = vmax.f32 %v957_v44, 0.0 }
 0x207   : > { %v990_v49 = vmax.f32 %v952_v47, 0.0 }
 0x208   : > { %1024 = vst.msk [vmem:[%s1602_s28 + $0xf8] sm:$0xff] %vm992_vm2, %v991_v48 }
 0x209   : > { %1023 = vst.msk [vmem:[%s1602_s28 + $0xf0] sm:$0xff] %vm992_vm2, %v990_v49 }
 0x20a PF: > { %s15_s18 = sadd.s32 1, %s1378_s18  }
 0x20b   : > { %p12_p4 = scmp.ge.s32.totalorder %s15_s18, 10  }
 0x20d   :  { %14 = sbr.rel (!%p12_p4) target bundleno = 1 (0x1), region = 70 }

</bundles_post_ra>
